<compile_context>
chip_gen: v6e
topology: v6e:2x2x1
jax: 0.10.0
libtpu: 0.0.40
codegen_flags: <defaults>
</compile_context>

<pallas_src>
import jax
import jax.numpy as jnp
from jax import lax
from jax.experimental import pallas as pl
from jax.experimental.pallas import tpu as pltpu


# ---------------- config (mirrors DocCNN's config dict) ----------------
CONFIG = {
    "CNN": {
        "activation": "leaky_relu",
        "layers": [8, 16],
        "kernels": [3, 3],
        "stride": [1, 1],          # padding='same' requires stride 1 in torch
        "batchNorm": [1, 0],
        "maxPool": [1, 1],
        "denseUnit": [32, 16],
    },
    "training": {"dropRate": 0.1},
}
INPUT_SHAPE = (4, 16)    # (C_in, L) -- matches DocCNN's input_shape convention
OUTPUT_SHAPE = 1
BATCH = 64               # rows per call: BATCH*L0 = 1024 (M=512 per grid step)
B_BLK = 32               # batch elements per grid step
OUT_PAD = 128            # lane-dense output width (wrapper slices column 0)
NEG_SLOPE = 0.2
BN_EPS = 1e-5


# ---------------- kernel factory (static dims closed over) ----------------
def _make_kernel(b_blk, l0):
    l1 = l0 // 2
    lf = l1 // 2

    def _leaky(v):
        # max(v, a*v) == LeakyReLU(a) for 0 < a < 1; single VALU op.
        return jnp.maximum(v, NEG_SLOPE * v)

    def _conv_same(h, w_ref, length):
        """Build the (M, K*C) operand of Conv1d(padding='same', stride=1) for
        the whole batch block. h: (M=b_blk*length, C) flat, batch-major.
        Shifted copies via pltpu.roll along the sublane axis (XLU slot) plus a
        per-batch boundary mask; pieces ordered (tap, cin) to match w_ref."""
        m, c = h.shape
        k = w_ref.shape[0] // c
        pad = k // 2
        lpos = lax.broadcasted_iota(jnp.int32, (m, c), 0) % length
        pieces = []
        for t in range(k):                      # static unroll (K = 3)
            d = t - pad                         # tap t reads x[l + d]
            if d == 0:
                pieces.append(h)
            else:
                p = pltpu.roll(h, (-d) % m, axis=0)     # p[r] = h[r + d]
                if d < 0:
                    p = jnp.where(lpos < -d, 0.0, p)          # l + d < 0
                else:
                    p = jnp.where(lpos >= length - d, 0.0, p)  # l + d >= L
                pieces.append(p)
        return jnp.concatenate(pieces, axis=-1)             # (M, K*C)

    def kernel(x_ref, cw1_ref, cb1_ref, bns1_ref, bnb1_ref, cw2_ref, cb2_ref,
               dw1_ref, db1_ref, dw2_ref, db2_ref, dw3_ref, db3_ref,
               o_ref, p1_ref, p2_ref):
        # ---- conv block 1: Conv1d(same) -> BN(eval, folded) -> pool -> leaky ----
        x = x_ref[...]                                       # (b_blk*l0, Cin) f32
        hc = _conv_same(x, cw1_ref, l0)
        y = jnp.dot(hc, cw1_ref[...], preferred_element_type=jnp.float32)
        y = (y + cb1_ref[...]) * bns1_ref[...] + bnb1_ref[...]
        # MaxPool1d(2): one scratch store + two strided row loads + one VPU max.
        p1_ref[...] = y
        m0 = y.shape[0]
        h = jnp.maximum(p1_ref[pl.ds(0, m0 // 2, stride=2), :],
                        p1_ref[pl.ds(1, m0 // 2, stride=2), :])
        h = _leaky(h)           # LeakyReLU commutes with max-pool (monotone)

        # ---- conv block 2: Conv1d(same) -> pool -> leaky ----
        hc = _conv_same(h, cw2_ref, l1)
        y = jnp.dot(hc, cw2_ref[...], preferred_element_type=jnp.float32)
        y = y + cb2_ref[...]
        p2_ref[...] = y                                      # (b_blk*l1, C2)
        # Fused MaxPool1d(2) + Flatten: strided row gathers build the FC1
        # operand directly, element order l*C2 + c (baked into dw1 host-side).
        pieces = []
        for l in range(lf):                                  # static unroll (Lf = 4)
            e = p2_ref[pl.ds(2 * l, b_blk, stride=l1), :]
            o = p2_ref[pl.ds(2 * l + 1, b_blk, stride=l1), :]
            pieces.append(jnp.maximum(e, o))
        z = _leaky(jnp.concatenate(pieces, axis=-1))         # (b_blk, Lf*C2)

        # ---- dense head: FC1 -> leaky -> FC2 -> dropout -> leaky -> FC3 -> sigmoid
        z = _leaky(jnp.dot(z, dw1_ref[...],
                           preferred_element_type=jnp.float32) + db1_ref[...])
        z = jnp.dot(z, dw2_ref[...],
                    preferred_element_type=jnp.float32) + db2_ref[...]
        # TODO(synk): nn.Dropout is identity here (inference / eval-mode semantics).
        z = _leaky(z)
        # Final (b,16)x(16,1) layer as VPU multiply + lane reduction: avoids a
        # full MXU push/drain for 16 MACs (serialized MRF tail on v5e/v6e).
        s = jnp.sum(z * dw3_ref[...], axis=-1, keepdims=True) + db3_ref[...]
        sig = pl.reciprocal(1.0 + jnp.exp(-s), approx=True)  # sigmoid (EUP)
        # Lane-dense store (unmasked vst); wrapper slices column 0.
        o_ref[...] = jnp.broadcast_to(sig, o_ref.shape)

    return kernel


# ---------------- wrapper ----------------
def doccnn_forward(x_ncl, P):
    B, Cin, L0 = x_ncl.shape
    assert L0 % 4 == 0, "two MaxPool1d(2) layers require L0 divisible by 4"
    C1, Cin_w, K1 = P["cW1"].shape
    C2, _, K2 = P["cW2"].shape
    U1 = P["dW1"].shape[0]
    U2 = P["dW2"].shape[0]
    assert K1 % 2 == 1 and K2 % 2 == 1, "padding='same' fusion assumes odd K"
    L1, Lf = L0 // 2, L0 // 4

    b_blk = B_BLK
    Bpad = ((B + b_blk - 1) // b_blk) * b_blk
    nblk = Bpad // b_blk

    x_blc = jnp.transpose(x_ncl, (0, 2, 1)).astype(jnp.float32)  # (B, L, Cin)
    if Bpad != B:
        x_blc = jnp.concatenate(
            [x_blc, jnp.zeros((Bpad - B, L0, Cin), jnp.float32)], axis=0)
    x2d = x_blc.reshape(Bpad * L0, Cin)                          # flat rows

    # Fold BatchNorm1d (eval mode) into per-channel scale / shift.
    scale = P["gamma"] / jnp.sqrt(P["var"] + BN_EPS)
    shift = P["beta"] - P["mean"] * scale

    # Fused conv weights: (Cout, Cin, K) -> (K*Cin, Cout), rows ordered (tap, cin).
    # All operands stay f32 (bf16 casts removed: matmuls here are latency-bound
    # and v5e's VPU has no bf16 path).
    cw1 = jnp.transpose(P["cW1"], (2, 1, 0)).reshape(K1 * Cin_w, C1)
    cb1 = P["cb1"].reshape(1, -1)
    bns1 = scale.reshape(1, -1)
    bnb1 = shift.reshape(1, -1)
    cw2 = jnp.transpose(P["cW2"], (2, 1, 0)).reshape(K2 * C1, C2)
    cb2 = P["cb2"].reshape(1, -1)
    # dW1 rows permuted so the kernel's l-major flatten (l*C2 + c) matches
    # PyTorch's channel-major Flatten (c*Lf + l); permutation is free host-side.
    dw1 = jnp.transpose(P["dW1"].reshape(U1, C2, Lf), (2, 1, 0)).reshape(Lf * C2, U1)
    db1 = P["db1"].reshape(1, -1)
    dw2 = P["dW2"].T
    db2 = P["db2"].reshape(1, -1)
    dw3 = P["dW3"].reshape(1, U2)       # used as a VPU row vector (no matmul)
    db3 = P["db3"].reshape(1, 1)

    params = [cw1, cb1, bns1, bnb1, cw2, cb2, dw1, db1, dw2, db2, dw3, db3]
    params = [p.astype(jnp.float32) for p in params]

    def const_spec(a):
        nd = a.ndim
        # Constant index_map => weight block stays VMEM-resident across steps.
        return pl.BlockSpec(a.shape, lambda i: (0,) * nd)

    in_specs = ([pl.BlockSpec((b_blk * L0, Cin), lambda i: (i, 0))]
                + [const_spec(p) for p in params])

    kernel = _make_kernel(b_blk, L0)

    out = pl.pallas_call(
        kernel,
        out_shape=jax.ShapeDtypeStruct((Bpad, OUT_PAD), jnp.float32),
        grid_spec=pltpu.PrefetchScalarGridSpec(
            num_scalar_prefetch=0,
            grid=(nblk,),                         # batch blocks
            in_specs=in_specs,
            out_specs=pl.BlockSpec((b_blk, OUT_PAD), lambda i: (i, 0)),
            scratch_shapes=[
                pltpu.VMEM((b_blk * L0, C1), jnp.float32),   # pool-1 staging
                pltpu.VMEM((b_blk * L1, C2), jnp.float32),   # pool-2/flatten staging
            ]),
        compiler_params=pltpu.CompilerParams(
            # Independent batch blocks: shard across v7x's 2 TensorCores;
            # free no-op on v5e/v6e. VMEM/step < 1 MiB, well under v7x's 64 MiB.
            dimension_semantics=("parallel",)),
    )(x2d, *params)
    return out[:B, :OUTPUT_SHAPE]


# ---------------- deterministic parameter init ----------------
def init_params(key):
    ks = jax.random.split(key, 16)
    Cin, L0 = INPUT_SHAPE
    C1, C2 = CONFIG["CNN"]["layers"]
    K1, K2 = CONFIG["CNN"]["kernels"]
    U1, U2 = CONFIG["CNN"]["denseUnit"]
    Lf = L0 // 2 ** sum(CONFIG["CNN"]["maxPool"])
    flat = Lf * C2
    n = lambda k, s: jax.random.normal(k, s, jnp.float32)
    return {
        "cW1": 0.2 * n(ks[0], (C1, Cin, K1)),
        "cb1": 0.1 * n(ks[1], (C1,)),
        "gamma": 1.0 + 0.1 * n(ks[2], (C1,)),
        "beta": 0.1 * n(ks[3], (C1,)),
        "mean": 0.1 * n(ks[4], (C1,)),
        "var": 1.0 + 0.1 * jnp.abs(n(ks[5], (C1,))),
        "cW2": 0.2 * n(ks[6], (C2, C1, K2)),
        "cb2": 0.1 * n(ks[7], (C2,)),
        "dW1": 0.2 * n(ks[8], (U1, flat)),
        "db1": 0.1 * n(ks[9], (U1,)),
        "dW2": 0.2 * n(ks[10], (U2, U1)),
        "db2": 0.1 * n(ks[11], (U2,)),
        "dW3": 0.2 * n(ks[12], (OUTPUT_SHAPE, U2)),
        "db3": 0.1 * n(ks[13], (OUTPUT_SHAPE,)),
    }


# ---------------- plain-JAX reference (independent f32 check) ----------------
def ref_forward(x_ncl, P):
    act = lambda v: jnp.where(v > 0, v, NEG_SLOPE * v)
    dn = ("NCH", "OIH", "NCH")
    hp = lax.Precision.HIGHEST
    h = lax.conv_general_dilated(x_ncl, P["cW1"], (1,), "SAME",
                                 dimension_numbers=dn, precision=hp)
    h = h + P["cb1"][None, :, None]
    scale = P["gamma"] / jnp.sqrt(P["var"] + BN_EPS)
    shift = P["beta"] - P["mean"] * scale
    h = act(h * scale[None, :, None] + shift[None, :, None])
    B, C, L = h.shape
    h = h.reshape(B, C, L // 2, 2).max(axis=-1)
    h = lax.conv_general_dilated(h, P["cW2"], (1,), "SAME",
                                 dimension_numbers=dn, precision=hp)
    h = act(h + P["cb2"][None, :, None])
    B, C, L = h.shape
    h = h.reshape(B, C, L // 2, 2).max(axis=-1)
    z = h.reshape(B, -1)                       # PyTorch Flatten order (c*L + l)
    z = act(jnp.dot(z, P["dW1"].T, precision=hp) + P["db1"])
    z = act(jnp.dot(z, P["dW2"].T, precision=hp) + P["db2"])
    z = jnp.dot(z, P["dW3"].T, precision=hp) + P["db3"]
    return jax.nn.sigmoid(z)


if __name__ == "__main__":
    key = jax.random.PRNGKey(0)
    kx, kp = jax.random.split(key)
    Cin, L0 = INPUT_SHAPE
    x = jax.random.normal(kx, (BATCH, Cin, L0), jnp.float32)   # NCL, like torch
    P = init_params(kp)

    out = jax.block_until_ready(doccnn_forward(x, P))
    ref = ref_forward(x, P)

    assert out.shape == (BATCH, OUTPUT_SHAPE)
    assert bool(jnp.all(jnp.isfinite(out)))
    # f32 MXU matmuls + approx-reciprocal sigmoid vs HIGHEST-precision reference.
    assert bool(jnp.allclose(out, ref, atol=2e-3, rtol=2e-3)), (out, ref)
    print("KERNEL_OK")
</pallas_src>

<mosaic_0001>
module attributes {stable_mosaic.version = 11 : i64} {
  func.func @kernel(%arg0: i32, %arg1: memref<512x4xf32, #tpu.memory_space<vmem>>, %arg2: memref<12x8xf32, #tpu.memory_space<vmem>>, %arg3: memref<1x8xf32, #tpu.memory_space<vmem>>, %arg4: memref<1x8xf32, #tpu.memory_space<vmem>>, %arg5: memref<1x8xf32, #tpu.memory_space<vmem>>, %arg6: memref<24x16xf32, #tpu.memory_space<vmem>>, %arg7: memref<1x16xf32, #tpu.memory_space<vmem>>, %arg8: memref<64x32xf32, #tpu.memory_space<vmem>>, %arg9: memref<1x32xf32, #tpu.memory_space<vmem>>, %arg10: memref<32x16xf32, #tpu.memory_space<vmem>>, %arg11: memref<1x16xf32, #tpu.memory_space<vmem>>, %arg12: memref<1x16xf32, #tpu.memory_space<vmem>>, %arg13: memref<1x1xf32, #tpu.memory_space<vmem>>, %arg14: memref<32x128xf32, #tpu.memory_space<vmem>>, %arg15: memref<512x8xf32, #tpu.memory_space<vmem>>, %arg16: memref<256x16xf32, #tpu.memory_space<vmem>>) attributes {dimension_semantics = [#tpu.dimension_semantics<parallel>], iteration_bounds = array<i64: 2>, scalar_prefetch = 0 : i64, scratch_operands = 2 : i64, tpu.core_type = #tpu.core_type<tc>, window_params = [{transform_indices = @transform_0, window_bounds = array<i64: 512, 4>}, {pipeline_mode = #tpu.pipeline_mode<synchronous>, transform_indices = @transform_1, window_bounds = array<i64: 12, 8>}, {pipeline_mode = #tpu.pipeline_mode<synchronous>, transform_indices = @transform_2, window_bounds = array<i64: 1, 8>}, {pipeline_mode = #tpu.pipeline_mode<synchronous>, transform_indices = @transform_3, window_bounds = array<i64: 1, 8>}, {pipeline_mode = #tpu.pipeline_mode<synchronous>, transform_indices = @transform_4, window_bounds = array<i64: 1, 8>}, {pipeline_mode = #tpu.pipeline_mode<synchronous>, transform_indices = @transform_5, window_bounds = array<i64: 24, 16>}, {pipeline_mode = #tpu.pipeline_mode<synchronous>, transform_indices = @transform_6, window_bounds = array<i64: 1, 16>}, {pipeline_mode = #tpu.pipeline_mode<synchronous>, transform_indices = @transform_7, window_bounds = array<i64: 64, 32>}, {pipeline_mode = #tpu.pipeline_mode<synchronous>, transform_indices = @transform_8, window_bounds = array<i64: 1, 32>}, {pipeline_mode = #tpu.pipeline_mode<synchronous>, transform_indices = @transform_9, window_bounds = array<i64: 32, 16>}, {pipeline_mode = #tpu.pipeline_mode<synchronous>, transform_indices = @transform_10, window_bounds = array<i64: 1, 16>}, {pipeline_mode = #tpu.pipeline_mode<synchronous>, transform_indices = @transform_11, window_bounds = array<i64: 1, 16>}, {pipeline_mode = #tpu.pipeline_mode<synchronous>, transform_indices = @transform_12, window_bounds = array<i64: 1, 1>}, {transform_indices = @transform_13, window_bounds = array<i64: 32, 128>}]} {
    %c0 = arith.constant 0 : index
    %c0_0 = arith.constant 0 : index
    %0 = vector.load %arg1[%c0, %c0_0] : memref<512x4xf32, #tpu.memory_space<vmem>>, vector<512x4xf32>
    %1 = tpu.iota {dimensions = array<i32: 0>} : vector<512x4xi32>
    %c16_i32 = arith.constant 16 : i32
    %c0_i32 = arith.constant 0 : i32
    %2 = arith.cmpi eq, %c16_i32, %c0_i32 : i32
    %c1_i32 = arith.constant 1 : i32
    %3 = arith.select %2, %c1_i32, %c16_i32 : i32
    %4 = vector.broadcast %3 : i32 to vector<512x4xi32>
    %5 = arith.remsi %1, %4 : vector<512x4xi32>
    %c0_i32_1 = arith.constant 0 : i32
    %6 = vector.broadcast %c0_i32_1 : i32 to vector<512x4xi32>
    %7 = arith.cmpi ne, %5, %6 : vector<512x4xi32>
    %c0_i32_2 = arith.constant 0 : i32
    %8 = vector.broadcast %c0_i32_2 : i32 to vector<512x4xi32>
    %9 = arith.cmpi slt, %5, %8 : vector<512x4xi32>
    %c0_i32_3 = arith.constant 0 : i32
    %10 = arith.cmpi slt, %3, %c0_i32_3 : i32
    %11 = vector.broadcast %10 : i1 to vector<512x4xi1>
    %12 = vector.broadcast %11 : vector<512x4xi1> to vector<512x4xi1>
    %13 = arith.xori %9, %12 : vector<512x4xi1>
    %14 = arith.andi %13, %7 : vector<512x4xi1>
    %15 = vector.broadcast %3 : i32 to vector<512x4xi32>
    %16 = arith.addi %5, %15 : vector<512x4xi32>
    %17 = arith.select %14, %16, %5 : vector<512x4xi1>, vector<512x4xi32>
    %c1_i32_4 = arith.constant 1 : i32
    %18 = tpu.dynamic_rotate %0 by %c1_i32_4 dim 0 : vector<512x4xf32>, i32 -> vector<512x4xf32>
    %c1_i32_5 = arith.constant 1 : i32
    %19 = vector.broadcast %c1_i32_5 : i32 to vector<512x4xi32>
    %20 = arith.cmpi slt, %17, %19 : vector<512x4xi32>
    %cst = arith.constant 0.000000e+00 : f32
    %21 = vector.broadcast %cst : f32 to vector<512x4xf32>
    %22 = arith.select %20, %21, %18 : vector<512x4xi1>, vector<512x4xf32>
    %c511_i32 = arith.constant 511 : i32
    %23 = tpu.dynamic_rotate %0 by %c511_i32 dim 0 : vector<512x4xf32>, i32 -> vector<512x4xf32>
    %c15_i32 = arith.constant 15 : i32
    %24 = vector.broadcast %c15_i32 : i32 to vector<512x4xi32>
    %25 = arith.cmpi sge, %17, %24 : vector<512x4xi32>
    %cst_6 = arith.constant 0.000000e+00 : f32
    %26 = vector.broadcast %cst_6 : f32 to vector<512x4xf32>
    %27 = arith.select %25, %26, %23 : vector<512x4xi1>, vector<512x4xf32>
    %28 = tpu.concatenate %22, %0, %27 in 1 : vector<512x4xf32>, vector<512x4xf32>, vector<512x4xf32> -> vector<512x12xf32>
    %c0_7 = arith.constant 0 : index
    %c0_8 = arith.constant 0 : index
    %29 = vector.load %arg2[%c0_7, %c0_8] : memref<12x8xf32, #tpu.memory_space<vmem>>, vector<12x8xf32>
    %cst_9 = arith.constant dense<0.000000e+00> : vector<512x8xf32>
    %30 = tpu.matmul %28, %29, %cst_9 {dimension_numbers = #tpu.dot_dimension_numbers<[1], [0], [0], [1], [0, 0, 1, 1], [], []>} : vector<512x12xf32>, vector<12x8xf32>, vector<512x8xf32> -> vector<512x8xf32>
    %c0_10 = arith.constant 0 : index
    %c0_11 = arith.constant 0 : index
    %31 = vector.load %arg3[%c0_10, %c0_11] : memref<1x8xf32, #tpu.memory_space<vmem>>, vector<1x8xf32>
    %32 = vector.broadcast %31 : vector<1x8xf32> to vector<512x8xf32>
    %33 = arith.addf %30, %32 : vector<512x8xf32>
    %c0_12 = arith.constant 0 : index
    %c0_13 = arith.constant 0 : index
    %34 = vector.load %arg4[%c0_12, %c0_13] : memref<1x8xf32, #tpu.memory_space<vmem>>, vector<1x8xf32>
    %35 = vector.broadcast %34 : vector<1x8xf32> to vector<512x8xf32>
    %36 = arith.mulf %33, %35 : vector<512x8xf32>
    %c0_14 = arith.constant 0 : index
    %c0_15 = arith.constant 0 : index
    %37 = vector.load %arg5[%c0_14, %c0_15] : memref<1x8xf32, #tpu.memory_space<vmem>>, vector<1x8xf32>
    %38 = vector.broadcast %37 : vector<1x8xf32> to vector<512x8xf32>
    %39 = arith.addf %36, %38 : vector<512x8xf32>
    %c0_16 = arith.constant 0 : index
    %c0_17 = arith.constant 0 : index
    %40 = vector.load %arg15[%c0_16, %c0_17] : memref<512x8xf32, #tpu.memory_space<vmem>>, vector<512x8xf32>
    tpu.vector_store %arg15[%c0_16, %c0_17], %39 {strides = array<i32>} : memref<512x8xf32, #tpu.memory_space<vmem>>, vector<512x8xf32>,
    %c0_18 = arith.constant 0 : index
    %c0_19 = arith.constant 0 : index
    %41 = tpu.strided_load %arg15[%c0_18, %c0_19] {strides = array<i32: 2, 1>} : memref<512x8xf32, #tpu.memory_space<vmem>>, vector<256x8xf32>
    %c1 = arith.constant 1 : index
    %c0_20 = arith.constant 0 : index
    %42 = tpu.strided_load %arg15[%c1, %c0_20] {strides = array<i32: 2, 1>} : memref<512x8xf32, #tpu.memory_space<vmem>>, vector<256x8xf32>
    %43 = arith.maximumf %41, %42 : vector<256x8xf32>
    %cst_21 = arith.constant 2.000000e-01 : f32
    %44 = vector.broadcast %cst_21 : f32 to vector<256x8xf32>
    %45 = arith.mulf %44, %43 : vector<256x8xf32>
    %46 = arith.maximumf %43, %45 : vector<256x8xf32>
    %47 = tpu.iota {dimensions = array<i32: 0>} : vector<256x8xi32>
    %c8_i32 = arith.constant 8 : i32
    %c0_i32_22 = arith.constant 0 : i32
    %48 = arith.cmpi eq, %c8_i32, %c0_i32_22 : i32
    %c1_i32_23 = arith.constant 1 : i32
    %49 = arith.select %48, %c1_i32_23, %c8_i32 : i32
    %50 = vector.broadcast %49 : i32 to vector<256x8xi32>
    %51 = arith.remsi %47, %50 : vector<256x8xi32>
    %c0_i32_24 = arith.constant 0 : i32
    %52 = vector.broadcast %c0_i32_24 : i32 to vector<256x8xi32>
    %53 = arith.cmpi ne, %51, %52 : vector<256x8xi32>
    %c0_i32_25 = arith.constant 0 : i32
    %54 = vector.broadcast %c0_i32_25 : i32 to vector<256x8xi32>
    %55 = arith.cmpi slt, %51, %54 : vector<256x8xi32>
    %c0_i32_26 = arith.constant 0 : i32
    %56 = arith.cmpi slt, %49, %c0_i32_26 : i32
    %57 = vector.broadcast %56 : i1 to vector<256x8xi1>
    %58 = vector.broadcast %57 : vector<256x8xi1> to vector<256x8xi1>
    %59 = arith.xori %55, %58 : vector<256x8xi1>
    %60 = arith.andi %59, %53 : vector<256x8xi1>
    %61 = vector.broadcast %49 : i32 to vector<256x8xi32>
    %62 = arith.addi %51, %61 : vector<256x8xi32>
    %63 = arith.select %60, %62, %51 : vector<256x8xi1>, vector<256x8xi32>
    %c1_i32_27 = arith.constant 1 : i32
    %64 = tpu.dynamic_rotate %46 by %c1_i32_27 dim 0 : vector<256x8xf32>, i32 -> vector<256x8xf32>
    %c1_i32_28 = arith.constant 1 : i32
    %65 = vector.broadcast %c1_i32_28 : i32 to vector<256x8xi32>
    %66 = arith.cmpi slt, %63, %65 : vector<256x8xi32>
    %cst_29 = arith.constant 0.000000e+00 : f32
    %67 = vector.broadcast %cst_29 : f32 to vector<256x8xf32>
    %68 = arith.select %66, %67, %64 : vector<256x8xi1>, vector<256x8xf32>
    %c255_i32 = arith.constant 255 : i32
    %69 = tpu.dynamic_rotate %46 by %c255_i32 dim 0 : vector<256x8xf32>, i32 -> vector<256x8xf32>
    %c7_i32 = arith.constant 7 : i32
    %70 = vector.broadcast %c7_i32 : i32 to vector<256x8xi32>
    %71 = arith.cmpi sge, %63, %70 : vector<256x8xi32>
    %cst_30 = arith.constant 0.000000e+00 : f32
    %72 = vector.broadcast %cst_30 : f32 to vector<256x8xf32>
    %73 = arith.select %71, %72, %69 : vector<256x8xi1>, vector<256x8xf32>
    %74 = tpu.concatenate %68, %46, %73 in 1 : vector<256x8xf32>, vector<256x8xf32>, vector<256x8xf32> -> vector<256x24xf32>
    %c0_31 = arith.constant 0 : index
    %c0_32 = arith.constant 0 : index
    %75 = vector.load %arg6[%c0_31, %c0_32] : memref<24x16xf32, #tpu.memory_space<vmem>>, vector<24x16xf32>
    %cst_33 = arith.constant dense<0.000000e+00> : vector<256x16xf32>
    %76 = tpu.matmul %74, %75, %cst_33 {dimension_numbers = #tpu.dot_dimension_numbers<[1], [0], [0], [1], [0, 0, 1, 1], [], []>} : vector<256x24xf32>, vector<24x16xf32>, vector<256x16xf32> -> vector<256x16xf32>
    %c0_34 = arith.constant 0 : index
    %c0_35 = arith.constant 0 : index
    %77 = vector.load %arg7[%c0_34, %c0_35] : memref<1x16xf32, #tpu.memory_space<vmem>>, vector<1x16xf32>
    %78 = vector.broadcast %77 : vector<1x16xf32> to vector<256x16xf32>
    %79 = arith.addf %76, %78 : vector<256x16xf32>
    %c0_36 = arith.constant 0 : index
    %c0_37 = arith.constant 0 : index
    %80 = vector.load %arg16[%c0_36, %c0_37] : memref<256x16xf32, #tpu.memory_space<vmem>>, vector<256x16xf32>
    tpu.vector_store %arg16[%c0_36, %c0_37], %79 {strides = array<i32>} : memref<256x16xf32, #tpu.memory_space<vmem>>, vector<256x16xf32>,
    %c0_38 = arith.constant 0 : index
    %c0_39 = arith.constant 0 : index
    %81 = tpu.strided_load %arg16[%c0_38, %c0_39] {strides = array<i32: 8, 1>} : memref<256x16xf32, #tpu.memory_space<vmem>>, vector<32x16xf32>
    %c1_40 = arith.constant 1 : index
    %c0_41 = arith.constant 0 : index
    %82 = tpu.strided_load %arg16[%c1_40, %c0_41] {strides = array<i32: 8, 1>} : memref<256x16xf32, #tpu.memory_space<vmem>>, vector<32x16xf32>
    %83 = arith.maximumf %81, %82 : vector<32x16xf32>
    %c2 = arith.constant 2 : index
    %c0_42 = arith.constant 0 : index
    %84 = tpu.strided_load %arg16[%c2, %c0_42] {strides = array<i32: 8, 1>} : memref<256x16xf32, #tpu.memory_space<vmem>>, vector<32x16xf32>
    %c3 = arith.constant 3 : index
    %c0_43 = arith.constant 0 : index
    %85 = tpu.strided_load %arg16[%c3, %c0_43] {strides = array<i32: 8, 1>} : memref<256x16xf32, #tpu.memory_space<vmem>>, vector<32x16xf32>
    %86 = arith.maximumf %84, %85 : vector<32x16xf32>
    %c4 = arith.constant 4 : index
    %c0_44 = arith.constant 0 : index
    %87 = tpu.strided_load %arg16[%c4, %c0_44] {strides = array<i32: 8, 1>} : memref<256x16xf32, #tpu.memory_space<vmem>>, vector<32x16xf32>
    %c5 = arith.constant 5 : index
    %c0_45 = arith.constant 0 : index
    %88 = tpu.strided_load %arg16[%c5, %c0_45] {strides = array<i32: 8, 1>} : memref<256x16xf32, #tpu.memory_space<vmem>>, vector<32x16xf32>
    %89 = arith.maximumf %87, %88 : vector<32x16xf32>
    %c6 = arith.constant 6 : index
    %c0_46 = arith.constant 0 : index
    %90 = tpu.strided_load %arg16[%c6, %c0_46] {strides = array<i32: 8, 1>} : memref<256x16xf32, #tpu.memory_space<vmem>>, vector<32x16xf32>
    %c7 = arith.constant 7 : index
    %c0_47 = arith.constant 0 : index
    %91 = tpu.strided_load %arg16[%c7, %c0_47] {strides = array<i32: 8, 1>} : memref<256x16xf32, #tpu.memory_space<vmem>>, vector<32x16xf32>
    %92 = arith.maximumf %90, %91 : vector<32x16xf32>
    %93 = tpu.concatenate %83, %86, %89, %92 in 1 : vector<32x16xf32>, vector<32x16xf32>, vector<32x16xf32>, vector<32x16xf32> -> vector<32x64xf32>
    %cst_48 = arith.constant 2.000000e-01 : f32
    %94 = vector.broadcast %cst_48 : f32 to vector<32x64xf32>
    %95 = arith.mulf %94, %93 : vector<32x64xf32>
    %96 = arith.maximumf %93, %95 : vector<32x64xf32>
    %c0_49 = arith.constant 0 : index
    %c0_50 = arith.constant 0 : index
    %97 = vector.load %arg8[%c0_49, %c0_50] : memref<64x32xf32, #tpu.memory_space<vmem>>, vector<64x32xf32>
    %cst_51 = arith.constant dense<0.000000e+00> : vector<32x32xf32>
    %98 = tpu.matmul %96, %97, %cst_51 {dimension_numbers = #tpu.dot_dimension_numbers<[1], [0], [0], [1], [0, 0, 1, 1], [], []>} : vector<32x64xf32>, vector<64x32xf32>, vector<32x32xf32> -> vector<32x32xf32>
    %c0_52 = arith.constant 0 : index
    %c0_53 = arith.constant 0 : index
    %99 = vector.load %arg9[%c0_52, %c0_53] : memref<1x32xf32, #tpu.memory_space<vmem>>, vector<1x32xf32>
    %100 = vector.broadcast %99 : vector<1x32xf32> to vector<32x32xf32>
    %101 = arith.addf %98, %100 : vector<32x32xf32>
    %cst_54 = arith.constant 2.000000e-01 : f32
    %102 = vector.broadcast %cst_54 : f32 to vector<32x32xf32>
    %103 = arith.mulf %102, %101 : vector<32x32xf32>
    %104 = arith.maximumf %101, %103 : vector<32x32xf32>
    %c0_55 = arith.constant 0 : index
    %c0_56 = arith.constant 0 : index
    %105 = vector.load %arg10[%c0_55, %c0_56] : memref<32x16xf32, #tpu.memory_space<vmem>>, vector<32x16xf32>
    %cst_57 = arith.constant dense<0.000000e+00> : vector<32x16xf32>
    %106 = tpu.matmul %104, %105, %cst_57 {dimension_numbers = #tpu.dot_dimension_numbers<[1], [0], [0], [1], [0, 0, 1, 1], [], []>} : vector<32x32xf32>, vector<32x16xf32>, vector<32x16xf32> -> vector<32x16xf32>
    %c0_58 = arith.constant 0 : index
    %c0_59 = arith.constant 0 : index
    %107 = vector.load %arg11[%c0_58, %c0_59] : memref<1x16xf32, #tpu.memory_space<vmem>>, vector<1x16xf32>
    %108 = vector.broadcast %107 : vector<1x16xf32> to vector<32x16xf32>
    %109 = arith.addf %106, %108 : vector<32x16xf32>
    %cst_60 = arith.constant 2.000000e-01 : f32
    %110 = vector.broadcast %cst_60 : f32 to vector<32x16xf32>
    %111 = arith.mulf %110, %109 : vector<32x16xf32>
    %112 = arith.maximumf %109, %111 : vector<32x16xf32>
    %c0_61 = arith.constant 0 : index
    %c0_62 = arith.constant 0 : index
    %113 = vector.load %arg12[%c0_61, %c0_62] : memref<1x16xf32, #tpu.memory_space<vmem>>, vector<1x16xf32>
    %114 = vector.broadcast %113 : vector<1x16xf32> to vector<32x16xf32>
    %115 = arith.mulf %112, %114 : vector<32x16xf32>
    %cst_63 = arith.constant dense<0.000000e+00> : vector<32xf32>
    %116 = vector.multi_reduction <add>, %115, %cst_63 [1] : vector<32x16xf32> to vector<32xf32>
    %117 = vector.shape_cast %116 : vector<32xf32> to vector<32x1xf32>
    %c0_64 = arith.constant 0 : index
    %c0_65 = arith.constant 0 : index
    %118 = vector.load %arg13[%c0_64, %c0_65] : memref<1x1xf32, #tpu.memory_space<vmem>>, vector<1x1xf32>
    %119 = vector.broadcast %118 : vector<1x1xf32> to vector<32x1xf32>
    %120 = arith.addf %117, %119 : vector<32x1xf32>
    %cst_66 = arith.constant 0.000000e+00 : f32
    %121 = vector.broadcast %cst_66 : f32 to vector<32x1xf32>
    %122 = arith.subf %121, %120 : vector<32x1xf32>
    %123 = math.exp %122 : vector<32x1xf32>
    %cst_67 = arith.constant 1.000000e+00 : f32
    %124 = vector.broadcast %cst_67 : f32 to vector<32x1xf32>
    %125 = arith.addf %124, %123 : vector<32x1xf32>
    %126 = tpu.reciprocal %125 {approx = true} : vector<32x1xf32> -> vector<32x1xf32>
    %127 = vector.shape_cast %126 : vector<32x1xf32> to vector<32x1xf32>
    %128 = vector.broadcast %127 : vector<32x1xf32> to vector<32x128xf32>
    %c0_68 = arith.constant 0 : index
    %c0_69 = arith.constant 0 : index
    %129 = vector.load %arg14[%c0_68, %c0_69] : memref<32x128xf32, #tpu.memory_space<vmem>>, vector<32x128xf32>
    tpu.vector_store %arg14[%c0_68, %c0_69], %128 {strides = array<i32>} : memref<32x128xf32, #tpu.memory_space<vmem>>, vector<32x128xf32>,
    return
  }
  func.func @transform_0(%arg0: i32) -> (i32, i32) {
    %c0_i32 = arith.constant 0 : i32
    %c0_i32_0 = arith.constant 0 : i32
    return %arg0, %c0_i32 : i32, i32
  }
  func.func @transform_1(%arg0: i32) -> (i32, i32) {
    %c0_i32 = arith.constant 0 : i32
    %c0_i32_0 = arith.constant 0 : i32
    %c0_i32_1 = arith.constant 0 : i32
    return %c0_i32, %c0_i32_0 : i32, i32
  }
  func.func @transform_2(%arg0: i32) -> (i32, i32) {
    %c0_i32 = arith.constant 0 : i32
    %c0_i32_0 = arith.constant 0 : i32
    %c0_i32_1 = arith.constant 0 : i32
    return %c0_i32, %c0_i32_0 : i32, i32
  }
  func.func @transform_3(%arg0: i32) -> (i32, i32) {
    %c0_i32 = arith.constant 0 : i32
    %c0_i32_0 = arith.constant 0 : i32
    %c0_i32_1 = arith.constant 0 : i32
    return %c0_i32, %c0_i32_0 : i32, i32
  }
  func.func @transform_4(%arg0: i32) -> (i32, i32) {
    %c0_i32 = arith.constant 0 : i32
    %c0_i32_0 = arith.constant 0 : i32
    %c0_i32_1 = arith.constant 0 : i32
    return %c0_i32, %c0_i32_0 : i32, i32
  }
  func.func @transform_5(%arg0: i32) -> (i32, i32) {
    %c0_i32 = arith.constant 0 : i32
    %c0_i32_0 = arith.constant 0 : i32
    %c0_i32_1 = arith.constant 0 : i32
    return %c0_i32, %c0_i32_0 : i32, i32
  }
  func.func @transform_6(%arg0: i32) -> (i32, i32) {
    %c0_i32 = arith.constant 0 : i32
    %c0_i32_0 = arith.constant 0 : i32
    %c0_i32_1 = arith.constant 0 : i32
    return %c0_i32, %c0_i32_0 : i32, i32
  }
  func.func @transform_7(%arg0: i32) -> (i32, i32) {
    %c0_i32 = arith.constant 0 : i32
    %c0_i32_0 = arith.constant 0 : i32
    %c0_i32_1 = arith.constant 0 : i32
    return %c0_i32, %c0_i32_0 : i32, i32
  }
  func.func @transform_8(%arg0: i32) -> (i32, i32) {
    %c0_i32 = arith.constant 0 : i32
    %c0_i32_0 = arith.constant 0 : i32
    %c0_i32_1 = arith.constant 0 : i32
    return %c0_i32, %c0_i32_0 : i32, i32
  }
  func.func @transform_9(%arg0: i32) -> (i32, i32) {
    %c0_i32 = arith.constant 0 : i32
    %c0_i32_0 = arith.constant 0 : i32
    %c0_i32_1 = arith.constant 0 : i32
    return %c0_i32, %c0_i32_0 : i32, i32
  }
  func.func @transform_10(%arg0: i32) -> (i32, i32) {
    %c0_i32 = arith.constant 0 : i32
    %c0_i32_0 = arith.constant 0 : i32
    %c0_i32_1 = arith.constant 0 : i32
    return %c0_i32, %c0_i32_0 : i32, i32
  }
  func.func @transform_11(%arg0: i32) -> (i32, i32) {
    %c0_i32 = arith.constant 0 : i32
    %c0_i32_0 = arith.constant 0 : i32
    %c0_i32_1 = arith.constant 0 : i32
    return %c0_i32, %c0_i32_0 : i32, i32
  }
  func.func @transform_12(%arg0: i32) -> (i32, i32) {
    %c0_i32 = arith.constant 0 : i32
    %c0_i32_0 = arith.constant 0 : i32
    %c0_i32_1 = arith.constant 0 : i32
    return %c0_i32, %c0_i32_0 : i32, i32
  }
  func.func @transform_13(%arg0: i32) -> (i32, i32) {
    %c0_i32 = arith.constant 0 : i32
    %c0_i32_0 = arith.constant 0 : i32
    return %arg0, %c0_i32 : i32, i32
  }
}

</mosaic_0001>

<bundles_post_ra>
// kernel: tpu_custom_call.1
= control target key start
LH: loop header
LB: loop body
LE: loop exit
PB: predicated region body
PF: predicated region fallthrough
CT: control target
= control target key end

     0   :  { %s8956_s0 = inlined_call_operand.vmem [shape: f32[1024,4], index: 0, kind: input, shape index: {}]   ;;  %s8957_s1 = inlined_call_operand.vmem [shape: f32[12,8], index: 1, kind: input, shape index: {}]   ;;  %s8958_s2 = inlined_call_operand.vmem [shape: f32[1,8], index: 2, kind: input, shape index: {}]   ;;  %s8959_s3 = inlined_call_operand.vmem [shape: f32[1,8], index: 3, kind: input, shape index: {}]   ;;  %s8960_s4 = inlined_call_operand.vmem [shape: f32[1,8], index: 4, kind: input, shape index: {}]   ;;  %s8961_s5 = inlined_call_operand.vmem [shape: f32[24,16], index: 5, kind: input, shape index: {}]   ;;  %s8962_s6 = inlined_call_operand.vmem [shape: f32[1,16], index: 6, kind: input, shape index: {}]   ;;  %s8963_s7 = inlined_call_operand.vmem [shape: f32[64,32], index: 7, kind: input, shape index: {}]   ;;  %s8964_s8 = inlined_call_operand.vmem [shape: f32[1,32], index: 8, kind: input, shape index: {}]   ;;  %s8965_s9 = inlined_call_operand.vmem [shape: f32[32,16], index: 9, kind: input, shape index: {}]   ;;  %s8966_s10 = inlined_call_operand.vmem [shape: f32[1,16], index: 10, kind: input, shape index: {}]   ;;  %s8967_s11 = inlined_call_operand.vmem [shape: f32[1,16], index: 11, kind: input, shape index: {}]   ;;  %s8968_s12 = inlined_call_operand.<no memory space> [shape: f32[1,1], index: 12, kind: input, shape index: {}]   ;;  %s8969_s13 = inlined_call_operand.hbm [shape: f32[64,128], index: 13, kind: output, shape index: {}]  }
   0x1   :  { %9082 = sst [smem:[#allocation34_spill]] %s8956_s0  ;;  %v18_v0 = vstv %s8968_s12 }
   0x2   :  { %9083 = sst [smem:[#allocation35_spill]] %s8957_s1  ;;  %19 = vst [vmem:[#allocation4] sm:$0x1] %v18_v0 }
   0x3   :  { %20 = vsyncpa [#allocation6], 0 }
   0x4   :  { %22 = vsyncpa [#allocation6 + $0x1], 0  ;;  %s6098_s27 = smov 0   ;;  %s6100_s28 = smov 0  }
   0x5   :  { %s6102_s29 = smov 0   ;;  %s6104_s30 = smov 0  }
   0x6 LB: > { %s6119_s12 = sadd.s32 4294967295, %s6015_s30   ;;  %s5446_s14 = sadd.s32 4294967294, %s6015_s30   ;;  %s6015_s30 = sphi %s6104_s30, %s9347_s30   ;;  %s6011_s29 = sphi %s6102_s29, %s9346_s29   ;;  %s6007_s28 = sphi %s6100_s28, %s9345_s28   ;;  %s6003_s27 = sphi %s6098_s27, %s9344_s27  }
   0x7   : > { %s6123_s15 = sadd.s32 1, %s6015_s30   ;;  %s313_s16 = sadd.s32 1, %s6011_s29 }
   0x8   : > { %s310_s17 = ssub.s32 %s6015_s30, %s6123_s15  ;;  %p323_p0 = scmp.ne.s32.totalorder %s6011_s29, %s6007_s28 }
   0x9   : > { %p311_p1 = scmp.eq.s32.totalorder %s310_s17, 0  ;;  %p324_p2 = scmp.eq.s32.totalorder %s6119_s12, 1 }
   0xa   : > { %p329_p3 = scmp.ne.s32.totalorder %s6007_s28, %s6003_s27  ;;  %p330_p4 = scmp.eq.s32.totalorder %s5446_s14, 1 }
   0xb   : > { %s6134_s18 = scalar_select %p311_p1, %s6011_s29, %s313_s16  }
   0xc   : > { %p6136_p5 = por %p324_p2, %p323_p0  ;;  %p6140_p6 = por %p330_p4, %p329_p3 }
   0xd   : > { %p5449_p7 = scmp.ge.s32.totalorder %s6015_s30, 1  ;;  %p393_p8 = scmp.lt.s32.totalorder %s6015_s30, 3 }
   0xf   : > { %p394_p9 = pnand %p5449_p7, %p393_p8 }
  0x11   : > { %397 = sbr.rel (%p394_p9) target bundleno = 1880 (0x758), region = 72 }
  0x16   : > { %s5451_s21 = sshll.u32 %s6119_s12, 6  ;;  %v508_v1 = vlaneseq  ;;  %s9086_s1 = sld [smem:[#allocation35_spill]]  ;;  %vm2699_vm0 = vcmask 1043456  }
  0x17   : > { %p438_p10 = scmp.lt.s32.totalorder %s5451_s21, 127  ;;  %s9087_s0 = sld [smem:[#allocation34_spill]] }
  0x18   : > { %v6153_v4 = vshrl.u32 %v508_v1, 7  ;;  %s9077_s22 = smov 8   ;;  %s6019_s25 = smov 16  }
  0x19   : > { %s9349_s21 = smov (!%p438_p10, %s5451_s21), 127  ;;  %s9078_s14 = smov 48  }
  0x1a   : > { %v6156_v5 = vadd.s32 8, %v6153_v4  ;;  %s5452_s26 = sshll.u32 %s9349_s21, 3  ;;  %v6165_v7 = vadd.s32 24, %v6153_v4  ;;  %s6017_s21 = smov 4   ;;  %vm1662_vm1 = vcmp.lt.s32.totalorder %v6153_v4, 7  ;;  %v6205_v23 = vadd.s32 40, %v6153_v4 }
  0x1b   : > { %v6226_v32 = vadd.s32 56, %v6153_v4  ;;  %v6252_v42 = vadd.s32 72, %v6153_v4  ;;  %vm1405_vm6 = vcmp.lt.s32.totalorder %v6153_v4, 1  ;;  %v6285_v56 = vadd.s32 88, %v6153_v4 }
  0x1c   : > { %v2498_v2 = vld [vmem:[%s9086_s1 + $0x8] sm:$0xf]  ;;  %v2497_v3 = vld [vmem:[%s9086_s1] sm:$0xff]  ;;  %v584_v6 = vand.u32 15, %v6156_v5  ;;  %v598_v17 = vand.u32 15, %v6165_v7  ;;  %9088 = vst [vmem:[#allocation8_spill] sm:$0xff] %v6205_v23 }
  0x1d   : > { %5693 = vmatprep.subr.msk.mxu0 %vm2699_vm0, %v2498_v2  ;;  %5883 = vmatprep.subr.msk.mxu1 %vm2699_vm0, %v2498_v2  ;;  %s6161_s17 = scalar_lea.vmem %s9087_s0, %s5452_s26  ;;  %v612_v29 = vand.u32 15, %v6205_v23  ;;  %9089 = vst [vmem:[#allocation9_spill] sm:$0xff] %v6226_v32  ;;  %v626_v38 = vand.u32 15, %v6226_v32  ;;  %9092 = vst [vmem:[#allocation10_spill] sm:$0xff] %v6252_v42  ;;  %v640_v51 = vand.u32 15, %v6252_v42  ;;  %v654_v0 = vand.u32 15, %v6285_v56 }
  0x1e   : > { %5694 = vmatpush3.msk.msra.mxu0 %vm2699_vm0, %v2498_v2  ;;  %5885 = vmatpush3.msk.msra.mxu1 %vm2699_vm0, %v2498_v2  ;;  %v6168_v8 = vld [vmem:[%s6161_s17 + $0x18] sm:$0xff]  ;;  %v6171_v9 = vld [vmem:[%s6161_s17] sm:$0xff]  ;;  %v6174_v10 = vld [vmem:[%s6161_s17 + $0x8] sm:$0xff]  ;;  %vm1728_vm2 = vcmp.ge.s32.totalorder %v584_v6, 15  ;;  %vm1730_vm3 = vcmp.ge.s32.totalorder %v598_v17, 15  ;;  %9093 = vst [vmem:[#allocation11_spill] sm:$0xff] %v6285_v56 }
  0x1f   : > { %5695 = vmatprep.subr.mxu0 %v2497_v3  ;;  %5884 = vmatprep.subr.mxu1 %v2497_v3  ;;  %v8970_v11 = vrot.slane %v6171_v9, 1  ;;  %v6183_v12 = vld [vmem:[%s6161_s17 + $0x10] sm:$0xff]  ;;  %v6186_v13 = vld [vmem:[%s6161_s17 + $0x20] sm:$0xff]  ;;  %v1599_v14 = vrot.slane %v6174_v10, 1  ;;  %v1601_v16 = vrot.slane %v6168_v8, 1  ;;  %v6208_v24 = vld [vmem:[%s6161_s17 + $0x28] sm:$0xff] }
  0x20   : > { %5696 = vmatpush3.msra.mxu0 %v2497_v3  ;;  %5886 = vmatpush3.msra.mxu1 %v2497_v3  ;;  %v1600_v15 = vrot.slane %v6183_v12, 1  ;;  %v1602_v18 = vrot.slane %v6186_v13, 1  ;;  %v6211_v25 = vld [vmem:[%s6161_s17 + $0x30] sm:$0xff]  ;;  %v1603_v28 = vrot.slane %v6208_v24, 1  ;;  %vm1732_vm4 = vcmp.ge.s32.totalorder %v612_v29, 15  ;;  %v6229_v33 = vld [vmem:[%s6161_s17 + $0x38] sm:$0xff] }
  0x21   : > { %1925 = vrot.lane.b32.xlu1 %v6168_v8, %s6017_s21  ;;  %1919 = vrot.lane.b32.xlu0 %v6171_v9, %s6017_s21  ;;  %v1725_v19 = vsel %vm1662_vm1, %v8970_v11, %v1599_v14  ;;  %v1604_v30 = vrot.slane %v6211_v25, 1  ;;  %v6232_v34 = vld [vmem:[%s6161_s17 + $0x40] sm:$0xff]  ;;  %v1605_v37 = vrot.slane %v6229_v33, 1  ;;  %vm6247_vm5 = vcmp.ge.s32.totalorder %v626_v38, 15  ;;  %v6255_v43 = vld [vmem:[%s6161_s17 + $0x48] sm:$0xff]  ;;  %s9080_s26 = smov 32  }
  0x22   : > { %v1724_v20 = vsel %vm1662_vm1, %v1599_v14, %v1600_v15  ;;  %v1722_v22 = vsel %vm1662_vm1, %v1601_v16, %v1602_v18  ;;  %v1723_v26 = vsel %vm1662_vm1, %v1600_v15, %v1601_v16  ;;  %v1721_v35 = vsel %vm1662_vm1, %v1602_v18, %v1603_v28  ;;  %v6258_v44 = vld [vmem:[%s6161_s17 + $0x50] sm:$0xff]  ;;  %v6294_v58 = vld [vmem:[%s6161_s17 + $0x58] sm:$0xff]  ;;  %v6297_v59 = vld [vmem:[%s6161_s17 + $0x60] sm:$0xff] }
  0x23   : > { %v1792_v21 = vsel %vm1728_vm2, 0.0, %v1724_v20  ;;  %v1794_v27 = vsel %vm1730_vm3, 0.0, %v1722_v22  ;;  %v1720_v31 = vsel %vm1662_vm1, %v1603_v28, %v1604_v30  ;;  %v1606_v39 = vrot.slane %v6232_v34, 1  ;;  %v457_v14 = vld [vmem:[%s6161_s17 + $0x68] sm:$0xff]  ;;  %v458_v16 = vld [vmem:[%s6161_s17 + $0x70] sm:$0xff]  ;;  %v6606_v11 = vld [vmem:[%s6161_s17 + $0x100] sm:$0xff] }
  0x24   : > { %v1796_v36 = vsel %vm1732_vm4, 0.0, %v1720_v31  ;;  %v1344_v45 = vrot.slane %v6168_v8, 7  ;;  %v1343_v46 = vrot.slane %v6183_v12, 7  ;;  %v1719_v47 = vsel %vm1662_vm1, %v1604_v30, %v1605_v37 }
  0x25   : > { %1921 = vrot.lane.b32.xlu0 %v6174_v10, %s6017_s21  ;;  %2175 = vrot.lane.b32.xlu1 %v1725_v19, %s9077_s22  ;;  %v1718_v40 = vsel %vm1662_vm1, %v1605_v37, %v1606_v39  ;;  %v1342_v49 = vrot.slane %v6174_v10, 7  ;;  %v1607_v50 = vrot.slane %v6255_v43, 1  ;;  %v1608_v52 = vrot.slane %v6258_v44, 1 }
  0x26   : > { %v1798_v48 = vsel %vm6247_vm5, 0.0, %v1718_v40  ;;  %v1341_v53 = vrot.slane %v6171_v9, 7  ;;  %v6280_v54 = vsel %vm1405_vm6, %v1343_v46, %v1344_v45  ;;  %vm1736_vm7 = vcmp.ge.s32.totalorder %v640_v51, 15  ;;  %v461_v51 = vld [vmem:[%s6161_s17 + $0x88] sm:$0xff] }
  0x27   : > { %v1716_v55 = vsel %vm1662_vm1, %v1607_v50, %v1608_v52  ;;  %v1717_v60 = vsel %vm1662_vm1, %v1606_v39, %v1607_v50  ;;  %v6307_v62 = vsel %vm1405_vm6, %v1342_v49, %v1343_v46  ;;  %v1609_v63 = vrot.slane %v6294_v58, 1 }
  0x28   : > { %v6291_v57 = vsel %vm1405_vm6, %v1341_v53, %v1342_v49  ;;  %v1800_v61 = vsel %vm1736_vm7, 0.0, %v1716_v55  ;;  %v1610_v1 = vrot.slane %v6297_v59, 1  ;;  %v1346_v2 = vrot.slane %v6208_v24, 7 }
  0x29   : > { %1923 = vrot.lane.b32.xlu0 %v6183_v12, %s6017_s21  ;;  %2177 = vrot.lane.b32.xlu1 %v1792_v21, %s9077_s22  ;;  %v1345_v3 = vrot.slane %v6186_v13, 7  ;;  %v6317_v6 = vadd.s32 104, %v6153_v4  ;;  %v1348_v8 = vrot.slane %v6229_v33, 7  ;;  %vm6322_vm8 = vcmp.ge.s32.totalorder %v654_v0, 15  ;;  %v463_v12 = vld [vmem:[%s6161_s17 + $0x98] sm:$0xff] }
  0x2a   : > { %v1714_v10 = vsel %vm1662_vm1, %v1609_v63, %v1610_v1  ;;  %v1347_v17 = vrot.slane %v6211_v25, 7  ;;  %v1350_v18 = vrot.slane %v6255_v43, 7  ;;  %v1715_v19 = vsel %vm1662_vm1, %v1608_v52, %v1609_v63 }
  0x2b   : > { %9094 = vst [vmem:[#allocation12_spill] sm:$0xff] %v6317_v6  ;;  %v6329_v15 = vsel %vm1405_vm6, %v1344_v45, %v1345_v3  ;;  %v1802_v20 = vsel %vm6322_vm8, 0.0, %v1714_v10  ;;  %v1611_v21 = vrot.slane %v457_v14, 1  ;;  %v668_v22 = vand.u32 15, %v6317_v6 }
  0x2c   : > { %v1352_v28 = vrot.slane %v6294_v58, 7  ;;  %v6360_v29 = vadd.s32 120, %v6153_v4  ;;  %v1351_v37 = vrot.slane %v6258_v44, 7  ;;  %v1354_v38 = vrot.slane %v457_v14, 7 }
  0x2d   : > { %2179 = vrot.lane.b32.xlu0 %v1723_v26, %s9077_s22  ;;  %2181 = vrot.lane.b32.xlu1 %v1794_v27, %s9077_s22  ;;  %v6349_v26 = vsel %vm1405_vm6, %v1346_v2, %v1347_v17  ;;  %v1349_v27 = vrot.slane %v6232_v34, 7  ;;  %vm6364_vm9 = vcmp.ge.s32.totalorder %v668_v22, 15  ;;  %v1713_v39 = vsel %vm1662_vm1, %v1610_v1, %v1611_v21  ;;  %v464_v22 = vld [vmem:[%s6161_s17 + $0xa0] sm:$0xff] }
  0x2e   : > { %9097 = vst [vmem:[#allocation13_spill] sm:$0xff] %v6360_v29  ;;  %v682_v41 = vand.u32 15, %v6360_v29  ;;  %v6389_v46 = vsel %vm1405_vm6, %v1350_v18, %v1351_v37  ;;  %v6406_v52 = vadd.s32 136, %v6153_v4  ;;  %v1358_v0 = vrot.slane %v461_v51, 7 }
  0x2f   : > { %v1615_v1 = vrot.slane %v461_v51, 1  ;;  %vm2367_vm4 = vcmask 31744   ;;  %vm2432_vm5 = vcmask 64512   ;;  %vm2506_vm7 = vcmask 97280  }
  0x30   : > { %vm6398_vm10 = vcmp.ge.s32.totalorder %v682_v41, 15  ;;  %9102 = vst [vmem:[#allocation14_spill] sm:$0xff] %v6406_v52 }
  0x31   : > { %1927 = vrot.lane.b32.xlu0 %v6186_v13, %s6017_s21  ;;  %1929 = vrot.lane.b32.xlu1 %v6208_v24, %s6017_s21  ;;  %v6334_v13 = vsel %vm1405_vm6, %v1345_v3, %v1346_v2  ;;  %v1612_v24 = vrot.slane %v458_v16, 1  ;;  %v696_v2 = vand.u32 15, %v6406_v52  ;;  %v1630_v52 = vrot.slane %v6606_v11, 1 }
  0x33   : > { %v1712_v30 = vsel %vm1662_vm1, %v1611_v21, %v1612_v24  ;;  %vm6440_vm11 = vcmp.ge.s32.totalorder %v696_v2, 15 }
  0x34   : > { %v1804_v40 = vsel %vm6364_vm9, 0.0, %v1712_v30  ;;  %v1617_v30 = vrot.slane %v463_v12, 1 }
  0x35   : > { %2183 = vrot.lane.b32.xlu0 %v1721_v35, %s9077_s22  ;;  %2185 = vrot.lane.b32.xlu1 %v1796_v36, %s9077_s22  ;;  %v6374_v35 = vsel %vm1405_vm6, %v1349_v27, %v1350_v18  ;;  %v460_v36 = vld [vmem:[%s6161_s17 + $0x80] sm:$0xff] }
  0x36   : > { %v1614_v45 = vrot.slane %v460_v36, 1 }
  0x39   : > { %1931 = vrot.lane.b32.xlu0 %v6211_v25, %s6017_s21  ;;  %1933 = vrot.lane.b32.xlu1 %v6229_v33, %s6017_s21  ;;  %v6353_v25 = vsel %vm1405_vm6, %v1347_v17, %v1348_v8  ;;  %v6370_v33 = vsel %vm1405_vm6, %v1348_v8, %v1349_v27  ;;  %v6436_v17 = vadd.s32 152, %v6153_v4  ;;  %v1709_v27 = vsel %vm1662_vm1, %v1614_v45, %v1615_v1 }
  0x3b   : > { %9103 = vst [vmem:[#allocation15_spill] sm:$0xff] %v6436_v17  ;;  %v710_v31 = vand.u32 15, %v6436_v17 }
  0x3d   : > { %2187 = vrot.lane.b32.xlu0 %v1719_v47, %s9077_s22  ;;  %2189 = vrot.lane.b32.xlu1 %v1798_v48, %s9077_s22  ;;  %v6393_v47 = vsel %vm1405_vm6, %v1351_v37, %v1352_v28  ;;  %v6461_v37 = vld [vmem:[%s6161_s17 + $0xa8] sm:$0xff]  ;;  %vm1746_vm12 = vcmp.ge.s32.totalorder %v710_v31, 15 }
  0x41   : > { %1935 = vrot.lane.b32.xlu0 %v6232_v34, %s6017_s21  ;;  %1937 = vrot.lane.b32.xlu1 %v6255_v43, %s6017_s21  ;;  %v459_v34 = vld [vmem:[%s6161_s17 + $0x78] sm:$0xff] }
  0x42   : > { %v1613_v43 = vrot.slane %v459_v34, 1  ;;  %v1356_v48 = vrot.slane %v459_v34, 7 }
  0x44   : > { %v1710_v50 = vsel %vm1662_vm1, %v1613_v43, %v1614_v45  ;;  %v6480_v45 = vld [vmem:[%s6161_s17 + $0xb0] sm:$0xff] }
  0x45   : > { %2191 = vrot.lane.b32.xlu0 %v1717_v60, %s9077_s22  ;;  %2193 = vrot.lane.b32.xlu1 %v1800_v61, %s9077_s22  ;;  %v1355_v60 = vrot.slane %v458_v16, 7  ;;  %v1711_v61 = vsel %vm1662_vm1, %v1612_v24, %v1613_v43  ;;  %v1806_v63 = vsel %vm6398_vm10, 0.0, %v1710_v50  ;;  %v6477_v43 = vadd.s32 168, %v6153_v4 }
  0x47   : > { %v6426_v8 = vsel %vm1405_vm6, %v1354_v38, %v1355_v60  ;;  %v6430_v10 = vsel %vm1405_vm6, %v1355_v60, %v1356_v48  ;;  %9106 = vst [vmem:[#allocation16_spill] sm:$0xff] %v6477_v43  ;;  %v724_v60 = vand.u32 15, %v6477_v43 }
  0x49   : > { %1939 = vrot.lane.b32.xlu0 %v6258_v44, %s6017_s21  ;;  %1941 = vrot.lane.b32.xlu1 %v6294_v58, %s6017_s21  ;;  %v1353_v44 = vrot.slane %v6297_v59, 7  ;;  %vm1748_vm13 = vcmp.ge.s32.totalorder %v724_v60, 15 }
  0x4b   : > { %v6410_v55 = vsel %vm1405_vm6, %v1352_v28, %v1353_v44  ;;  %v6414_v58 = vsel %vm1405_vm6, %v1353_v44, %v1354_v38 }
  0x4d   : > { %2195 = vrot.lane.b32.xlu0 %v1715_v19, %s9077_s22  ;;  %2197 = vrot.lane.b32.xlu1 %v1802_v20, %s9077_s22  ;;  %v6525_v19 = vadd.s32 200, %v6153_v4 }
  0x4f   : > { %9108 = vst [vmem:[#allocation18_spill] sm:$0xff] %v6525_v19  ;;  %v752_v31 = vand.u32 15, %v6525_v19 }
  0x51   : > { %1943 = vrot.lane.b32.xlu0 %v6297_v59, %s6017_s21  ;;  %1945 = vrot.lane.b32.xlu1 %v457_v14, %s6017_s21  ;;  %v462_v59 = vld [vmem:[%s6161_s17 + $0x90] sm:$0xff]  ;;  %v1357_v14 = vrot.slane %v460_v36, 7  ;;  %vm1752_vm15 = vcmp.ge.s32.totalorder %v752_v31, 15 }
  0x52   : > { %v1616_v3 = vrot.slane %v462_v59, 1  ;;  %v1359_v24 = vrot.slane %v462_v59, 7 }
  0x53   : > { %v6446_v20 = vsel %vm1405_vm6, %v1356_v48, %v1357_v14  ;;  %v6450_v21 = vsel %vm1405_vm6, %v1357_v14, %v1358_v0 }
  0x54   : > { %v1708_v18 = vsel %vm1662_vm1, %v1615_v1, %v1616_v3  ;;  %v6465_v38 = vsel %vm1405_vm6, %v1358_v0, %v1359_v24  ;;  %v1707_v49 = vsel %vm1662_vm1, %v1616_v3, %v1617_v30  ;;  %v6507_v0 = vld [vmem:[%s6161_s17 + $0xb8] sm:$0xff]  ;;  %v6510_v1 = vld [vmem:[%s6161_s17 + $0xc0] sm:$0xff] }
  0x55   : > { %2199 = vrot.lane.b32.xlu0 %v1713_v39, %s9077_s22  ;;  %2201 = vrot.lane.b32.xlu1 %v1804_v40, %s9077_s22  ;;  %v1808_v28 = vsel %vm6440_vm11, 0.0, %v1708_v18  ;;  %v8971_v39 = vrot.slane %v6461_v37, 7  ;;  %v1361_v40 = vrot.slane %v464_v22, 7 }
  0x57   : > { %v6490_v48 = vsel %vm1405_vm6, %v1361_v40, %v8971_v39 }
  0x59   : > { %1947 = vrot.lane.b32.xlu0 %v458_v16, %s6017_s21  ;;  %1949 = vrot.lane.b32.xlu1 %v459_v34, %s6017_s21  ;;  %v1360_v16 = vrot.slane %v463_v12, 7  ;;  %v1618_v34 = vrot.slane %v464_v22, 1 }
  0x5b   : > { %v1706_v41 = vsel %vm1662_vm1, %v1617_v30, %v1618_v34  ;;  %v6484_v44 = vsel %vm1405_vm6, %v1360_v16, %v1361_v40 }
  0x5c   : > { %v1810_v50 = vsel %vm1746_vm12, 0.0, %v1706_v41  ;;  %v6547_v41 = vadd.s32 216, %v6153_v4 }
  0x5d   : > { %2203 = vrot.lane.b32.xlu0 %v1711_v61, %s9077_s22  ;;  %2205 = vrot.lane.b32.xlu1 %v1806_v63, %s9077_s22  ;;  %v1620_v61 = vrot.slane %v6480_v45, 1 }
  0x61   : > { %1951 = vrot.lane.b32.xlu0 %v460_v36, %s6017_s21  ;;  %1953 = vrot.lane.b32.xlu1 %v461_v51, %s6017_s21  ;;  %v6469_v36 = vsel %vm1405_vm6, %v1359_v24, %v1360_v16  ;;  %v1619_v51 = vrot.slane %v6461_v37, 1  ;;  %v1622_v16 = vrot.slane %v6510_v1, 1  ;;  %v6531_v24 = vld [vmem:[%s6161_s17 + $0xd0] sm:$0xff] }
  0x63   : > { %v1704_v63 = vsel %vm1662_vm1, %v1619_v51, %v1620_v61  ;;  %v1705_v2 = vsel %vm1662_vm1, %v1618_v34, %v1619_v51  ;;  %v1624_v34 = vrot.slane %v6531_v24, 1 }
  0x64   : > { %v1812_v3 = vsel %vm1748_vm13, 0.0, %v1704_v63  ;;  %v766_v63 = vand.u32 15, %v6547_v41 }
  0x65   : > { %2207 = vrot.lane.b32.xlu0 %v1709_v27, %s9077_s22  ;;  %2209 = vrot.lane.b32.xlu1 %v1808_v28, %s9077_s22 }
  0x66   : > { %vm1754_vm0 = vcmp.ge.s32.totalorder %v766_v63, 15  ;;  %v6600_v63 = vadd.s32 248, %v6153_v4 }
  0x68   : > { %9112 = vst [vmem:[#allocation20_spill] sm:$0xff] %v6600_v63  ;;  %v794_v17 = vand.u32 15, %v6600_v63 }
  0x69   : > { %1955 = vrot.lane.b32.xlu0 %v462_v59, %s6017_s21  ;;  %1957 = vrot.lane.b32.xlu1 %v463_v12, %s6017_s21  ;;  %v6504_v59 = vadd.s32 184, %v6153_v4  ;;  %v1621_v12 = vrot.slane %v6507_v0, 1 }
  0x6a   : > { %vm6640_vm8 = vcmp.ge.s32.totalorder %v794_v17, 15  ;;  %v6661_v17 = vadd.s32 32, %v6153_v4 }
  0x6b   : > { %9107 = vst [vmem:[#allocation17_spill] sm:$0xff] %v6504_v59  ;;  %v738_v14 = vand.u32 15, %v6504_v59  ;;  %v1702_v18 = vsel %vm1662_vm1, %v1621_v12, %v1622_v16  ;;  %v1703_v27 = vsel %vm1662_vm1, %v1620_v61, %v1621_v12  ;;  %v6569_v12 = vadd.s32 232, %v6153_v4 }
  0x6d   : > { %2211 = vrot.lane.b32.xlu0 %v1707_v49, %s9077_s22  ;;  %2213 = vrot.lane.b32.xlu1 %v1810_v50, %s9077_s22  ;;  %vm1750_vm14 = vcmp.ge.s32.totalorder %v738_v14, 15  ;;  %v6550_v49 = vld [vmem:[%s6161_s17 + $0xd8] sm:$0xff]  ;;  %v6553_v50 = vld [vmem:[%s6161_s17 + $0xe0] sm:$0xff]  ;;  %9109 = vst [vmem:[#allocation19_spill] sm:$0xff] %v6569_v12  ;;  %v780_v31 = vand.u32 15, %v6569_v12 }
  0x6e   : > { %v1814_v28 = vsel %vm1750_vm14, 0.0, %v1702_v18  ;;  %v1625_v61 = vrot.slane %v6550_v49, 1  ;;  %v6572_v14 = vld [vmem:[%s6161_s17 + $0xe8] sm:$0xff] }
  0x6f   : > { %vm6595_vm2 = vcmp.ge.s32.totalorder %v780_v31, 15  ;;  %v6623_v31 = vadd.s32 16, %v6153_v4 }
  0x70   : > { %v1699_v18 = vsel %vm1662_vm1, %v1624_v34, %v1625_v61 }
  0x71   : > { %1959 = vrot.lane.b32.xlu0 %v464_v22, %s6017_s21  ;;  %1961 = vrot.lane.b32.xlu1 %v6461_v37, %s6017_s21  ;;  %v6528_v22 = vld [vmem:[%s6161_s17 + $0xc8] sm:$0xff] }
  0x72   : > { %v1623_v30 = vrot.slane %v6528_v22, 1 }
  0x74   : > { %v1700_v40 = vsel %vm1662_vm1, %v1623_v30, %v1624_v34  ;;  %v1701_v51 = vsel %vm1662_vm1, %v1622_v16, %v1623_v30  ;;  %v6575_v16 = vld [vmem:[%s6161_s17 + $0xf0] sm:$0xff]  ;;  %v1627_v30 = vrot.slane %v6572_v14, 1 }
  0x75   : > { %2215 = vrot.lane.b32.xlu0 %v1705_v2, %s9077_s22  ;;  %2217 = vrot.lane.b32.xlu1 %v1812_v3, %s9077_s22  ;;  %v1816_v60 = vsel %vm1752_vm15, 0.0, %v1700_v40  ;;  %v1626_v2 = vrot.slane %v6553_v50, 1  ;;  %v1628_v40 = vrot.slane %v6575_v16, 1 }
  0x77   : > { %v1698_v3 = vsel %vm1662_vm1, %v1625_v61, %v1626_v2  ;;  %v1696_v34 = vsel %vm1662_vm1, %v1627_v30, %v1628_v40  ;;  %v1697_v39 = vsel %vm1662_vm1, %v1626_v2, %v1627_v30  ;;  %v591_v2 = vand.u32 15, %v6623_v31 }
  0x78   : > { %v1820_v19 = vsel %vm6595_vm2, 0.0, %v1696_v34 }
  0x79   : > { %1963 = vrot.lane.b32.xlu0 %v6480_v45, %s6017_s21  ;;  %1965 = vrot.lane.b32.xlu1 %v6507_v0, %s6017_s21  ;;  %vm6656_vm9 = vcmp.lt.s32.totalorder %v591_v2, 1 }
  0x7d   : > { %2219 = vrot.lane.b32.xlu0 %v1703_v27, %s9077_s22  ;;  %2221 = vrot.lane.b32.xlu1 %v1814_v28, %s9077_s22  ;;  %v1818_v27 = vsel %vm1754_vm0, 0.0, %v1698_v3  ;;  %v6584_v28 = vld [vmem:[%s6161_s17 + $0x1f8] sm:$0xff] }
  0x7e   : > { %v6603_v3 = vld [vmem:[%s6161_s17 + $0xf8] sm:$0xff] }
  0x7f   : > { %v1629_v43 = vrot.slane %v6603_v3, 1 }
  0x81   : > { %1967 = vrot.lane.b32.xlu0 %v6510_v1, %s6017_s21  ;;  %1969 = vrot.lane.b32.xlu1 %v6528_v22, %s6017_s21 }
  0x85   : > { %2223 = vrot.lane.b32.xlu0 %v1701_v51, %s9077_s22  ;;  %2225 = vrot.lane.b32.xlu1 %v1816_v60, %s9077_s22  ;;  %v577_v51 = vand.u32 15, %v6153_v4  ;;  %v8982_v60 = vrot.slane %v6584_v28, 7 }
  0x87   : > { %vm6612_vm3 = vcmp.lt.s32.totalorder %v577_v51, 1 }
  0x89   : > { %1971 = vrot.lane.b32.xlu0 %v6531_v24, %s6017_s21  ;;  %1973 = vrot.lane.b32.xlu1 %v6550_v49, %s6017_s21 }
  0x8d   : > { %2227 = vrot.lane.b32.xlu0 %v1699_v18, %s9077_s22  ;;  %2229 = vrot.lane.b32.xlu1 %v1818_v27, %s9077_s22  ;;  %v1469_v27 = vsel %vm1405_vm6, %v8982_v60, %v1341_v53  ;;  %v1694_v60 = vsel %vm1662_vm1, %v1629_v43, %v1630_v52  ;;  %v6645_v18 = vld [vmem:[%s6161_s17 + $0x108] sm:$0xff] }
  0x8e   : > { %v1534_v53 = vsel %vm6612_vm3, 0.0, %v1469_v27 }
  0x91   : > { %1975 = vrot.lane.b32.xlu0 %v6553_v50, %s6017_s21  ;;  %1977 = vrot.lane.b32.xlu1 %v6572_v14, %s6017_s21 }
  0x93   : > { %v1926_v51 = vpop.permute.xlu1 %1925  ;;  %v1920_v59 = vpop.permute.xlu0 %1919 }
  0x94   : > { %v2368_v30 = vsel %vm2367_vm4, %v1534_v53, %v1920_v59  ;;  %v1695_v53 = vsel %vm1662_vm1, %v1628_v40, %v1629_v43  ;;  %v605_v40 = vand.u32 15, %v6661_v17  ;;  %v6693_v59 = vld [vmem:[%s6161_s17 + $0x120] sm:$0xff] }
  0x95   : > { %2231 = vrot.lane.b32.xlu0 %v1697_v39, %s9077_s22  ;;  %2233 = vrot.lane.b32.xlu1 %v1820_v19, %s9077_s22  ;;  %v6648_v39 = vld [vmem:[%s6161_s17 + $0x110] sm:$0xff]  ;;  %v542_v19 = vadd.s32 264, %v6153_v4 }
  0x96   : > { %v1632_v29 = vrot.slane %v6648_v39, 1  ;;  %vm6702_vm11 = vcmp.lt.s32.totalorder %v605_v40, 1 }
  0x97   : > { %v1922_v34 = vpop.permute.xlu0 %1921  ;;  %v2176_v61 = vpop.permute.xlu1 %2175  ;;  %v808_v42 = vand.u32 15, %v542_v19  ;;  %v6690_v19 = vld [vmem:[%s6161_s17 + $0x118] sm:$0xff] }
  0x98   : > { %v2433_v27 = vsel %vm2432_vm5, %v2368_v30, %v2176_v61  ;;  %v1822_v30 = vsel %vm6640_vm8, 0.0, %v1694_v60  ;;  %v1631_v61 = vrot.slane %v6645_v18, 1  ;;  %v2369_v2 = vsel %vm2367_vm4, %v6291_v57, %v1922_v34 }
  0x99   : > { %1979 = vrot.lane.b32.xlu0 %v6575_v16, %s6017_s21  ;;  %1981 = vrot.lane.b32.xlu1 %v6603_v3, %s6017_s21  ;;  %v2371_v60 = vsel %vm2367_vm4, %v6280_v54, %v1926_v51  ;;  %vm6685_vm10 = vcmp.ge.s32.totalorder %v808_v42, 15  ;;  %v6707_v54 = vadd.s32 48, %v6153_v4  ;;  %v546_v42 = vadd.s32 296, %v6153_v4 }
  0x9a   : > { %5697 = vmatprep.mubr.msk.f32.mxu0 %vm2506_vm7, %v2433_v27  ;;  %v1536_v27 = vsel %vm6656_vm9, 0.0, %v6307_v62  ;;  %v1692_v57 = vsel %vm1662_vm1, %v1631_v61, %v1632_v29 }
  0x9b   : > { %v1924_v6 = vpop.permute.xlu0 %1923  ;;  %v2178_v56 = vpop.permute.xlu1 %2177  ;;  %v1824_v51 = vsel %vm6685_vm10, 0.0, %v1692_v57 }
  0x9c   : > { %v2434_v43 = vsel %vm2432_vm5, %v2369_v2, %v2178_v56  ;;  %v2370_v63 = vsel %vm2367_vm4, %v1536_v27, %v1924_v6  ;;  %v1693_v6 = vsel %vm1662_vm1, %v1630_v52, %v1631_v61  ;;  %v1633_v27 = vrot.slane %v6690_v19, 1 }
  0x9d   : > { %2235 = vrot.lane.b32.xlu0 %v1695_v53, %s9077_s22  ;;  %2237 = vrot.lane.b32.xlu1 %v1822_v30, %s9077_s22  ;;  %v544_v53 = vadd.s32 280, %v6153_v4  ;;  %v619_v52 = vand.u32 15, %v6707_v54 }
  0x9e   : > { %5698 = vmatmul.mubr.msk.f32.vlgmr.msra.gmra.mxu0 %vm2506_vm7, %v2434_v43  ;;  %v1634_v43 = vrot.slane %v6693_v59, 1 }
  0x9f   : > { %v2180_v34 = vpop.permute.xlu0 %2179  ;;  %v2182_v62 = vpop.permute.xlu1 %2181  ;;  %vm6745_vm13 = vcmp.lt.s32.totalorder %v619_v52, 1 }
  0xa0   : > { %v2435_v30 = vsel %vm2432_vm5, %v2370_v63, %v2180_v34  ;;  %v2436_v2 = vsel %vm2432_vm5, %v2371_v60, %v2182_v62  ;;  %v822_v63 = vand.u32 15, %v544_v53  ;;  %v1538_v34 = vsel %vm6702_vm11, 0.0, %v6329_v15  ;;  %v6733_v15 = vld [vmem:[%s6161_s17 + $0x128] sm:$0xff] }
  0xa1   : > { %1983 = vrot.lane.b32.xlu0 %v6606_v11, %s6017_s21  ;;  %1985 = vrot.lane.b32.xlu1 %v6645_v18, %s6017_s21  ;;  %v1690_v61 = vsel %vm1662_vm1, %v1633_v27, %v1634_v43 }
  0xa2   : > { %5700 = vmatprep.mubr.msk.f32.mxu0 %vm2506_vm7, %v2435_v30  ;;  %vm6728_vm12 = vcmp.ge.s32.totalorder %v822_v63, 15 }
  0xa3   : > { %5701 = vmatmul.mubr.msk.f32.gmra.mxu0 %vm2506_vm7, %v2436_v2  ;;  %v1928_v40 = vpop.permute.xlu0 %1927  ;;  %v1930_v60 = vpop.permute.xlu1 %1929  ;;  %v6736_v2 = vld [vmem:[%s6161_s17 + $0x130] sm:$0xff]  ;;  %v1826_v63 = vsel %vm6728_vm12, 0.0, %v1690_v61 }
  0xa4   : > { %v2372_v57 = vsel %vm2367_vm4, %v1538_v34, %v1928_v40  ;;  %v2373_v62 = vsel %vm2367_vm4, %v6334_v13, %v1930_v60  ;;  %v6750_v40 = vadd.s32 64, %v6153_v4  ;;  %v1691_v60 = vsel %vm1662_vm1, %v1632_v29, %v1633_v27  ;;  %v6779_v13 = vld [vmem:[%s6161_s17 + $0x140] sm:$0xff] }
  0xa5   : > { %2239 = vrot.lane.b32.xlu0 %v1693_v6, %s9077_s22  ;;  %2241 = vrot.lane.b32.xlu1 %v1824_v51, %s9077_s22  ;;  %v1635_v34 = vrot.slane %v6733_v15, 1 }
  0xa6   : > { %9127 = vst [vmem:[#allocation21_spill] sm:$0xff] %v6750_v40  ;;  %v633_v29 = vand.u32 15, %v6750_v40 }
  0xa7   : > { %v2184_v56 = vpop.permute.xlu0 %2183  ;;  %v2186_v53 = vpop.permute.xlu1 %2185 }
  0xa8   : > { %v2437_v6 = vsel %vm2432_vm5, %v2372_v57, %v2184_v56  ;;  %v2438_v51 = vsel %vm2432_vm5, %v2373_v62, %v2186_v53  ;;  %v1636_v57 = vrot.slane %v6736_v2, 1  ;;  %v836_v56 = vand.u32 15, %v546_v42 }
  0xa9   : > { %1987 = vrot.lane.b32.xlu0 %v6648_v39, %s6017_s21  ;;  %1989 = vrot.lane.b32.xlu1 %v6690_v19, %s6017_s21  ;;  %v1540_v53 = vsel %vm6745_vm13, 0.0, %v6349_v26  ;;  %v6776_v26 = vld [vmem:[%s6161_s17 + $0x138] sm:$0xff]  ;;  %vm6788_vm15 = vcmp.lt.s32.totalorder %v633_v29, 1 }
  0xaa   : > { %5703 = vmatprep.mubr.msk.f32.mxu0 %vm2506_vm7, %v2437_v6  ;;  %v1688_v27 = vsel %vm1662_vm1, %v1635_v34, %v1636_v57  ;;  %vm6771_vm14 = vcmp.ge.s32.totalorder %v836_v56, 15 }
  0xab   : > { %5704 = vmatmul.mubr.msk.f32.gmra.mxu0 %vm2506_vm7, %v2438_v51  ;;  %v1932_v52 = vpop.permute.xlu0 %1931  ;;  %v1934_v62 = vpop.permute.xlu1 %1933  ;;  %v1828_v56 = vsel %vm6771_vm14, 0.0, %v1688_v27 }
  0xac   : > { %v2374_v61 = vsel %vm2367_vm4, %v1540_v53, %v1932_v52  ;;  %v2375_v30 = vsel %vm2367_vm4, %v6353_v25, %v1934_v62  ;;  %v6793_v52 = vadd.s32 80, %v6153_v4  ;;  %v1689_v62 = vsel %vm1662_vm1, %v1634_v43, %v1635_v34  ;;  %v6822_v25 = vld [vmem:[%s6161_s17 + $0x150] sm:$0xff] }
  0xad   : > { %2243 = vrot.lane.b32.xlu0 %v1691_v60, %s9077_s22  ;;  %2245 = vrot.lane.b32.xlu1 %v1826_v63, %s9077_s22  ;;  %v548_v60 = vadd.s32 312, %v6153_v4  ;;  %v1637_v53 = vrot.slane %v6776_v26, 1 }
  0xae   : > { %9132 = vst [vmem:[#allocation22_spill] sm:$0xff] %v6793_v52  ;;  %v647_v43 = vand.u32 15, %v6793_v52 }
  0xaf   : > { %v2188_v6 = vpop.permute.xlu0 %2187  ;;  %v2190_v42 = vpop.permute.xlu1 %2189 }
  0xb0   : > { %v2439_v63 = vsel %vm2432_vm5, %v2374_v61, %v2188_v6  ;;  %v2440_v32 = vsel %vm2432_vm5, %v2375_v30, %v2190_v42  ;;  %v1638_v61 = vrot.slane %v6779_v13, 1  ;;  %v850_v6 = vand.u32 15, %v548_v60 }
  0xb1   : > { %1991 = vrot.lane.b32.xlu0 %v6693_v59, %s6017_s21  ;;  %1993 = vrot.lane.b32.xlu1 %v6733_v15, %s6017_s21  ;;  %v1542_v42 = vsel %vm6788_vm15, 0.0, %v6370_v33  ;;  %v6819_v33 = vld [vmem:[%s6161_s17 + $0x148] sm:$0xff]  ;;  %vm6831_vm2 = vcmp.lt.s32.totalorder %v647_v43, 1 }
  0xb2   : > { %5706 = vmatprep.mubr.msk.f32.mxu0 %vm2506_vm7, %v2439_v63  ;;  %v1686_v34 = vsel %vm1662_vm1, %v1637_v53, %v1638_v61  ;;  %vm6814_vm0 = vcmp.ge.s32.totalorder %v850_v6, 15 }
  0xb3   : > { %5707 = vmatmul.mubr.msk.f32.gmra.mxu0 %vm2506_vm7, %v2440_v32  ;;  %v1936_v29 = vpop.permute.xlu0 %1935  ;;  %v1938_v30 = vpop.permute.xlu1 %1937  ;;  %v1830_v6 = vsel %vm6814_vm0, 0.0, %v1686_v34 }
  0xb4   : > { %v2376_v27 = vsel %vm2367_vm4, %v1542_v42, %v1936_v29  ;;  %v2377_v32 = vsel %vm2367_vm4, %v6374_v35, %v1938_v30  ;;  %v6836_v29 = vadd.s32 96, %v6153_v4  ;;  %v1687_v30 = vsel %vm1662_vm1, %v1636_v57, %v1637_v53 }
  0xb5   : > { %2247 = vrot.lane.b32.xlu0 %v1689_v62, %s9077_s22  ;;  %2249 = vrot.lane.b32.xlu1 %v1828_v56, %s9077_s22  ;;  %v550_v62 = vadd.s32 328, %v6153_v4  ;;  %v1639_v42 = vrot.slane %v6819_v33, 1 }
  0xb6   : > { %9137 = vst [vmem:[#allocation23_spill] sm:$0xff] %v6836_v29  ;;  %v661_v57 = vand.u32 15, %v6836_v29  ;;  %v6868_v29 = vld [vmem:[%s6161_s17 + $0x160] sm:$0xff] }
  0xb7   : > { %v2192_v51 = vpop.permute.xlu0 %2191  ;;  %v2194_v60 = vpop.permute.xlu1 %2193 }
  0xb8   : > { %v2441_v56 = vsel %vm2432_vm5, %v2376_v27, %v2192_v51  ;;  %v2442_v52 = vsel %vm2432_vm5, %v2377_v32, %v2194_v60  ;;  %v1640_v27 = vrot.slane %v6822_v25, 1  ;;  %v864_v51 = vand.u32 15, %v550_v62 }
  0xb9   : > { %1995 = vrot.lane.b32.xlu0 %v6736_v2, %s6017_s21  ;;  %1997 = vrot.lane.b32.xlu1 %v6776_v26, %s6017_s21  ;;  %v1544_v60 = vsel %vm6831_vm2, 0.0, %v6389_v46  ;;  %v552_v46 = vadd.s32 344, %v6153_v4  ;;  %vm6874_vm8 = vcmp.lt.s32.totalorder %v661_v57, 1 }
  0xba   : > { %5709 = vmatprep.mubr.msk.f32.mxu0 %vm2506_vm7, %v2441_v56  ;;  %v1684_v53 = vsel %vm1662_vm1, %v1639_v42, %v1640_v27  ;;  %vm6857_vm3 = vcmp.ge.s32.totalorder %v864_v51, 15 }
  0xbb   : > { %5710 = vmatmul.mubr.msk.f32.gmra.mxu0 %vm2506_vm7, %v2442_v52  ;;  %v1940_v43 = vpop.permute.xlu0 %1939  ;;  %v1942_v32 = vpop.permute.xlu1 %1941  ;;  %v1832_v51 = vsel %vm6857_vm3, 0.0, %v1684_v53 }
  0xbc   : > { %v2378_v52 = vsel %vm2367_vm4, %v1544_v60, %v1940_v43  ;;  %v2379_v34 = vsel %vm2367_vm4, %v6393_v47, %v1942_v32  ;;  %v6879_v43 = vadd.s32 112, %v6153_v4  ;;  %v1685_v32 = vsel %vm1662_vm1, %v1638_v61, %v1639_v42 }
  0xbd   : > { %2251 = vrot.lane.b32.xlu0 %v1687_v30, %s9077_s22  ;;  %2253 = vrot.lane.b32.xlu1 %v1830_v6, %s9077_s22  ;;  %v6865_v6 = vld [vmem:[%s6161_s17 + $0x158] sm:$0xff] }
  0xbe   : > { %9142 = vst [vmem:[#allocation24_spill] sm:$0xff] %v6879_v43  ;;  %v1641_v57 = vrot.slane %v6865_v6, 1  ;;  %v675_v61 = vand.u32 15, %v6879_v43 }
  0xbf   : > { %v2196_v63 = vpop.permute.xlu0 %2195  ;;  %v2198_v62 = vpop.permute.xlu1 %2197 }
  0xc0   : > { %v2443_v35 = vsel %vm2432_vm5, %v2378_v52, %v2196_v63  ;;  %v2444_v30 = vsel %vm2432_vm5, %v2379_v34, %v2198_v62  ;;  %v878_v34 = vand.u32 15, %v552_v46  ;;  %v1642_v63 = vrot.slane %v6868_v29, 1 }
  0xc1   : > { %1999 = vrot.lane.b32.xlu0 %v6779_v13, %s6017_s21  ;;  %2001 = vrot.lane.b32.xlu1 %v6819_v33, %s6017_s21  ;;  %v1546_v62 = vsel %vm6874_vm8, 0.0, %v6410_v55  ;;  %vm6910_vm10 = vcmp.lt.s32.totalorder %v675_v61, 1  ;;  %v6927_v61 = vld [vmem:[%s6161_s17 + $0x170] sm:$0xff] }
  0xc2   : > { %5712 = vmatprep.mubr.msk.f32.mxu0 %vm2506_vm7, %v2443_v35  ;;  %v1682_v35 = vsel %vm1662_vm1, %v1641_v57, %v1642_v63  ;;  %vm6900_vm9 = vcmp.ge.s32.totalorder %v878_v34, 15 }
  0xc3   : > { %5713 = vmatmul.mubr.msk.f32.gmra.mxu0 %vm2506_vm7, %v2444_v30  ;;  %v1944_v60 = vpop.permute.xlu0 %1943  ;;  %v1946_v52 = vpop.permute.xlu1 %1945 }
  0xc4   : > { %v2380_v42 = vsel %vm2367_vm4, %v1546_v62, %v1944_v60  ;;  %v2381_v53 = vsel %vm2367_vm4, %v6414_v58, %v1946_v52  ;;  %v1834_v60 = vsel %vm6900_vm9, 0.0, %v1682_v35  ;;  %v6924_v62 = vld [vmem:[%s6161_s17 + $0x168] sm:$0xff]  ;;  %v562_v58 = vadd.s32 424, %v6153_v4 }
  0xc5   : > { %2255 = vrot.lane.b32.xlu0 %v1685_v32, %s9077_s22  ;;  %2257 = vrot.lane.b32.xlu1 %v1832_v51, %s9077_s22  ;;  %v6915_v32 = vadd.s32 128, %v6153_v4  ;;  %v1683_v51 = vsel %vm1662_vm1, %v1640_v27, %v1641_v57  ;;  %v1643_v57 = vrot.slane %v6924_v62, 1 }
  0xc7   : > { %v2200_v56 = vpop.permute.xlu0 %2199  ;;  %v2202_v46 = vpop.permute.xlu1 %2201  ;;  %9147 = vst [vmem:[#allocation25_spill] sm:$0xff] %v6915_v32  ;;  %v689_v27 = vand.u32 15, %v6915_v32  ;;  %v6948_v32 = vld [vmem:[%s6161_s17 + $0x1b0] sm:$0xff] }
  0xc8   : > { %v2445_v30 = vsel %vm2432_vm5, %v2380_v42, %v2200_v56  ;;  %v2446_v47 = vsel %vm2432_vm5, %v2381_v53, %v2202_v46  ;;  %v554_v42 = vadd.s32 360, %v6153_v4  ;;  %v1548_v53 = vsel %vm6910_vm10, 0.0, %v6426_v8 }
  0xc9   : > { %2003 = vrot.lane.b32.xlu0 %v6822_v25, %s6017_s21  ;;  %2005 = vrot.lane.b32.xlu1 %v6865_v6, %s6017_s21  ;;  %v9001_v56 = vrot.slane %v6927_v61, 1  ;;  %vm6954_vm11 = vcmp.lt.s32.totalorder %v689_v27, 1 }
  0xca   : > { %5715 = vmatprep.mubr.msk.f32.mxu0 %vm2506_vm7, %v2445_v30  ;;  %v892_v8 = vand.u32 15, %v554_v42  ;;  %v1681_v42 = vsel %vm1662_vm1, %v1642_v63, %v1643_v57  ;;  %v1550_v63 = vsel %vm6954_vm11, 0.0, %v6446_v20 }
  0xcb   : > { %5716 = vmatmul.mubr.msk.f32.gmra.mxu0 %vm2506_vm7, %v2446_v47  ;;  %v1948_v52 = vpop.permute.xlu0 %1947  ;;  %v1950_v34 = vpop.permute.xlu1 %1949  ;;  %v6942_v47 = vld [vmem:[%s6161_s17 + $0x1a8] sm:$0xff]  ;;  %v1680_v27 = vsel %vm1662_vm1, %v1643_v57, %v9001_v56 }
  0xcc   : > { %v2382_v46 = vsel %vm2367_vm4, %v1548_v53, %v1948_v52  ;;  %v2383_v35 = vsel %vm2367_vm4, %v6430_v10, %v1950_v34  ;;  %v6959_v52 = vadd.s32 144, %v6153_v4  ;;  %v6963_v34 = vld [vmem:[%s6161_s17 + $0x1a0] sm:$0xff]  ;;  %v1651_v53 = vrot.slane %v6942_v47, 1 }
  0xcd   : > { %2259 = vrot.lane.b32.xlu0 %v1683_v51, %s9077_s22  ;;  %2261 = vrot.lane.b32.xlu1 %v1834_v60, %s9077_s22  ;;  %vm6973_vm12 = vcmp.ge.s32.totalorder %v892_v8, 15  ;;  %v9004_v57 = vrot.slane %v6963_v34, 1  ;;  %v9153_v10 = vrot.slane %v6948_v32, 1 }
  0xce   : > { %9150 = vst [vmem:[#allocation26_spill] sm:$0xff] %v6959_v52  ;;  %v1836_v8 = vsel %vm6973_vm12, 0.0, %v1680_v27 }
  0xcf   : > { %v2204_v55 = vpop.permute.xlu0 %2203  ;;  %v2206_v30 = vpop.permute.xlu1 %2205 }
  0xd0   : > { %v2447_v51 = vsel %vm2432_vm5, %v2382_v46, %v2204_v55  ;;  %v2448_v60 = vsel %vm2432_vm5, %v2383_v35, %v2206_v30  ;;  %v948_v30 = vand.u32 15, %v562_v58  ;;  %v1673_v55 = vsel %vm1662_vm1, %v9004_v57, %v1651_v53 }
  0xd1   : > { %2007 = vrot.lane.b32.xlu0 %v6868_v29, %s6017_s21  ;;  %2009 = vrot.lane.b32.xlu1 %v6924_v62, %s6017_s21 }
  0xd2   : > { %5718 = vmatprep.mubr.msk.f32.mxu0 %vm2506_vm7, %v2447_v51  ;;  %vm6995_vm13 = vcmp.ge.s32.totalorder %v948_v30, 15 }
  0xd3   : > { %5719 = vmatmul.mubr.msk.f32.gmra.mxu0 %vm2506_vm7, %v2448_v60  ;;  %v1952_v46 = vpop.permute.xlu0 %1951  ;;  %v1954_v35 = vpop.permute.xlu1 %1953  ;;  %v703_v60 = vand.u32 15, %v6959_v52 }
  0xd4   : > { %v2384_v58 = vsel %vm2367_vm4, %v1550_v63, %v1952_v46  ;;  %v2385_v56 = vsel %vm2367_vm4, %v6450_v21, %v1954_v35  ;;  %v7009_v35 = vadd.s32 160, %v6153_v4  ;;  %v7020_v63 = vld [vmem:[%s6161_s17 + $0x178] sm:$0xff] }
  0xd5   : > { %2023 = vrot.lane.b32.xlu0 %v6963_v34, %s6017_s21  ;;  %2263 = vrot.lane.b32.xlu1 %v1681_v42, %s9077_s22  ;;  %v1672_v42 = vsel %vm1662_vm1, %v1651_v53, %v9153_v10  ;;  %vm7004_vm14 = vcmp.lt.s32.totalorder %v703_v60, 1  ;;  %v7023_v60 = vld [vmem:[%s6161_s17 + $0x180] sm:$0xff]  ;;  %v1645_v53 = vrot.slane %v7020_v63, 1  ;;  %v7038_v21 = vld [vmem:[%s6161_s17 + $0x1b8] sm:$0xff] }
  0xd6   : > { %9158 = vst [vmem:[#allocation27_spill] sm:$0xff] %v7009_v35  ;;  %v717_v52 = vand.u32 15, %v7009_v35  ;;  %v7044_v35 = vld [vmem:[%s6161_s17 + $0x1c0] sm:$0xff] }
  0xd7   : > { %v2208_v51 = vpop.permute.xlu0 %2207  ;;  %v2210_v20 = vpop.permute.xlu1 %2209 }
  0xd8   : > { %v2449_v27 = vsel %vm2432_vm5, %v2384_v58, %v2208_v51  ;;  %v2450_v46 = vsel %vm2432_vm5, %v2385_v56, %v2210_v20  ;;  %v1844_v56 = vsel %vm6995_vm13, 0.0, %v1672_v42  ;;  %v1552_v58 = vsel %vm7004_vm14, 0.0, %v6465_v38 }
  0xd9   : > { %2025 = vrot.lane.b32.xlu0 %v6942_v47, %s6017_s21  ;;  %2265 = vrot.lane.b32.xlu1 %v1836_v8, %s9077_s22  ;;  %v556_v8 = vadd.s32 376, %v6153_v4  ;;  %v9007_v20 = vrot.slane %v7023_v60, 1  ;;  %vm7050_vm15 = vcmp.lt.s32.totalorder %v717_v52, 1 }
  0xda   : > { %5721 = vmatprep.mubr.msk.f32.mxu0 %vm2506_vm7, %v2449_v27 }
  0xdb   : > { %5722 = vmatmul.mubr.msk.f32.gmra.mxu0 %vm2506_vm7, %v2450_v46  ;;  %v1956_v30 = vpop.permute.xlu0 %1955  ;;  %v1958_v51 = vpop.permute.xlu1 %1957  ;;  %v906_v38 = vand.u32 15, %v556_v8  ;;  %v1678_v52 = vsel %vm1662_vm1, %v1645_v53, %v9007_v20 }
  0xdc   : > { %v2386_v10 = vsel %vm2367_vm4, %v1552_v58, %v1956_v30  ;;  %v2387_v42 = vsel %vm2367_vm4, %v6469_v36, %v1958_v51  ;;  %v7055_v30 = vadd.s32 176, %v6153_v4  ;;  %v9162_v51 = vrot.slane %v6927_v61, 1 }
  0xdd   : > { %2279 = vrot.lane.b32.xlu0 %v1673_v55, %s9077_s22  ;;  %2281 = vrot.lane.b32.xlu1 %v1844_v56, %s9077_s22  ;;  %v564_v55 = vadd.s32 440, %v6153_v4  ;;  %v1653_v58 = vrot.slane %v7038_v21, 1  ;;  %vm7068_vm0 = vcmp.ge.s32.totalorder %v906_v38, 15 }
  0xde   : > { %9161 = vst [vmem:[#allocation28_spill] sm:$0xff] %v7055_v30  ;;  %v1679_v8 = vsel %vm1662_vm1, %v9162_v51, %v1645_v53  ;;  %v1554_v51 = vsel %vm7050_vm15, 0.0, %v6484_v44  ;;  %v1363_v53 = vrot.slane %v6480_v45, 7  ;;  %v1838_v38 = vsel %vm7068_vm0, 0.0, %v1678_v52 }
  0xdf   : > { %v2212_v27 = vpop.permute.xlu0 %2211  ;;  %v2214_v46 = vpop.permute.xlu1 %2213  ;;  %v9165_v44 = vrot.slane %v7044_v35, 1  ;;  %v1364_v45 = vrot.slane %v6507_v0, 7  ;;  %v7109_v0 = vadd.s32 192, %v6153_v4 }
  0xe0   : > { %v2451_v56 = vsel %vm2432_vm5, %v2386_v10, %v2212_v27  ;;  %v2452_v57 = vsel %vm2432_vm5, %v2387_v42, %v2214_v46  ;;  %v962_v46 = vand.u32 15, %v564_v55 }
  0xe1   : > { %2011 = vrot.lane.b32.xlu0 %v6927_v61, %s6017_s21  ;;  %2013 = vrot.lane.b32.xlu1 %v7020_v63, %s6017_s21  ;;  %v1670_v43 = vsel %vm1662_vm1, %v1653_v58, %v9165_v44  ;;  %9171 = vst [vmem:[#allocation29_spill] sm:$0xff] %v7109_v0  ;;  %v1446_v44 = vsel %vm1405_vm6, %v1363_v53, %v1364_v45 }
  0xe2   : > { %5724 = vmatprep.mubr.msk.f32.mxu0 %vm2506_vm7, %v2451_v56  ;;  %vm7090_vm2 = vcmp.ge.s32.totalorder %v962_v46, 15 }
  0xe3   : > { %5725 = vmatmul.mubr.msk.f32.gmra.mxu0 %vm2506_vm7, %v2452_v57  ;;  %v1960_v10 = vpop.permute.xlu0 %1959  ;;  %v1962_v42 = vpop.permute.xlu1 %1961  ;;  %v731_v57 = vand.u32 15, %v7055_v30  ;;  %v7146_v30 = vld [vmem:[%s6161_s17 + $0x1d0] sm:$0xff] }
  0xe4   : > { %v2388_v55 = vsel %vm2367_vm4, %v1554_v51, %v1960_v10  ;;  %v2389_v20 = vsel %vm2367_vm4, %v6490_v48, %v1962_v42  ;;  %v9168_v48 = vrot.slane %v6461_v37, 7  ;;  %v1846_v37 = vsel %vm7090_vm2, 0.0, %v1670_v43 }
  0xe5   : > { %2027 = vrot.lane.b32.xlu0 %v6948_v32, %s6017_s21  ;;  %2267 = vrot.lane.b32.xlu1 %v1679_v8, %s9077_s22  ;;  %vm7104_vm3 = vcmp.lt.s32.totalorder %v731_v57, 1  ;;  %v7120_v57 = vld [vmem:[%s6161_s17 + $0x188] sm:$0xff]  ;;  %v745_v43 = vand.u32 15, %v7109_v0 }
  0xe6   : > { %v1447_v42 = vsel %vm1405_vm6, %v9168_v48, %v1363_v53  ;;  %v1647_v8 = vrot.slane %v7120_v57, 1 }
  0xe7   : > { %v2216_v56 = vpop.permute.xlu0 %2215  ;;  %v2218_v36 = vpop.permute.xlu1 %2217  ;;  %vm7154_vm8 = vcmp.lt.s32.totalorder %v745_v43, 1 }
  0xe8   : > { %v2453_v10 = vsel %vm2432_vm5, %v2388_v55, %v2216_v56  ;;  %v2454_v52 = vsel %vm2432_vm5, %v2389_v20, %v2218_v36  ;;  %v9172_v20 = vrot.slane %v6948_v32, 1  ;;  %v558_v55 = vadd.s32 392, %v6153_v4 }
  0xe9   : > { %2029 = vrot.lane.b32.xlu0 %v7038_v21, %s6017_s21  ;;  %2269 = vrot.lane.b32.xlu1 %v1838_v38, %s9077_s22  ;;  %v7123_v38 = vld [vmem:[%s6161_s17 + $0x190] sm:$0xff]  ;;  %v1556_v36 = vsel %vm7104_vm3, 0.0, %v1447_v42 }
  0xea   : > { %5727 = vmatprep.mubr.msk.f32.mxu0 %vm2506_vm7, %v2453_v10  ;;  %v1671_v46 = vsel %vm1662_vm1, %v9172_v20, %v1653_v58  ;;  %v1365_v58 = vrot.slane %v6510_v1, 7  ;;  %v9014_v10 = vrot.slane %v7123_v38, 1  ;;  %v920_v27 = vand.u32 15, %v558_v55  ;;  %v7143_v1 = vld [vmem:[%s6161_s17 + $0x1c8] sm:$0xff] }
  0xeb   : > { %5728 = vmatmul.mubr.msk.f32.gmra.mxu0 %vm2506_vm7, %v2454_v52  ;;  %v1964_v56 = vpop.permute.xlu0 %1963  ;;  %v1966_v51 = vpop.permute.xlu1 %1965  ;;  %v566_v20 = vadd.s32 456, %v6153_v4  ;;  %v9175_v55 = vrot.slane %v7023_v60, 1 }
  0xec   : > { %v2390_v52 = vsel %vm2367_vm4, %v1556_v36, %v1964_v56  ;;  %v2391_v48 = vsel %vm2367_vm4, %v1446_v44, %v1966_v51  ;;  %v1445_v56 = vsel %vm1405_vm6, %v1364_v45, %v1365_v58  ;;  %v1676_v44 = vsel %vm1662_vm1, %v1647_v8, %v9014_v10 }
  0xed   : > { %2283 = vrot.lane.b32.xlu0 %v1671_v46, %s9077_s22  ;;  %2285 = vrot.lane.b32.xlu1 %v1846_v37, %s9077_s22  ;;  %v1366_v46 = vrot.slane %v6528_v22, 7  ;;  %v7159_v22 = vadd.s32 208, %v6153_v4  ;;  %v1677_v36 = vsel %vm1662_vm1, %v9175_v55, %v1647_v8  ;;  %vm7172_vm9 = vcmp.ge.s32.totalorder %v920_v27, 15 }
  0xee   : > { %v1367_v8 = vrot.slane %v6531_v24, 7  ;;  %v1840_v27 = vsel %vm7172_vm9, 0.0, %v1676_v44  ;;  %v1368_v24 = vrot.slane %v6550_v49, 7  ;;  %v9182_v49 = vrot.slane %v7044_v35, 1 }
  0xef   : > { %v2220_v42 = vpop.permute.xlu0 %2219  ;;  %v2222_v53 = vpop.permute.xlu1 %2221  ;;  %v1444_v55 = vsel %vm1405_vm6, %v1365_v58, %v1366_v46 }
  0xf0   : > { %v2455_v37 = vsel %vm2432_vm5, %v2390_v52, %v2220_v42  ;;  %v2456_v0 = vsel %vm2432_vm5, %v2391_v48, %v2222_v53  ;;  %v1655_v52 = vrot.slane %v7143_v1, 1  ;;  %v976_v42 = vand.u32 15, %v566_v20 }
  0xf1   : > { %2015 = vrot.lane.b32.xlu0 %v7023_v60, %s6017_s21  ;;  %2017 = vrot.lane.b32.xlu1 %v7120_v57, %s6017_s21  ;;  %v9015_v53 = vrot.slane %v7146_v30, 1 }
  0xf2   : > { %5730 = vmatprep.mubr.msk.f32.mxu0 %vm2506_vm7, %v2455_v37  ;;  %v1558_v37 = vsel %vm7154_vm8, 0.0, %v1445_v56  ;;  %vm7194_vm10 = vcmp.ge.s32.totalorder %v976_v42, 15  ;;  %v7211_v42 = vadd.s32 224, %v6153_v4 }
  0xf3   : > { %5731 = vmatmul.mubr.msk.f32.gmra.mxu0 %vm2506_vm7, %v2456_v0  ;;  %v1968_v45 = vpop.permute.xlu0 %1967  ;;  %v1970_v43 = vpop.permute.xlu1 %1969  ;;  %v759_v0 = vand.u32 15, %v7159_v22  ;;  %v1668_v58 = vsel %vm1662_vm1, %v1655_v52, %v9015_v53  ;;  %v7241_v53 = vld [vmem:[%s6161_s17 + $0x1d8] sm:$0xff] }
  0xf4   : > { %v2392_v20 = vsel %vm2367_vm4, %v1558_v37, %v1968_v45  ;;  %v2393_v51 = vsel %vm2367_vm4, %v1444_v55, %v1970_v43  ;;  %v1443_v43 = vsel %vm1405_vm6, %v1366_v46, %v1367_v8  ;;  %v1848_v37 = vsel %vm7194_vm10, 0.0, %v1668_v58 }
  0xf5   : > { %2031 = vrot.lane.b32.xlu0 %v7044_v35, %s6017_s21  ;;  %2271 = vrot.lane.b32.xlu1 %v1677_v36, %s9077_s22  ;;  %vm7206_vm11 = vcmp.lt.s32.totalorder %v759_v0, 1  ;;  %v7222_v0 = vld [vmem:[%s6161_s17 + $0x198] sm:$0xff] }
  0xf6   : > { %v1649_v58 = vrot.slane %v7222_v0, 1 }
  0xf7   : > { %v2224_v56 = vpop.permute.xlu0 %2223  ;;  %v2226_v10 = vpop.permute.xlu1 %2225 }
  0xf8   : > { %v2457_v44 = vsel %vm2432_vm5, %v2392_v20, %v2224_v56  ;;  %v2458_v45 = vsel %vm2432_vm5, %v2393_v51, %v2226_v10  ;;  %v1669_v10 = vsel %vm1662_vm1, %v9182_v49, %v1655_v52  ;;  %v1560_v20 = vsel %vm7206_vm11, 0.0, %v1443_v43 }
  0xf9   : > { %2033 = vrot.lane.b32.xlu0 %v7143_v1, %s6017_s21  ;;  %2273 = vrot.lane.b32.xlu1 %v1840_v27, %s9077_s22  ;;  %v560_v27 = vadd.s32 408, %v6153_v4  ;;  %v1442_v51 = vsel %vm1405_vm6, %v1367_v8, %v1368_v24  ;;  %v773_v52 = vand.u32 15, %v7211_v42  ;;  %v1369_v56 = vrot.slane %v6553_v50, 7  ;;  %v7244_v50 = vld [vmem:[%s6161_s17 + $0x1e0] sm:$0xff] }
  0xfa   : > { %5733 = vmatprep.mubr.msk.f32.mxu0 %vm2506_vm7, %v2457_v44  ;;  %v568_v8 = vadd.s32 472, %v6153_v4  ;;  %v1370_v49 = vrot.slane %v6572_v14, 7  ;;  %v7257_v14 = vadd.s32 240, %v6153_v4 }
  0xfb   : > { %5734 = vmatmul.mubr.msk.f32.gmra.mxu0 %vm2506_vm7, %v2458_v45  ;;  %v1972_v46 = vpop.permute.xlu0 %1971  ;;  %v1974_v55 = vpop.permute.xlu1 %1973  ;;  %v934_v48 = vand.u32 15, %v560_v27  ;;  %vm7252_vm12 = vcmp.lt.s32.totalorder %v773_v52, 1  ;;  %v9186_v27 = vrot.slane %v7123_v38, 1 }
  0xfc   : > { %v2394_v36 = vsel %vm2367_vm4, %v1560_v20, %v1972_v46  ;;  %v2395_v44 = vsel %vm2367_vm4, %v1442_v51, %v1974_v55  ;;  %v1441_v46 = vsel %vm1405_vm6, %v1368_v24, %v1369_v56  ;;  %9185 = vst [vmem:[#allocation30_spill] sm:$0xff] %v7257_v14  ;;  %v9187_v51 = vrot.slane %v6963_v34, 1 }
  0xfd   : > { %2287 = vrot.lane.b32.xlu0 %v1669_v10, %s9077_s22  ;;  %2289 = vrot.lane.b32.xlu1 %v1848_v37, %s9077_s22  ;;  %v1675_v20 = vsel %vm1662_vm1, %v9186_v27, %v1649_v58  ;;  %vm7270_vm13 = vcmp.ge.s32.totalorder %v934_v48, 15  ;;  %v1562_v27 = vsel %vm7252_vm12, 0.0, %v1441_v46  ;;  %v787_v48 = vand.u32 15, %v7257_v14 }
  0xff   : > { %v2228_v45 = vpop.permute.xlu0 %2227  ;;  %v2230_v43 = vpop.permute.xlu1 %2229  ;;  %vm7309_vm15 = vcmp.lt.s32.totalorder %v787_v48, 1 }
 0x100   : > { %v2459_v10 = vsel %vm2432_vm5, %v2394_v36, %v2228_v45  ;;  %v2460_v37 = vsel %vm2432_vm5, %v2395_v44, %v2230_v43  ;;  %v1674_v36 = vsel %vm1662_vm1, %v1649_v58, %v9187_v51  ;;  %v1657_v44 = vrot.slane %v7241_v53, 1 }
 0x101   : > { %2019 = vrot.lane.b32.xlu0 %v7123_v38, %s6017_s21  ;;  %2021 = vrot.lane.b32.xlu1 %v7222_v0, %s6017_s21  ;;  %v990_v43 = vand.u32 15, %v568_v8  ;;  %v1440_v58 = vsel %vm1405_vm6, %v1369_v56, %v1370_v49  ;;  %v1842_v8 = vsel %vm7270_vm13, 0.0, %v1674_v36  ;;  %v7298_v36 = vld [vmem:[%s6161_s17 + $0x1e8] sm:$0xff] }
 0x102   : > { %5736 = vmatprep.mubr.msk.f32.mxu0 %vm2506_vm7, %v2459_v10  ;;  %v1658_v10 = vrot.slane %v7244_v50, 1  ;;  %v1659_v48 = vrot.slane %v7298_v36, 1 }
 0x103   : > { %5737 = vmatmul.mubr.msk.f32.gmra.mxu0 %vm2506_vm7, %v2460_v37  ;;  %v1976_v24 = vpop.permute.xlu0 %1975  ;;  %v1978_v52 = vpop.permute.xlu1 %1977  ;;  %v1371_v37 = vrot.slane %v6575_v16, 7  ;;  %vm7290_vm14 = vcmp.ge.s32.totalorder %v990_v43, 15 }
 0x104   : > { %v2396_v55 = vsel %vm2367_vm4, %v1562_v27, %v1976_v24  ;;  %v2397_v46 = vsel %vm2367_vm4, %v1440_v58, %v1978_v52  ;;  %v1666_v56 = vsel %vm1662_vm1, %v1657_v44, %v1658_v10  ;;  %v7301_v24 = vld [vmem:[%s6161_s17 + $0x1f0] sm:$0xff]  ;;  %v570_v52 = vadd.s32 488, %v6153_v4 }
 0x105   : > { %2035 = vrot.lane.b32.xlu0 %v7146_v30, %s6017_s21  ;;  %2275 = vrot.lane.b32.xlu1 %v1675_v20, %s9077_s22  ;;  %v1372_v20 = vrot.slane %v6603_v3, 7  ;;  %v1439_v43 = vsel %vm1405_vm6, %v1370_v49, %v1371_v37  ;;  %v9194_v27 = vrot.slane %v7146_v30, 1 }
 0x106   : > { %v1004_v14 = vand.u32 15, %v570_v52 }
 0x107   : > { %v2232_v51 = vpop.permute.xlu0 %2231  ;;  %v2234_v40 = vpop.permute.xlu1 %2233  ;;  %v1667_v58 = vsel %vm1662_vm1, %v9194_v27, %v1657_v44  ;;  %v1373_v44 = vrot.slane %v6606_v11, 7  ;;  %v572_v11 = vadd.s32 504, %v6153_v4 }
 0x108   : > { %v2461_v16 = vsel %vm2432_vm5, %v2396_v55, %v2232_v51  ;;  %v2462_v45 = vsel %vm2432_vm5, %v2397_v46, %v2234_v40  ;;  %v541_v40 = vadd.s32 256, %v6153_v4  ;;  %v1850_v55 = vsel %vm7290_vm14, 0.0, %v1666_v56 }
 0x109   : > { %2037 = vrot.lane.b32.xlu0 %v7241_v53, %s6017_s21  ;;  %2277 = vrot.lane.b32.xlu1 %v1842_v8, %s9077_s22  ;;  %v1660_v46 = vrot.slane %v7301_v24, 1  ;;  %v1564_v51 = vsel %vm7309_vm15, 0.0, %v1439_v43  ;;  %v1374_v56 = vrot.slane %v6645_v18, 7  ;;  %vm7338_vm0 = vcmp.ge.s32.totalorder %v1004_v14, 15 }
 0x10a   : > { %5739 = vmatprep.mubr.msk.f32.mxu0 %vm2506_vm7, %v2461_v16  ;;  %v1438_v16 = vsel %vm1405_vm6, %v1371_v37, %v1372_v20  ;;  %v801_v23 = vand.u32 15, %v541_v40  ;;  %v1437_v18 = vsel %vm1405_vm6, %v1372_v20, %v1373_v44  ;;  %v1665_v14 = vsel %vm1662_vm1, %v1658_v10, %v1659_v48  ;;  %v5951_v40 = vld [vmem:[%s6161_s17 + $0x1f8] sm:$0xff]  ;;  %s9341_s17 = smov 32  }
 0x10b   : > { %5740 = vmatmul.mubr.msk.f32.gmra.mxu0 %vm2506_vm7, %v2462_v45  ;;  %v1980_v8 = vpop.permute.xlu0 %1979  ;;  %v1982_v49 = vpop.permute.xlu1 %1981  ;;  %v1664_v43 = vsel %vm1662_vm1, %v1659_v48, %v1660_v46  ;;  %v1376_v10 = vrot.slane %v6690_v19, 7 }
 0x10c   : > { %v2398_v45 = vsel %vm2367_vm4, %v1564_v51, %v1980_v8  ;;  %v2399_v27 = vsel %vm2367_vm4, %v1438_v16, %v1982_v49  ;;  %vm7348_vm2 = vcmp.lt.s32.totalorder %v801_v23, 1  ;;  %v1852_v49 = vsel %vm7338_vm0, 0.0, %v1664_v43 }
 0x10d   : > { %2291 = vrot.lane.b32.xlu0 %v1667_v58, %s9077_s22  ;;  %2293 = vrot.lane.b32.xlu1 %v1850_v55, %s9077_s22  ;;  %v1566_v20 = vsel %vm7348_vm2, 0.0, %v1437_v18  ;;  %v1436_v51 = vsel %vm1405_vm6, %v1373_v44, %v1374_v56  ;;  %v1661_v16 = vrot.slane %v6584_v28, 1  ;;  %v1018_v23 = vand.u32 15, %v572_v11 }
 0x10e   : > { %v9199_v58 = vrot.slane %v6171_v9, 1  ;;  %v545_v9 = vadd.s32 288, %v6153_v4 }
 0x10f   : > { %v2236_v12 = vpop.permute.xlu0 %2235  ;;  %v2238_v3 = vpop.permute.xlu1 %2237  ;;  %vm7377_vm3 = vcmp.ge.s32.totalorder %v1018_v23, 15 }
 0x110   : > { %v2463_v37 = vsel %vm2432_vm5, %v2398_v45, %v2236_v12  ;;  %v2464_v52 = vsel %vm2432_vm5, %v2399_v27, %v2238_v3  ;;  %v543_v12 = vadd.s32 272, %v6153_v4  ;;  %v1375_v27 = vrot.slane %v6648_v39, 7 }
 0x111   : > { %2039 = vrot.lane.b32.xlu0 %v7244_v50, %s6017_s21  ;;  %5742 = vmatprep.mubr.msk.f32.mxu0 %vm2506_vm7, %v2463_v37  ;;  %v1726_v39 = vsel %vm1662_vm1, %v1661_v16, %v9199_v58 }
 0x112   : > { %2041 = vrot.lane.b32.xlu1 %v7298_v36, %s6017_s21  ;;  %5743 = vmatmul.mubr.msk.f32.gmra.mxu0 %vm2506_vm7, %v2464_v52  ;;  %v815_v45 = vand.u32 15, %v543_v12  ;;  %v1435_v19 = vsel %vm1405_vm6, %v1374_v56, %v1375_v27  ;;  %v1663_v12 = vsel %vm1662_vm1, %v1660_v46, %v1661_v16 }
 0x113   : > { %v1984_v55 = vpop.permute.xlu0 %1983  ;;  %v1986_v8 = vpop.permute.xlu1 %1985 }
 0x114   : > { %v2400_v48 = vsel %vm2367_vm4, %v1566_v20, %v1984_v55  ;;  %v2401_v3 = vsel %vm2367_vm4, %v1436_v51, %v1986_v8  ;;  %vm7386_vm8 = vcmp.lt.s32.totalorder %v815_v45, 1  ;;  %v1854_v8 = vsel %vm7377_vm3, 0.0, %v1726_v39 }
 0x115   : > { %2295 = vrot.lane.b32.xlu0 %v1665_v14, %s9077_s22  ;;  %v1568_v56 = vsel %vm7386_vm8, 0.0, %v1435_v19  ;;  %v829_v20 = vand.u32 15, %v545_v9  ;;  %v1377_v51 = vrot.slane %v6693_v59, 7  ;;  %v547_v59 = vadd.s32 304, %v6153_v4 }
 0x116   : > { %2297 = vrot.lane.b32.xlu1 %v1852_v49, %s9077_s22  ;;  %v1434_v49 = vsel %vm1405_vm6, %v1375_v27, %v1376_v10  ;;  %v1379_v39 = vrot.slane %v6736_v2, 7  ;;  %v1380_v9 = vrot.slane %v6776_v26, 7  ;;  %v549_v2 = vadd.s32 320, %v6153_v4 }
 0x117   : > { %v2240_v43 = vpop.permute.xlu0 %2239  ;;  %v2242_v37 = vpop.permute.xlu1 %2241  ;;  %v1433_v27 = vsel %vm1405_vm6, %v1376_v10, %v1377_v51  ;;  %vm1506_vm9 = vcmp.lt.s32.totalorder %v829_v20, 1  ;;  %v843_v58 = vand.u32 15, %v547_v59  ;;  %v1381_v20 = vrot.slane %v6779_v13, 7 }
 0x118   : > { %v2465_v44 = vsel %vm2432_vm5, %v2400_v48, %v2240_v43  ;;  %v2466_v52 = vsel %vm2432_vm5, %v2401_v3, %v2242_v37  ;;  %v1378_v48 = vrot.slane %v6733_v15, 7  ;;  %v1430_v26 = vsel %vm1405_vm6, %v1379_v39, %v1380_v9 }
 0x119   : > { %2043 = vrot.lane.b32.xlu0 %v7301_v24, %s6017_s21  ;;  %5745 = vmatprep.mubr.msk.f32.mxu0 %vm2506_vm7, %v2465_v44  ;;  %vm1508_vm10 = vcmp.lt.s32.totalorder %v843_v58, 1  ;;  %v551_v13 = vadd.s32 336, %v6153_v4 }
 0x11a   : > { %2045 = vrot.lane.b32.xlu1 %v5951_v40, %s6017_s21  ;;  %5746 = vmatmul.mubr.msk.f32.gmra.mxu0 %vm2506_vm7, %v2466_v52  ;;  %v1570_v52 = vsel %vm1506_vm9, 0.0, %v1433_v27  ;;  %v1432_v15 = vsel %vm1405_vm6, %v1377_v51, %v1378_v48  ;;  %s9342_s21 = smov 48  }
 0x11b   : > { %v1988_v14 = vpop.permute.xlu0 %1987  ;;  %v1990_v55 = vpop.permute.xlu1 %1989 }
 0x11c   : > { %v2402_v46 = vsel %vm2367_vm4, %v1568_v56, %v1988_v14  ;;  %v2403_v16 = vsel %vm2367_vm4, %v1434_v49, %v1990_v55  ;;  %v1431_v14 = vsel %vm1405_vm6, %v1378_v48, %v1379_v39  ;;  %v857_v49 = vand.u32 15, %v549_v2 }
 0x11d   : > { %2299 = vrot.lane.b32.xlu0 %v1663_v12, %s9077_s22  ;;  %v1572_v56 = vsel %vm1508_vm10, 0.0, %v1431_v14 }
 0x11e   : > { %2301 = vrot.lane.b32.xlu1 %v1854_v8, %s9077_s22  ;;  %vm1510_vm11 = vcmp.lt.s32.totalorder %v857_v49, 1 }
 0x11f   : > { %v2244_v23 = vpop.permute.xlu0 %2243  ;;  %v2246_v45 = vpop.permute.xlu1 %2245 }
 0x120   : > { %v2467_v3 = vsel %vm2432_vm5, %v2402_v46, %v2244_v23  ;;  %v2468_v43 = vsel %vm2432_vm5, %v2403_v16, %v2246_v45  ;;  %v1382_v45 = vrot.slane %v6819_v33, 7 }
 0x121   : > { %5748 = vmatprep.mubr.msk.f32.mxu0 %vm2506_vm7, %v2467_v3 }
 0x122   : > { %5749 = vmatmul.mubr.msk.f32.gmra.mxu0 %vm2506_vm7, %v2468_v43  ;;  %v1429_v43 = vsel %vm1405_vm6, %v1380_v9, %v1381_v20  ;;  %v1428_v33 = vsel %vm1405_vm6, %v1381_v20, %v1382_v45 }
 0x123   : > { %v1992_v37 = vpop.permute.xlu0 %1991  ;;  %v1994_v44 = vpop.permute.xlu1 %1993 }
 0x124   : > { %v2404_v11 = vsel %vm2367_vm4, %v1570_v52, %v1992_v37  ;;  %v2405_v19 = vsel %vm2367_vm4, %v1432_v15, %v1994_v44  ;;  %v1574_v37 = vsel %vm1510_vm11, 0.0, %v1429_v43  ;;  %v871_v44 = vand.u32 15, %v551_v13 }
 0x125   : > { %v1383_v52 = vrot.slane %v6822_v25, 7  ;;  %v553_v25 = vadd.s32 352, %v6153_v4  ;;  %v1392_v43 = vrot.slane %v7222_v0, 7 }
 0x126   : > { %vm1512_vm12 = vcmp.lt.s32.totalorder %v871_v44, 1 }
 0x127   : > { %v2248_v18 = vpop.permute.xlu0 %2247  ;;  %v2250_v10 = vpop.permute.xlu1 %2249  ;;  %v1427_v9 = vsel %vm1405_vm6, %v1382_v45, %v1383_v52  ;;  %v885_v2 = vand.u32 15, %v553_v25  ;;  %v1386_v45 = vrot.slane %v6924_v62, 7 }
 0x128   : > { %v2469_v40 = vsel %vm2432_vm5, %v2404_v11, %v2248_v18  ;;  %v2470_v12 = vsel %vm2432_vm5, %v2405_v19, %v2250_v10  ;;  %v1384_v19 = vrot.slane %v6865_v6, 7  ;;  %v1576_v14 = vsel %vm1512_vm12, 0.0, %v1427_v9 }
 0x129   : > { %5751 = vmatprep.mubr.msk.f32.mxu0 %vm2506_vm7, %v2469_v40  ;;  %vm1514_vm13 = vcmp.lt.s32.totalorder %v885_v2, 1 }
 0x12a   : > { %5752 = vmatmul.mubr.msk.f32.gmra.mxu0 %vm2506_vm7, %v2470_v12  ;;  %v1426_v6 = vsel %vm1405_vm6, %v1383_v52, %v1384_v19 }
 0x12b   : > { %v1996_v55 = vpop.permute.xlu0 %1995  ;;  %v1998_v8 = vpop.permute.xlu1 %1997 }
 0x12c   : > { %v2406_v51 = vsel %vm2367_vm4, %v1572_v56, %v1996_v55  ;;  %v2407_v46 = vsel %vm2367_vm4, %v1430_v26, %v1998_v8  ;;  %v1385_v55 = vrot.slane %v6868_v29, 7 }
 0x12e   : > { %v1424_v44 = vsel %vm1405_vm6, %v1385_v55, %v1386_v45 }
 0x12f   : > { %v2252_v16 = vpop.permute.xlu0 %2251  ;;  %v2254_v23 = vpop.permute.xlu1 %2253 }
 0x130   : > { %v2471_v48 = vsel %vm2432_vm5, %v2406_v51, %v2252_v16  ;;  %v2472_v3 = vsel %vm2432_vm5, %v2407_v46, %v2254_v23  ;;  %v1425_v46 = vsel %vm1405_vm6, %v1384_v19, %v1385_v55  ;;  %v561_v16 = vadd.s32 416, %v6153_v4 }
 0x131   : > { %5754 = vmatprep.mubr.msk.f32.mxu0 %vm2506_vm7, %v2471_v48  ;;  %v1578_v48 = vsel %vm1514_vm13, 0.0, %v1425_v46  ;;  %v563_v55 = vadd.s32 432, %v6153_v4 }
 0x132   : > { %5755 = vmatmul.mubr.msk.f32.gmra.mxu0 %vm2506_vm7, %v2472_v3  ;;  %v1393_v3 = vrot.slane %v6963_v34, 7  ;;  %v941_v13 = vand.u32 15, %v561_v16  ;;  %v555_v34 = vadd.s32 368, %v6153_v4 }
 0x133   : > { %v2000_v27 = vpop.permute.xlu0 %1999  ;;  %v2002_v59 = vpop.permute.xlu1 %2001 }
 0x134   : > { %v2408_v15 = vsel %vm2367_vm4, %v1574_v37, %v2000_v27  ;;  %v2409_v58 = vsel %vm2367_vm4, %v1428_v33, %v2002_v59  ;;  %v1394_v33 = vrot.slane %v6942_v47, 7  ;;  %v1417_v62 = vsel %vm1405_vm6, %v1392_v43, %v1393_v3 }
 0x135   : > { %vm1522_vm14 = vcmp.lt.s32.totalorder %v941_v13, 1 }
 0x136   : > { %v1586_v47 = vsel %vm1522_vm14, 0.0, %v1417_v62 }
 0x137   : > { %v2256_v39 = vpop.permute.xlu0 %2255  ;;  %v2258_v11 = vpop.permute.xlu1 %2257 }
 0x138   : > { %v2473_v18 = vsel %vm2432_vm5, %v2408_v15, %v2256_v39  ;;  %v2474_v10 = vsel %vm2432_vm5, %v2409_v58, %v2258_v11  ;;  %v1416_v11 = vsel %vm1405_vm6, %v1393_v3, %v1394_v33 }
 0x139   : > { %5757 = vmatprep.mubr.msk.f32.mxu0 %vm2506_vm7, %v2473_v18  ;;  %v899_v18 = vand.u32 15, %v555_v34  ;;  %v1389_v34 = vrot.slane %v7023_v60, 7 }
 0x13a   : > { %5758 = vmatmul.mubr.msk.f32.gmra.mxu0 %vm2506_vm7, %v2474_v10  ;;  %v1387_v10 = vrot.slane %v6927_v61, 7 }
 0x13b   : > { %v2004_v40 = vpop.permute.xlu0 %2003  ;;  %v2006_v12 = vpop.permute.xlu1 %2005  ;;  %vm1516_vm15 = vcmp.lt.s32.totalorder %v899_v18, 1 }
 0x13c   : > { %v2410_v8 = vsel %vm2367_vm4, %v1576_v14, %v2004_v40  ;;  %v2411_v56 = vsel %vm2367_vm4, %v1426_v6, %v2006_v12  ;;  %v1423_v2 = vsel %vm1405_vm6, %v1386_v45, %v1387_v10 }
 0x13f   : > { %v2260_v26 = vpop.permute.xlu0 %2259  ;;  %v2262_v49 = vpop.permute.xlu1 %2261 }
 0x140   : > { %v2475_v20 = vsel %vm2432_vm5, %v2410_v8, %v2260_v26  ;;  %v2476_v51 = vsel %vm2432_vm5, %v2411_v56, %v2262_v49  ;;  %v1388_v56 = vrot.slane %v7020_v63, 7  ;;  %v1580_v26 = vsel %vm1516_vm15, 0.0, %v1423_v2 }
 0x141   : > { %5760 = vmatprep.mubr.msk.f32.mxu0 %vm2506_vm7, %v2475_v20  ;;  %v955_v49 = vand.u32 15, %v563_v55  ;;  %v1395_v20 = vrot.slane %v6948_v32, 7  ;;  %v557_v32 = vadd.s32 384, %v6153_v4 }
 0x142   : > { %5761 = vmatmul.mubr.msk.f32.gmra.mxu0 %vm2506_vm7, %v2476_v51 }
 0x143   : > { %v2008_v29 = vpop.permute.xlu0 %2007  ;;  %v2010_v23 = vpop.permute.xlu1 %2009  ;;  %vm7504_vm0 = vcmp.lt.s32.totalorder %v955_v49, 1  ;;  %v913_v62 = vand.u32 15, %v557_v32 }
 0x144   : > { %v2412_v27 = vsel %vm2367_vm4, %v1578_v48, %v2008_v29  ;;  %v2413_v15 = vsel %vm2367_vm4, %v1424_v44, %v2010_v23  ;;  %v1396_v29 = vrot.slane %v7038_v21, 7  ;;  %v1422_v23 = vsel %vm1405_vm6, %v1387_v10, %v1388_v56 }
 0x145   : > { %v1415_v48 = vsel %vm1405_vm6, %v1394_v33, %v1395_v20  ;;  %v7519_v33 = vld [vmem:[%s8958_s2] ss:$0 sm:$0xff]  ;;  %vm7545_vm2 = vcmp.lt.s32.totalorder %v913_v62, 1 }
 0x147   : > { %v2024_v59 = vpop.permute.xlu0 %2023  ;;  %v2264_v37 = vpop.permute.xlu1 %2263 }
 0x148   : > { %v2477_v52 = vsel %vm2432_vm5, %v2412_v27, %v2264_v37  ;;  %v2420_v9 = vsel %vm2367_vm4, %v1586_v47, %v2024_v59  ;;  %v1588_v27 = vsel %vm7504_vm0, 0.0, %v1415_v48  ;;  %v1414_v59 = vsel %vm1405_vm6, %v1395_v20, %v1396_v29 }
 0x149   : > { %5763 = vmatprep.mubr.msk.f32.mxu0 %vm2506_vm7, %v2477_v52  ;;  %v7525_v52 = vld [vmem:[%s8959_s3] ss:$0 sm:$0xff]  ;;  %v1398_v48 = vrot.slane %v7143_v1, 7  ;;  %v1401_v1 = vrot.slane %v7244_v50, 7 }
 0x14b   : > { %v2026_v58 = vpop.permute.xlu0 %2025  ;;  %v2266_v39 = vpop.permute.xlu1 %2265 }
 0x14c   : > { %v2478_v19 = vsel %vm2432_vm5, %v2413_v15, %v2266_v39  ;;  %v2421_v25 = vsel %vm2367_vm4, %v1416_v11, %v2026_v58 }
 0x14d   : > { %5764 = vmatmul.mubr.msk.f32.gmra.mxu0 %vm2506_vm7, %v2478_v19  ;;  %v7534_v19 = vld [vmem:[%s8960_s4] ss:$0 sm:$0xff] }
 0x14f   : > { %v2280_v40 = vpop.permute.xlu0 %2279  ;;  %v2282_v12 = vpop.permute.xlu1 %2281 }
 0x150   : > { %v2486_v14 = vsel %vm2432_vm5, %v2421_v25, %v2282_v12  ;;  %v2485_v6 = vsel %vm2432_vm5, %v2420_v9, %v2280_v40  ;;  %v565_v40 = vadd.s32 448, %v6153_v4  ;;  %v1421_v12 = vsel %vm1405_vm6, %v1388_v56, %v1389_v34 }
 0x151   : > { %5775 = vmatprep.mubr.msk.f32.mxu1 %vm2506_vm7, %v2485_v6  ;;  %v1582_v56 = vsel %vm7545_vm2, 0.0, %v1421_v12 }
 0x152   : > { %5776 = vmatmul.mubr.msk.f32.vlgmr.msra.gmra.mxu1 %vm2506_vm7, %v2486_v14 }
 0x153   : > { %v2012_v61 = vpop.permute.xlu0 %2011  ;;  %v2014_v8 = vpop.permute.xlu1 %2013 }
 0x154   : > { %v2414_v51 = vsel %vm2367_vm4, %v1580_v26, %v2012_v61  ;;  %v2415_v3 = vsel %vm2367_vm4, %v1422_v23, %v2014_v8  ;;  %v1390_v8 = vrot.slane %v7120_v57, 7 }
 0x157   : > { %v2028_v46 = vpop.permute.xlu0 %2027  ;;  %v2268_v16 = vpop.permute.xlu1 %2267 }
 0x158   : > { %v2479_v45 = vsel %vm2432_vm5, %v2414_v51, %v2268_v16  ;;  %v2422_v15 = vsel %vm2367_vm4, %v1588_v27, %v2028_v46  ;;  %v969_v46 = vand.u32 15, %v565_v40  ;;  %v1397_v16 = vrot.slane %v7044_v35, 7 }
 0x159   : > { %5766 = vmatprep.mubr.msk.f32.mxu0 %vm2506_vm7, %v2479_v45 }
 0x15a   : > { %v1413_v35 = vsel %vm1405_vm6, %v1396_v29, %v1397_v16  ;;  %vm7569_vm3 = vcmp.lt.s32.totalorder %v969_v46, 1 }
 0x15b   : > { %v2030_v13 = vpop.permute.xlu0 %2029  ;;  %v2270_v21 = vpop.permute.xlu1 %2269  ;;  %v1590_v29 = vsel %vm7569_vm3, 0.0, %v1413_v35 }
 0x15c   : > { %v2480_v37 = vsel %vm2432_vm5, %v2415_v3, %v2270_v21  ;;  %v2423_v58 = vsel %vm2367_vm4, %v1414_v59, %v2030_v13  ;;  %v1420_v21 = vsel %vm1405_vm6, %v1389_v34, %v1390_v8 }
 0x15d   : > { %5767 = vmatmul.mubr.msk.f32.gmra.mxu0 %vm2506_vm7, %v2480_v37 }
 0x15e   : > { %v5699_v44 = vpop.f32.mrf.mxu0 }
 0x15f   : > { %v2775_v39 = vadd.f32 %v5699_v44, %v7519_v33  ;;  %v2284_v47 = vpop.permute.xlu0 %2283  ;;  %v2286_v11 = vpop.permute.xlu1 %2285  ;;  %v559_v44 = vadd.s32 400, %v6153_v4 }
 0x160   : > { %v2487_v18 = vsel %vm2432_vm5, %v2422_v15, %v2284_v47  ;;  %v2488_v10 = vsel %vm2432_vm5, %v2423_v58, %v2286_v11  ;;  %v2769_v9 = vpop.f32.mrf.mxu0  ;;  %v1412_v47 = vsel %vm1405_vm6, %v1397_v16, %v1398_v48 }
 0x161   : > { %v3096_v60 = vmul.f32 %v7525_v52, %v2775_v39  ;;  %v2770_v25 = vadd.f32 %v7519_v33, %v2769_v9  ;;  %5778 = vmatprep.mubr.msk.f32.mxu1 %vm2506_vm7, %v2487_v18 }
 0x162   : > { %5779 = vmatmul.mubr.msk.f32.gmra.mxu1 %vm2506_vm7, %v2488_v10 }
 0x163   : > { %v3167_v6 = vadd.f32 %v7534_v19, %v3096_v60  ;;  %v3095_v2 = vmul.f32 %v7525_v52, %v2770_v25  ;;  %v5702_v55 = vpop.f32.mrf.mxu0  ;;  %v2016_v61 = vpop.permute.xlu0 %2015  ;;  %v927_v60 = vand.u32 15, %v559_v44  ;;  %v1391_v25 = vrot.slane %v7123_v38, 7 }
 0x164   : > { %v2785_v26 = vadd.f32 %v5702_v55, %v7519_v33  ;;  %v2018_v49 = vpop.permute.xlu1 %2017  ;;  %v2416_v32 = vsel %vm2367_vm4, %v1582_v56, %v2016_v61  ;;  %v3528_v44 = vand.u32 7, %v6156_v5 }
 0x165   : > { %3231 = vst.msk [vmem:[#allocation2 + $0x8] sm:$0xff] %vm2432_vm5, %v3167_v6  ;;  %v3166_v20 = vadd.f32 %v7534_v19, %v3095_v2  ;;  %v2779_v51 = vpop.f32.mrf.mxu0  ;;  %v2417_v34 = vsel %vm2367_vm4, %v1420_v21, %v2018_v49  ;;  %v1419_v16 = vsel %vm1405_vm6, %v1390_v8, %v1391_v25  ;;  %vm7605_vm8 = vcmp.lt.s32.totalorder %v927_v60, 1 }
 0x166   : > { %v3098_v23 = vmul.f32 %v7525_v52, %v2785_v26  ;;  %v2780_v45 = vadd.f32 %v7519_v33, %v2779_v51  ;;  %v567_v51 = vadd.s32 464, %v6153_v4  ;;  %v1584_v27 = vsel %vm7605_vm8, 0.0, %v1419_v16 }
 0x167   : > { %3230 = vst.msk [vmem:[#allocation2] sm:$0xff] %vm2432_vm5, %v3166_v20  ;;  %v2032_v57 = vpop.permute.xlu0 %2031  ;;  %vm7643_vm10 = vcmp.lt.s32.totalorder %v3528_v44, 1 }
 0x168   : > { %v3169_v63 = vadd.f32 %v7534_v19, %v3098_v23  ;;  %v3097_v3 = vmul.f32 %v7525_v52, %v2780_v45  ;;  %v2272_v13 = vpop.permute.xlu1 %2271  ;;  %v2424_v14 = vsel %vm2367_vm4, %v1590_v29, %v2032_v57  ;;  %v1400_v29 = vrot.slane %v7241_v53, 7 }
 0x169   : > { %v2481_v59 = vsel %vm2432_vm5, %v2416_v32, %v2272_v13  ;;  %v1402_v23 = vrot.slane %v7298_v36, 7 }
 0x16a   : > { %3233 = vst.msk [vmem:[#allocation2 + $0x18] sm:$0xff] %vm2432_vm5, %v3169_v63  ;;  %v3168_v37 = vadd.f32 %v7534_v19, %v3097_v3  ;;  %5769 = vmatprep.mubr.msk.f32.mxu0 %vm2506_vm7, %v2481_v59  ;;  %v983_v59 = vand.u32 15, %v567_v51 }
 0x16b   : > { %v5705_v62 = vpop.f32.mrf.mxu0  ;;  %v2034_v15 = vpop.permute.xlu0 %2033 }
 0x16c   : > { %3232 = vst.msk [vmem:[#allocation2 + $0x10] sm:$0xff] %vm2432_vm5, %v3168_v37  ;;  %v2795_v58 = vadd.f32 %v5705_v62, %v7519_v33  ;;  %v2274_v39 = vpop.permute.xlu1 %2273  ;;  %v2425_v61 = vsel %vm2367_vm4, %v1412_v47, %v2034_v15  ;;  %v1399_v37 = vrot.slane %v7146_v30, 7  ;;  %v569_v47 = vadd.s32 480, %v6153_v4 }
 0x16d   : > { %v2482_v11 = vsel %vm2432_vm5, %v2417_v34, %v2274_v39  ;;  %v2789_v18 = vpop.f32.mrf.mxu0  ;;  %vm7636_vm9 = vcmp.lt.s32.totalorder %v983_v59, 1 }
 0x16e   : > { %v3100_v10 = vmul.f32 %v7525_v52, %v2795_v58  ;;  %v2790_v9 = vadd.f32 %v7519_v33, %v2789_v18  ;;  %5770 = vmatmul.mubr.msk.f32.gmra.mxu0 %vm2506_vm7, %v2482_v11  ;;  %v3294_v40 = vld [vmem:[#allocation2] ss:$2 sm:$0xff]  ;;  %v3358_v12 = vld [vmem:[#allocation2 + $0x1] ss:$2 sm:$0xff]  ;;  %v1418_v58 = vsel %vm1405_vm6, %v1391_v25, %v1392_v43  ;;  %v1411_v53 = vsel %vm1405_vm6, %v1398_v48, %v1399_v37 }
 0x16f   : > { %v2288_v6 = vpop.permute.xlu0 %2287  ;;  %v3421_v2 = vmax.f32 %v3294_v40, %v3358_v12 }
 0x170   : > { %v3171_v55 = vadd.f32 %v7534_v19, %v3100_v10  ;;  %v3099_v26 = vmul.f32 %v7525_v52, %v2790_v9  ;;  %v2489_v49 = vsel %vm2432_vm5, %v2424_v14, %v2288_v6  ;;  %v2290_v20 = vpop.permute.xlu1 %2289  ;;  %v997_v6 = vand.u32 15, %v569_v47 }
 0x171   : > { %v2490_v56 = vsel %vm2432_vm5, %v2425_v61, %v2290_v20  ;;  %5781 = vmatprep.mubr.msk.f32.mxu1 %vm2506_vm7, %v2489_v49  ;;  %v3453_v38 = vmul.f32 0.2, %v3421_v2 }
 0x172   : > { %3235 = vst.msk [vmem:[#allocation2 + $0x28] sm:$0xff] %vm2432_vm5, %v3171_v55  ;;  %v3170_v46 = vadd.f32 %v7534_v19, %v3099_v26  ;;  %5782 = vmatmul.mubr.msk.f32.gmra.mxu1 %vm2506_vm7, %v2490_v56  ;;  %v1592_v26 = vsel %vm7636_vm9, 0.0, %v1411_v53  ;;  %v1410_v56 = vsel %vm1405_vm6, %v1399_v37, %v1400_v29  ;;  %vm7679_vm11 = vcmp.lt.s32.totalorder %v997_v6, 1 }
 0x173   : > { %v5708_v45 = vpop.f32.mrf.mxu0  ;;  %v2020_v57 = vpop.permute.xlu0 %2019  ;;  %v7609_v63 = vmax.f32 %v3421_v2, %v3453_v38  ;;  %v3296_v32 = vld [vmem:[#allocation2 + $0x10] ss:$2 sm:$0xff]  ;;  %v3360_v3 = vld [vmem:[#allocation2 + $0x11] ss:$2 sm:$0xff] }
 0x174   : > { %3234 = vst.msk [vmem:[#allocation2 + $0x20] sm:$0xff] %vm2432_vm5, %v3170_v46  ;;  %v2805_v13 = vadd.f32 %v5708_v45, %v7519_v33  ;;  %v2022_v21 = vpop.permute.xlu1 %2021  ;;  %v3422_v35 = vmax.f32 %v3296_v32, %v3360_v3  ;;  %v2418_v30 = vsel %vm2367_vm4, %v1584_v27, %v2020_v57  ;;  %v1409_v32 = vsel %vm1405_vm6, %v1400_v29, %v1401_v1 }
 0x175   : > { %v2799_v8 = vpop.f32.mrf.mxu0  ;;  %4189 = vrot.lane.b32.xlu0 %v7609_v63, %s9077_s22  ;;  %v9040_v48 = vrot.slane %v7609_v63, 7  ;;  %v2419_v61 = vsel %vm2367_vm4, %v1418_v58, %v2022_v21  ;;  %v1594_v58 = vsel %vm7679_vm11, 0.0, %v1409_v32  ;;  %v9222_v32 = vrot.slane %v6584_v28, 7 }
 0x176   : > { %v3102_v62 = vmul.f32 %v7525_v52, %v2805_v13  ;;  %v2800_v15 = vadd.f32 %v7519_v33, %v2799_v8  ;;  %v3454_v34 = vmul.f32 0.2, %v3422_v35 }
 0x177   : > { %v2036_v39 = vpop.permute.xlu0 %2035 }
 0x178   : > { %v3173_v11 = vadd.f32 %v7534_v19, %v3102_v62  ;;  %v3101_v18 = vmul.f32 %v7525_v52, %v2800_v15  ;;  %v2276_v10 = vpop.permute.xlu1 %2275  ;;  %v7630_v9 = vmax.f32 %v3422_v35, %v3454_v34  ;;  %v2426_v3 = vsel %vm2367_vm4, %v1592_v26, %v2036_v39 }
 0x179   : > { %v2483_v43 = vsel %vm2432_vm5, %v2418_v30, %v2276_v10  ;;  %v571_v35 = vadd.s32 496, %v6153_v4  ;;  %v3535_v39 = vand.u32 7, %v6623_v31  ;;  %v1408_v30 = vsel %vm1405_vm6, %v1401_v1, %v1402_v23 }
 0x17a   : > { %3237 = vst.msk [vmem:[#allocation2 + $0x38] sm:$0xff] %vm2432_vm5, %v3173_v11  ;;  %v3172_v25 = vadd.f32 %v7534_v19, %v3101_v18  ;;  %5772 = vmatprep.mubr.msk.f32.mxu0 %vm2506_vm7, %v2483_v43  ;;  %4191 = vrot.lane.b32.xlu1 %v7630_v9, %s9077_s22  ;;  %v3902_v40 = vrot.slane %v7630_v9, 7  ;;  %v1403_v10 = vrot.slane %v7301_v24, 7 }
 0x17b   : > { %v5711_v12 = vpop.f32.mrf.mxu0  ;;  %v2038_v14 = vpop.permute.xlu0 %2037  ;;  %v3298_v2 = vld [vmem:[#allocation2 + $0x20] ss:$2 sm:$0xff]  ;;  %v3362_v55 = vld [vmem:[#allocation2 + $0x21] ss:$2 sm:$0xff]  ;;  %v1011_v18 = vand.u32 15, %v571_v35  ;;  %vm7710_vm12 = vcmp.lt.s32.totalorder %v3535_v39, 1 }
 0x17c   : > { %3236 = vst.msk [vmem:[#allocation2 + $0x30] sm:$0xff] %vm2432_vm5, %v3172_v25  ;;  %v2815_v49 = vadd.f32 %v5711_v12, %v7519_v33  ;;  %v2278_v20 = vpop.permute.xlu1 %2277  ;;  %v7664_v50 = vsel %vm1405_vm6, %v9040_v48, %v3902_v40  ;;  %v3423_v16 = vmax.f32 %v3298_v2, %v3362_v55  ;;  %v2427_v8 = vsel %vm2367_vm4, %v1410_v56, %v2038_v14 }
 0x17d   : > { %v2484_v38 = vsel %vm2432_vm5, %v2419_v61, %v2278_v20  ;;  %v2809_v51 = vpop.f32.mrf.mxu0  ;;  %v1407_v55 = vsel %vm1405_vm6, %v1402_v23, %v1403_v10  ;;  %vm7716_vm13 = vcmp.lt.s32.totalorder %v1011_v18, 1  ;;  %vm8025_vm0 = vcmp.ge.s32.totalorder %v3535_v39, 7 }
 0x17e   : > { %v3104_v45 = vmul.f32 %v7525_v52, %v2815_v49  ;;  %v2810_v57 = vadd.f32 %v7519_v33, %v2809_v51  ;;  %5773 = vmatmul.mubr.msk.f32.gmra.mxu0 %vm2506_vm7, %v2484_v38  ;;  %v3455_v27 = vmul.f32 0.2, %v3423_v16  ;;  %v1596_v23 = vsel %vm7716_vm13, 0.0, %v1407_v55 }
 0x17f   : > { %v2292_v13 = vpop.permute.xlu0 %2291 }
 0x180   : > { %v3175_v36 = vadd.f32 %v7534_v19, %v3104_v45  ;;  %v3103_v59 = vmul.f32 %v7525_v52, %v2810_v57  ;;  %v2491_v37 = vsel %vm2432_vm5, %v2426_v3, %v2292_v13  ;;  %v2294_v62 = vpop.permute.xlu1 %2293  ;;  %v7690_v34 = vmax.f32 %v3423_v16, %v3455_v27 }
 0x181   : > { %v2492_v15 = vsel %vm2432_vm5, %v2427_v8, %v2294_v62  ;;  %5784 = vmatprep.mubr.msk.f32.mxu1 %vm2506_vm7, %v2491_v37  ;;  %v1406_v3 = vsel %vm1405_vm6, %v1403_v10, %v9222_v32 }
 0x182   : > { %3239 = vst.msk [vmem:[#allocation2 + $0x48] sm:$0xff] %vm2432_vm5, %v3175_v36  ;;  %v3174_v29 = vadd.f32 %v7534_v19, %v3103_v59  ;;  %5785 = vmatmul.mubr.msk.f32.gmra.mxu1 %vm2506_vm7, %v2492_v15  ;;  %v9025_v43 = vrot.slane %v7690_v34, 7 }
 0x183   : > { %v5714_v47 = vpop.f32.mrf.mxu0  ;;  %v2040_v11 = vpop.permute.xlu0 %2039 }
 0x184   : > { %3238 = vst.msk [vmem:[#allocation2 + $0x40] sm:$0xff] %vm2432_vm5, %v3174_v29  ;;  %v2825_v53 = vadd.f32 %v5714_v47, %v7519_v33  ;;  %v2042_v0 = vpop.permute.xlu1 %2041  ;;  %v2428_v25 = vsel %vm2367_vm4, %v1594_v58, %v2040_v11  ;;  %v7724_v26 = vsel %vm1405_vm6, %v3902_v40, %v9025_v43 }
 0x185   : > { %v2819_v12 = vpop.f32.mrf.mxu0  ;;  %v2429_v6 = vsel %vm2367_vm4, %v1408_v30, %v2042_v0 }
 0x186   : > { %v3106_v14 = vmul.f32 %v7525_v52, %v2825_v53  ;;  %v2820_v2 = vadd.f32 %v7519_v33, %v2819_v12 }
 0x187   : > { %v2296_v1 = vpop.permute.xlu0 %2295 }
 0x188   : > { %v3177_v49 = vadd.f32 %v7534_v19, %v3106_v14  ;;  %v3105_v20 = vmul.f32 %v7525_v52, %v2820_v2  ;;  %v2493_v56 = vsel %vm2432_vm5, %v2428_v25, %v2296_v1  ;;  %v2298_v38 = vpop.permute.xlu1 %2297 }
 0x189   : > { %v2494_v51 = vsel %vm2432_vm5, %v2429_v6, %v2298_v38  ;;  %5787 = vmatprep.mubr.msk.f32.mxu1 %vm2506_vm7, %v2493_v56 }
 0x18a   : > { %3241 = vst.msk [vmem:[#allocation2 + $0x58] sm:$0xff] %vm2432_vm5, %v3177_v49  ;;  %v3176_v40 = vadd.f32 %v7534_v19, %v3105_v20  ;;  %5788 = vmatmul.mubr.msk.f32.gmra.mxu1 %vm2506_vm7, %v2494_v51 }
 0x18b   : > { %v5717_v45 = vpop.f32.mrf.mxu0  ;;  %v2044_v57 = vpop.permute.xlu0 %2043 }
 0x18c   : > { %3240 = vst.msk [vmem:[#allocation2 + $0x50] sm:$0xff] %vm2432_vm5, %v3176_v40  ;;  %v2835_v13 = vadd.f32 %v5717_v45, %v7519_v33  ;;  %v2046_v21 = vpop.permute.xlu1 %2045  ;;  %v2430_v35 = vsel %vm2367_vm4, %v1596_v23, %v2044_v57 }
 0x18d   : > { %v2829_v27 = vpop.f32.mrf.mxu0  ;;  %v2431_v8 = vsel %vm2367_vm4, %v1406_v3, %v2046_v21 }
 0x18e   : > { %v3108_v36 = vmul.f32 %v7525_v52, %v2835_v13  ;;  %v2830_v59 = vadd.f32 %v7519_v33, %v2829_v27 }
 0x18f   : > { %v2300_v37 = vpop.permute.xlu0 %2299 }
 0x190   : > { %v3179_v28 = vadd.f32 %v7534_v19, %v3108_v36  ;;  %v3107_v62 = vmul.f32 %v7525_v52, %v2830_v59  ;;  %v2495_v15 = vsel %vm2432_vm5, %v2430_v35, %v2300_v37  ;;  %v2302_v29 = vpop.permute.xlu1 %2301 }
 0x191   : > { %v2496_v58 = vsel %vm2432_vm5, %v2431_v8, %v2302_v29  ;;  %5790 = vmatprep.mubr.msk.f32.mxu1 %vm2506_vm7, %v2495_v15 }
 0x192   : > { %3243 = vst.msk [vmem:[#allocation2 + $0x68] sm:$0xff] %vm2432_vm5, %v3179_v28  ;;  %v3178_v47 = vadd.f32 %v7534_v19, %v3107_v62  ;;  %5791 = vmatmul.mubr.msk.f32.gmra.mxu1 %vm2506_vm7, %v2496_v58  ;;  %vm7955_vm7 = vcmp.ge.s32.totalorder %v3528_v44, 7 }
 0x193   : > { %v5720_v11 = vpop.f32.mrf.mxu0 }
 0x194   : > { %3242 = vst.msk [vmem:[#allocation2 + $0x60] sm:$0xff] %vm2432_vm5, %v3178_v47  ;;  %v2845_v30 = vadd.f32 %v5720_v11, %v7519_v33 }
 0x195   : > { %v2839_v18 = vpop.f32.mrf.mxu0 }
 0x196   : > { %v3110_v10 = vmul.f32 %v7525_v52, %v2845_v30  ;;  %v2840_v53 = vadd.f32 %v7519_v33, %v2839_v18 }
 0x198   : > { %v3181_v0 = vadd.f32 %v7534_v19, %v3110_v10  ;;  %v3109_v25 = vmul.f32 %v7525_v52, %v2840_v53 }
 0x19a   : > { %3245 = vst.msk [vmem:[#allocation2 + $0x78] sm:$0xff] %vm2432_vm5, %v3181_v0  ;;  %v3180_v12 = vadd.f32 %v7534_v19, %v3109_v25 }
 0x19b   : > { %v5723_v14 = vpop.f32.mrf.mxu0  ;;  %v3306_v31 = vld [vmem:[#allocation2 + $0x60] ss:$2 sm:$0xff]  ;;  %v3370_v39 = vld [vmem:[#allocation2 + $0x61] ss:$2 sm:$0xff] }
 0x19c   : > { %3244 = vst.msk [vmem:[#allocation2 + $0x70] sm:$0xff] %vm2432_vm5, %v3180_v12  ;;  %v2855_v6 = vadd.f32 %v5723_v14, %v7519_v33 }
 0x19d   : > { %v2849_v2 = vpop.f32.mrf.mxu0 }
 0x19e   : > { %v3112_v1 = vmul.f32 %v7525_v52, %v2855_v6  ;;  %v2850_v55 = vadd.f32 %v7519_v33, %v2849_v2 }
 0x1a0   : > { %v3183_v61 = vadd.f32 %v7534_v19, %v3112_v1  ;;  %v3111_v49 = vmul.f32 %v7525_v52, %v2850_v55 }
 0x1a2   : > { %3247 = vst.msk [vmem:[#allocation2 + $0x88] sm:$0xff] %vm2432_vm5, %v3183_v61  ;;  %v3182_v20 = vadd.f32 %v7534_v19, %v3111_v49 }
 0x1a3   : > { %v5726_v56 = vpop.f32.mrf.mxu0 }
 0x1a4   : > { %3246 = vst.msk [vmem:[#allocation2 + $0x80] sm:$0xff] %vm2432_vm5, %v3182_v20  ;;  %v2865_v38 = vadd.f32 %v5726_v56, %v7519_v33 }
 0x1a5   : > { %v2859_v51 = vpop.f32.mrf.mxu0 }
 0x1a6   : > { %v3114_v40 = vmul.f32 %v7525_v52, %v2865_v38  ;;  %v2860_v23 = vadd.f32 %v7519_v33, %v2859_v51 }
 0x1a8   : > { %v3185_v45 = vadd.f32 %v7534_v19, %v3114_v40  ;;  %v3113_v57 = vmul.f32 %v7525_v52, %v2860_v23 }
 0x1aa   : > { %3249 = vst.msk [vmem:[#allocation2 + $0x98] sm:$0xff] %vm2432_vm5, %v3185_v45  ;;  %v3184_v32 = vadd.f32 %v7534_v19, %v3113_v57 }
 0x1ab   : > { %v5729_v3 = vpop.f32.mrf.mxu0 }
 0x1ac   : > { %3248 = vst.msk [vmem:[#allocation2 + $0x90] sm:$0xff] %vm2432_vm5, %v3184_v32  ;;  %v2875_v13 = vadd.f32 %v5729_v3, %v7519_v33 }
 0x1ad   : > { %v2869_v21 = vpop.f32.mrf.mxu0 }
 0x1ae   : > { %v3116_v35 = vmul.f32 %v7525_v52, %v2875_v13  ;;  %v2870_v27 = vadd.f32 %v7519_v33, %v2869_v21 }
 0x1b0   : > { %v3187_v36 = vadd.f32 %v7534_v19, %v3116_v35  ;;  %v3115_v8 = vmul.f32 %v7525_v52, %v2870_v27 }
 0x1b2   : > { %3251 = vst.msk [vmem:[#allocation2 + $0xa8] sm:$0xff] %vm2432_vm5, %v3187_v36  ;;  %v3186_v59 = vadd.f32 %v7534_v19, %v3115_v8 }
 0x1b3   : > { %v5732_v37 = vpop.f32.mrf.mxu0 }
 0x1b4   : > { %3250 = vst.msk [vmem:[#allocation2 + $0xa0] sm:$0xff] %vm2432_vm5, %v3186_v59  ;;  %v2885_v28 = vadd.f32 %v5732_v37, %v7519_v33 }
 0x1b5   : > { %v2879_v62 = vpop.f32.mrf.mxu0 }
 0x1b6   : > { %v3118_v15 = vmul.f32 %v7525_v52, %v2885_v28  ;;  %v2880_v29 = vadd.f32 %v7519_v33, %v2879_v62 }
 0x1b8   : > { %v3189_v58 = vadd.f32 %v7534_v19, %v3118_v15  ;;  %v3117_v47 = vmul.f32 %v7525_v52, %v2880_v29 }
 0x1ba   : > { %3253 = vst.msk [vmem:[#allocation2 + $0xb8] sm:$0xff] %vm2432_vm5, %v3189_v58  ;;  %v3188_v11 = vadd.f32 %v7534_v19, %v3117_v47 }
 0x1bb   : > { %v5735_v30 = vpop.f32.mrf.mxu0 }
 0x1bc   : > { %3252 = vst.msk [vmem:[#allocation2 + $0xb0] sm:$0xff] %vm2432_vm5, %v3188_v11  ;;  %v2895_v18 = vadd.f32 %v5735_v30, %v7519_v33 }
 0x1bd   : > { %v2889_v10 = vpop.f32.mrf.mxu0 }
 0x1be   : > { %v3120_v53 = vmul.f32 %v7525_v52, %v2895_v18  ;;  %v2890_v0 = vadd.f32 %v7519_v33, %v2889_v10 }
 0x1c0   : > { %v3191_v25 = vadd.f32 %v7534_v19, %v3120_v53  ;;  %v3119_v12 = vmul.f32 %v7525_v52, %v2890_v0 }
 0x1c2   : > { %3255 = vst.msk [vmem:[#allocation2 + $0xc8] sm:$0xff] %vm2432_vm5, %v3191_v25  ;;  %v3190_v14 = vadd.f32 %v7534_v19, %v3119_v12 }
 0x1c3   : > { %v5738_v6 = vpop.f32.mrf.mxu0  ;;  %v3316_v43 = vld [vmem:[#allocation2 + $0xb0] ss:$2 sm:$0xff] }
 0x1c4   : > { %3254 = vst.msk [vmem:[#allocation2 + $0xc0] sm:$0xff] %vm2432_vm5, %v3190_v14  ;;  %v2905_v2 = vadd.f32 %v5738_v6, %v7519_v33 }
 0x1c5   : > { %v2899_v1 = vpop.f32.mrf.mxu0 }
 0x1c6   : > { %v3122_v55 = vmul.f32 %v7525_v52, %v2905_v2  ;;  %v2900_v61 = vadd.f32 %v7519_v33, %v2899_v1 }
 0x1c8   : > { %v3193_v49 = vadd.f32 %v7534_v19, %v3122_v55  ;;  %v3121_v20 = vmul.f32 %v7525_v52, %v2900_v61 }
 0x1ca   : > { %3257 = vst.msk [vmem:[#allocation2 + $0xd8] sm:$0xff] %vm2432_vm5, %v3193_v49  ;;  %v3192_v56 = vadd.f32 %v7534_v19, %v3121_v20 }
 0x1cb   : > { %v5741_v38 = vpop.f32.mrf.mxu0 }
 0x1cc   : > { %3256 = vst.msk [vmem:[#allocation2 + $0xd0] sm:$0xff] %vm2432_vm5, %v3192_v56  ;;  %v2915_v51 = vadd.f32 %v5741_v38, %v7519_v33 }
 0x1cd   : > { %v2909_v40 = vpop.f32.mrf.mxu0 }
 0x1ce   : > { %v3124_v23 = vmul.f32 %v7525_v52, %v2915_v51  ;;  %v2910_v45 = vadd.f32 %v7519_v33, %v2909_v40 }
 0x1d0   : > { %v3195_v57 = vadd.f32 %v7534_v19, %v3124_v23  ;;  %v3123_v32 = vmul.f32 %v7525_v52, %v2910_v45 }
 0x1d2   : > { %3259 = vst.msk [vmem:[#allocation2 + $0xe8] sm:$0xff] %vm2432_vm5, %v3195_v57  ;;  %v3194_v3 = vadd.f32 %v7534_v19, %v3123_v32  ;;  %v5744_v13 = vpop.f32.mrf.mxu0 }
 0x1d3   : > { %v2925_v21 = vadd.f32 %v5744_v13, %v7519_v33 }
 0x1d4   : > { %3258 = vst.msk [vmem:[#allocation2 + $0xe0] sm:$0xff] %vm2432_vm5, %v3194_v3  ;;  %v2919_v35 = vpop.f32.mrf.mxu0 }
 0x1d5   : > { %v3126_v27 = vmul.f32 %v7525_v52, %v2925_v21  ;;  %v2920_v36 = vadd.f32 %v7519_v33, %v2919_v35 }
 0x1d7   : > { %v3197_v8 = vadd.f32 %v7534_v19, %v3126_v27  ;;  %v3125_v59 = vmul.f32 %v7525_v52, %v2920_v36 }
 0x1d9   : > { %3261 = vst.msk [vmem:[#allocation2 + $0xf8] sm:$0xff] %vm2432_vm5, %v3197_v8  ;;  %v3196_v37 = vadd.f32 %v7534_v19, %v3125_v59 }
 0x1da   : > { %v5747_v28 = vpop.f32.mrf.mxu0 }
 0x1db   : > { %3260 = vst.msk [vmem:[#allocation2 + $0xf0] sm:$0xff] %vm2432_vm5, %v3196_v37  ;;  %v2935_v62 = vadd.f32 %v5747_v28, %v7519_v33 }
 0x1dc   : > { %v2929_v15 = vpop.f32.mrf.mxu0 }
 0x1dd   : > { %v3128_v29 = vmul.f32 %v7525_v52, %v2935_v62  ;;  %v2930_v58 = vadd.f32 %v7519_v33, %v2929_v15 }
 0x1df   : > { %v3199_v47 = vadd.f32 %v7534_v19, %v3128_v29  ;;  %v3127_v11 = vmul.f32 %v7525_v52, %v2930_v58 }
 0x1e1   : > { %3263 = vst.msk [vmem:[#allocation2 + $0x108] sm:$0xff] %vm2432_vm5, %v3199_v47  ;;  %v3198_v30 = vadd.f32 %v7534_v19, %v3127_v11 }
 0x1e2   : > { %v5750_v18 = vpop.f32.mrf.mxu0 }
 0x1e3   : > { %3262 = vst.msk [vmem:[#allocation2 + $0x100] sm:$0xff] %vm2432_vm5, %v3198_v30  ;;  %v2945_v10 = vadd.f32 %v5750_v18, %v7519_v33 }
 0x1e4   : > { %v2939_v53 = vpop.f32.mrf.mxu0 }
 0x1e5   : > { %v3130_v0 = vmul.f32 %v7525_v52, %v2945_v10  ;;  %v2940_v25 = vadd.f32 %v7519_v33, %v2939_v53 }
 0x1e7   : > { %v3201_v12 = vadd.f32 %v7534_v19, %v3130_v0  ;;  %v3129_v14 = vmul.f32 %v7525_v52, %v2940_v25 }
 0x1e9   : > { %3265 = vst.msk [vmem:[#allocation2 + $0x118] sm:$0xff] %vm2432_vm5, %v3201_v12  ;;  %v3200_v6 = vadd.f32 %v7534_v19, %v3129_v14 }
 0x1ea   : > { %v5753_v2 = vpop.f32.mrf.mxu0 }
 0x1eb   : > { %3264 = vst.msk [vmem:[#allocation2 + $0x110] sm:$0xff] %vm2432_vm5, %v3200_v6  ;;  %v2955_v1 = vadd.f32 %v5753_v2, %v7519_v33 }
 0x1ec   : > { %v2949_v55 = vpop.f32.mrf.mxu0 }
 0x1ed   : > { %v3132_v61 = vmul.f32 %v7525_v52, %v2955_v1  ;;  %v2950_v49 = vadd.f32 %v7519_v33, %v2949_v55 }
 0x1ef   : > { %v3203_v20 = vadd.f32 %v7534_v19, %v3132_v61  ;;  %v3131_v56 = vmul.f32 %v7525_v52, %v2950_v49 }
 0x1f1   : > { %3267 = vst.msk [vmem:[#allocation2 + $0x128] sm:$0xff] %vm2432_vm5, %v3203_v20  ;;  %v3202_v38 = vadd.f32 %v7534_v19, %v3131_v56 }
 0x1f2   : > { %v5756_v51 = vpop.f32.mrf.mxu0 }
 0x1f3   : > { %3266 = vst.msk [vmem:[#allocation2 + $0x120] sm:$0xff] %vm2432_vm5, %v3202_v38  ;;  %v2965_v40 = vadd.f32 %v5756_v51, %v7519_v33 }
 0x1f4   : > { %v2959_v23 = vpop.f32.mrf.mxu0 }
 0x1f5   : > { %v3134_v45 = vmul.f32 %v7525_v52, %v2965_v40  ;;  %v2960_v57 = vadd.f32 %v7519_v33, %v2959_v23 }
 0x1f7   : > { %v3205_v32 = vadd.f32 %v7534_v19, %v3134_v45  ;;  %v3133_v3 = vmul.f32 %v7525_v52, %v2960_v57 }
 0x1f9   : > { %3269 = vst.msk [vmem:[#allocation2 + $0x138] sm:$0xff] %vm2432_vm5, %v3205_v32  ;;  %v3204_v13 = vadd.f32 %v7534_v19, %v3133_v3 }
 0x1fa   : > { %v5759_v21 = vpop.f32.mrf.mxu0 }
 0x1fb   : > { %3268 = vst.msk [vmem:[#allocation2 + $0x130] sm:$0xff] %vm2432_vm5, %v3204_v13  ;;  %v2975_v35 = vadd.f32 %v5759_v21, %v7519_v33 }
 0x1fc   : > { %v2969_v27 = vpop.f32.mrf.mxu0 }
 0x1fd   : > { %v3136_v36 = vmul.f32 %v7525_v52, %v2975_v35  ;;  %v2970_v8 = vadd.f32 %v7519_v33, %v2969_v27 }
 0x1ff   : > { %v3207_v59 = vadd.f32 %v7534_v19, %v3136_v36  ;;  %v3135_v37 = vmul.f32 %v7525_v52, %v2970_v8 }
 0x201   : > { %3271 = vst.msk [vmem:[#allocation2 + $0x148] sm:$0xff] %vm2432_vm5, %v3207_v59  ;;  %v3206_v28 = vadd.f32 %v7534_v19, %v3135_v37 }
 0x202   : > { %v5762_v62 = vpop.f32.mrf.mxu0 }
 0x203   : > { %3270 = vst.msk [vmem:[#allocation2 + $0x140] sm:$0xff] %vm2432_vm5, %v3206_v28  ;;  %v2985_v15 = vadd.f32 %v5762_v62, %v7519_v33  ;;  %v9041_v28 = vand.u32 7, %v6153_v4 }
 0x204   : > { %v2979_v29 = vpop.f32.mrf.mxu0 }
 0x205   : > { %v3138_v58 = vmul.f32 %v7525_v52, %v2985_v15  ;;  %v2980_v47 = vadd.f32 %v7519_v33, %v2979_v29  ;;  %vm4093_vm4 = vcmp.ge.s32.totalorder %v9041_v28, 7  ;;  %v9257_v28 = vld [vmem:[#allocation11_spill] sm:$0xff] }
 0x207   : > { %v3209_v11 = vadd.f32 %v7534_v19, %v3138_v58  ;;  %v3137_v30 = vmul.f32 %v7525_v52, %v2980_v47  ;;  %v4030_v58 = vrot.slane %v7630_v9, 1 }
 0x209   : > { %3273 = vst.msk [vmem:[#allocation2 + $0x158] sm:$0xff] %vm2432_vm5, %v3209_v11  ;;  %v3208_v18 = vadd.f32 %v7534_v19, %v3137_v30 }
 0x20b   : > { %3272 = vst.msk [vmem:[#allocation2 + $0x150] sm:$0xff] %vm2432_vm5, %v3208_v18  ;;  %v9031_v18 = vrot.slane %v7609_v63, 1 }
 0x20d   : > { %v5765_v10 = vpop.f32.mrf.mxu0  ;;  %v4091_v9 = vsel %vm1662_vm1, %v9031_v18, %v4030_v58 }
 0x20e   : > { %v2995_v53 = vadd.f32 %v5765_v10, %v7519_v33 }
 0x20f   : > { %v2989_v0 = vpop.f32.mrf.mxu0 }
 0x210   : > { %v3140_v25 = vmul.f32 %v7525_v52, %v2995_v53  ;;  %v2990_v12 = vadd.f32 %v7519_v33, %v2989_v0  ;;  %v4480_v53 = vld [vmem:[%s8961_s5 + $0x10] sm:$0xff]  ;;  %v4125_v0 = vsel %vm4093_vm4, 0.0, %v4091_v9 }
 0x211   : > { %5793 = vmatprep.subr.mxu1 %v4480_v53 }
 0x212   : > { %v3211_v14 = vadd.f32 %v7534_v19, %v3140_v25  ;;  %v3139_v6 = vmul.f32 %v7525_v52, %v2990_v12  ;;  %v5777_v2 = vpop.f32.mrf.mxu1  ;;  %5794 = vmatpush3.msra.mxu1 %v4480_v53  ;;  %v4479_v25 = vld [vmem:[%s8961_s5 + $0x8] sm:$0xff]  ;;  %v4478_v12 = vld [vmem:[%s8961_s5] sm:$0xff] }
 0x213   : > { %v3035_v1 = vadd.f32 %v5777_v2, %v7519_v33  ;;  %5795 = vmatprep.subr.mxu1 %v4479_v25 }
 0x214   : > { %3275 = vst.msk [vmem:[#allocation2 + $0x168] sm:$0xff] %vm2432_vm5, %v3211_v14  ;;  %v3210_v55 = vadd.f32 %v7534_v19, %v3139_v6  ;;  %v3029_v61 = vpop.f32.mrf.mxu1  ;;  %5796 = vmatpush3.msra.mxu1 %v4479_v25 }
 0x215   : > { %v3148_v49 = vmul.f32 %v7525_v52, %v3035_v1  ;;  %v3030_v20 = vadd.f32 %v7519_v33, %v3029_v61  ;;  %5797 = vmatprep.subr.mxu1 %v4478_v12 }
 0x216   : > { %3274 = vst.msk [vmem:[#allocation2 + $0x160] sm:$0xff] %vm2432_vm5, %v3210_v55  ;;  %5798 = vmatpush3.msra.mxu1 %v4478_v12 }
 0x217   : > { %v3219_v56 = vadd.f32 %v7534_v19, %v3148_v49  ;;  %v3147_v38 = vmul.f32 %v7525_v52, %v3030_v20 }
 0x219   : > { %3283 = vst.msk [vmem:[#allocation2 + $0x1a8] sm:$0xff] %vm2432_vm5, %v3219_v56  ;;  %v3218_v51 = vadd.f32 %v7534_v19, %v3147_v38 }
 0x21b   : > { %3282 = vst.msk [vmem:[#allocation2 + $0x1a0] sm:$0xff] %vm2432_vm5, %v3218_v51 }
 0x21d   : > { %v5768_v40 = vpop.f32.mrf.mxu0 }
 0x21e   : > { %v3005_v23 = vadd.f32 %v5768_v40, %v7519_v33 }
 0x21f   : > { %v2999_v45 = vpop.f32.mrf.mxu0 }
 0x220   : > { %v3142_v57 = vmul.f32 %v7525_v52, %v3005_v23  ;;  %v3000_v32 = vadd.f32 %v7519_v33, %v2999_v45  ;;  %v3300_v23 = vld [vmem:[#allocation2 + $0x30] ss:$2 sm:$0xff]  ;;  %v3364_v45 = vld [vmem:[#allocation2 + $0x31] ss:$2 sm:$0xff] }
 0x222   : > { %v3213_v3 = vadd.f32 %v7534_v19, %v3142_v57  ;;  %v3141_v13 = vmul.f32 %v7525_v52, %v3000_v32  ;;  %v5780_v21 = vpop.f32.mrf.mxu1  ;;  %v3346_v35 = vld [vmem:[#allocation2 + $0x1a0] ss:$2 sm:$0xff]  ;;  %v3410_v27 = vld [vmem:[#allocation2 + $0x1a1] ss:$2 sm:$0xff]  ;;  %v4031_v32 = vrot.slane %v7690_v34, 1 }
 0x223   : > { %v3045_v36 = vadd.f32 %v5780_v21, %v7519_v33  ;;  %v3447_v8 = vmax.f32 %v3346_v35, %v3410_v27 }
 0x224   : > { %3277 = vst.msk [vmem:[#allocation2 + $0x178] sm:$0xff] %vm2432_vm5, %v3213_v3  ;;  %v3212_v59 = vadd.f32 %v7534_v19, %v3141_v13  ;;  %v3039_v37 = vpop.f32.mrf.mxu1  ;;  %v3703_v3 = vand.u32 7, %v7159_v22  ;;  %v3710_v13 = vand.u32 7, %v6547_v41 }
 0x225   : > { %v3150_v62 = vmul.f32 %v7525_v52, %v3045_v36  ;;  %v3040_v15 = vadd.f32 %v7519_v33, %v3039_v37  ;;  %v3479_v29 = vmul.f32 0.2, %v3447_v8 }
 0x226   : > { %3276 = vst.msk [vmem:[#allocation2 + $0x170] sm:$0xff] %vm2432_vm5, %v3212_v59  ;;  %vm7966_vm14 = vcmp.ge.s32.totalorder %v3703_v3, 7  ;;  %vm7972_vm15 = vcmp.lt.s32.totalorder %v3710_v13, 1  ;;  %vm8042_vm2 = vcmp.ge.s32.totalorder %v3710_v13, 7  ;;  %vm8130_vm11 = vcmp.lt.s32.totalorder %v3703_v3, 1 }
 0x227   : > { %v3221_v47 = vadd.f32 %v7534_v19, %v3150_v62  ;;  %v3149_v11 = vmul.f32 %v7525_v52, %v3040_v15  ;;  %v7909_v30 = vmax.f32 %v3447_v8, %v3479_v29  ;;  %v3424_v8 = vmax.f32 %v3300_v23, %v3364_v45 }
 0x228   : > { %v4090_v29 = vsel %vm1662_vm1, %v4030_v58, %v4031_v32  ;;  %v9294_v13 = vsel %vm7710_vm12, 0.0, %v7724_v26 }
 0x229   : > { %3285 = vst.msk [vmem:[#allocation2 + $0x1b8] sm:$0xff] %vm2432_vm5, %v3221_v47  ;;  %v3220_v10 = vadd.f32 %v7534_v19, %v3149_v11  ;;  %4241 = vrot.lane.b32.xlu0 %v7909_v30, %s9077_s22  ;;  %v9034_v47 = vrot.slane %v7909_v30, 1  ;;  %v3456_v53 = vmul.f32 0.2, %v3424_v8  ;;  %v4126_v12 = vsel %vm7955_vm7, 0.0, %v4090_v29 }
 0x22b   : > { %3284 = vst.msk [vmem:[#allocation2 + $0x1b0] sm:$0xff] %vm2432_vm5, %v3220_v10  ;;  %v3927_v10 = vrot.slane %v7909_v30, 7 }
 0x22d   : > { %4317 = vrot.lane.b32.xlu0 %v4125_v0, %s6019_s25 }
 0x22e   : > { %v5771_v14 = vpop.f32.mrf.mxu0 }
 0x22f   : > { %v3015_v6 = vadd.f32 %v5771_v14, %v7519_v33 }
 0x230   : > { %v3009_v2 = vpop.f32.mrf.mxu0 }
 0x231   : > { %v3144_v1 = vmul.f32 %v7525_v52, %v3015_v6  ;;  %v3010_v55 = vadd.f32 %v7519_v33, %v3009_v2  ;;  %4193 = vrot.lane.b32.xlu0 %v7690_v34, %s9077_s22  ;;  %v3302_v6 = vld [vmem:[#allocation2 + $0x40] ss:$2 sm:$0xff]  ;;  %v3328_v2 = vld [vmem:[#allocation2 + $0x110] ss:$2 sm:$0xff] }
 0x232   : > { %v5783_v61 = vpop.f32.mrf.mxu1  ;;  %v3348_v49 = vld [vmem:[#allocation2 + $0x1b0] ss:$2 sm:$0xff]  ;;  %v3412_v20 = vld [vmem:[#allocation2 + $0x1b1] ss:$2 sm:$0xff] }
 0x233   : > { %v3215_v56 = vadd.f32 %v7534_v19, %v3144_v1  ;;  %v3143_v38 = vmul.f32 %v7525_v52, %v3010_v55  ;;  %v3055_v51 = vadd.f32 %v5783_v61, %v7519_v33  ;;  %v3448_v40 = vmax.f32 %v3348_v49, %v3412_v20  ;;  %v3366_v1 = vld [vmem:[#allocation2 + $0x41] ss:$2 sm:$0xff]  ;;  %v3304_v55 = vld [vmem:[#allocation2 + $0x50] ss:$2 sm:$0xff]  ;;  %v3368_v61 = vld [vmem:[#allocation2 + $0x51] ss:$2 sm:$0xff] }
 0x234   : > { %v3049_v57 = vpop.f32.mrf.mxu1  ;;  %v8007_v20 = vmax.f32 %v3424_v8, %v3456_v53 }
 0x235   : > { %3279 = vst.msk [vmem:[#allocation2 + $0x188] sm:$0xff] %vm2432_vm5, %v3215_v56  ;;  %v3214_v21 = vadd.f32 %v7534_v19, %v3143_v38  ;;  %v3152_v35 = vmul.f32 %v7525_v52, %v3055_v51  ;;  %v3050_v27 = vadd.f32 %v7519_v33, %v3049_v57  ;;  %v3480_v36 = vmul.f32 0.2, %v3448_v40 }
 0x236   : > { %v3425_v51 = vmax.f32 %v3302_v6, %v3366_v1  ;;  %v3308_v6 = vld [vmem:[#allocation2 + $0x70] ss:$2 sm:$0xff]  ;;  %v3372_v1 = vld [vmem:[#allocation2 + $0x71] ss:$2 sm:$0xff] }
 0x237   : > { %3278 = vst.msk [vmem:[#allocation2 + $0x180] sm:$0xff] %vm2432_vm5, %v3214_v21  ;;  %v3223_v59 = vadd.f32 %v7534_v19, %v3152_v35  ;;  %v3151_v37 = vmul.f32 %v7525_v52, %v3050_v27  ;;  %v7951_v62 = vmax.f32 %v3448_v40, %v3480_v36  ;;  %v3426_v40 = vmax.f32 %v3304_v55, %v3368_v61 }
 0x238   : > { %v4032_v27 = vrot.slane %v8007_v20, 1  ;;  %v3457_v29 = vmul.f32 0.2, %v3425_v51 }
 0x239   : > { %3287 = vst.msk [vmem:[#allocation2 + $0x1c8] sm:$0xff] %vm2432_vm5, %v3223_v59  ;;  %v3222_v44 = vadd.f32 %v7534_v19, %v3151_v37  ;;  %4243 = vrot.lane.b32.xlu1 %v7951_v62, %s9077_s22  ;;  %v4056_v58 = vrot.slane %v7951_v62, 1  ;;  %v3928_v9 = vrot.slane %v7951_v62, 7  ;;  %v3458_v11 = vmul.f32 0.2, %v3426_v40 }
 0x23b   : > { %3286 = vst.msk [vmem:[#allocation2 + $0x1c0] sm:$0xff] %vm2432_vm5, %v3222_v44  ;;  %v4065_v0 = vsel %vm1662_vm1, %v9034_v47, %v4056_v58  ;;  %v7996_v25 = vsel %vm1405_vm6, %v3927_v10, %v3928_v9  ;;  %v9037_v44 = vand.u32 7, %v7211_v42  ;;  %v9250_v47 = vld [vmem:[#allocation22_spill] sm:$0xff] }
 0x23c   : > { %v4151_v14 = vsel %vm7966_vm14, 0.0, %v4065_v0  ;;  %v9038_v46 = vand.u32 7, %v9250_v47  ;;  %v3330_v47 = vld [vmem:[#allocation2 + $0x120] ss:$2 sm:$0xff] }
 0x23d   : > { %4319 = vrot.lane.b32.xlu1 %v4126_v12, %s6019_s25  ;;  %4369 = vrot.lane.b32.xlu0 %v4151_v14, %s6019_s25  ;;  %vm8058_vm3 = vcmp.lt.s32.totalorder %v9037_v44, 1  ;;  %v3392_v44 = vld [vmem:[#allocation2 + $0x111] ss:$2 sm:$0xff] }
 0x23e   : > { %v5774_v49 = vpop.f32.mrf.mxu0 }
 0x23f   : > { %v3025_v56 = vadd.f32 %v5774_v49, %v7519_v33 }
 0x240   : > { %v3019_v38 = vpop.f32.mrf.mxu0 }
 0x241   : > { %v3146_v23 = vmul.f32 %v7525_v52, %v3025_v56  ;;  %v3020_v45 = vadd.f32 %v7519_v33, %v3019_v38  ;;  %4195 = vrot.lane.b32.xlu1 %v8007_v20, %s9077_s22  ;;  %v3374_v38 = vld [vmem:[#allocation2 + $0x81] ss:$2 sm:$0xff] }
 0x242   : > { %v5786_v57 = vpop.f32.mrf.mxu1  ;;  %v3350_v21 = vld [vmem:[#allocation2 + $0x1c0] ss:$2 sm:$0xff]  ;;  %v3414_v35 = vld [vmem:[#allocation2 + $0x1c1] ss:$2 sm:$0xff] }
 0x243   : > { %v3217_v36 = vadd.f32 %v7534_v19, %v3146_v23  ;;  %v3145_v8 = vmul.f32 %v7525_v52, %v3020_v45  ;;  %v3065_v59 = vadd.f32 %v5786_v57, %v7519_v33  ;;  %v3449_v37 = vmax.f32 %v3350_v21, %v3414_v35 }
 0x244   : > { %v3059_v15 = vpop.f32.mrf.mxu1  ;;  %v8046_v23 = vmax.f32 %v3425_v51, %v3457_v29  ;;  %v3428_v45 = vmax.f32 %v3308_v6, %v3372_v1 }
 0x245   : > { %3281 = vst.msk [vmem:[#allocation2 + $0x198] sm:$0xff] %vm2432_vm5, %v3217_v36  ;;  %v3216_v53 = vadd.f32 %v7534_v19, %v3145_v8  ;;  %v3154_v0 = vmul.f32 %v7525_v52, %v3065_v59  ;;  %v3060_v12 = vadd.f32 %v7519_v33, %v3059_v15  ;;  %v3481_v14 = vmul.f32 0.2, %v3449_v37 }
 0x246   : > { %v4089_v33 = vsel %vm1662_vm1, %v4031_v32, %v4032_v27  ;;  %v3460_v29 = vmul.f32 0.2, %v3428_v45  ;;  %v3905_v26 = vrot.slane %v8046_v23, 7 }
 0x247   : > { %3280 = vst.msk [vmem:[#allocation2 + $0x190] sm:$0xff] %vm2432_vm5, %v3216_v53  ;;  %v3225_v61 = vadd.f32 %v7534_v19, %v3154_v0  ;;  %v3153_v49 = vmul.f32 %v7525_v52, %v3060_v12  ;;  %v8032_v56 = vmax.f32 %v3449_v37, %v3481_v14  ;;  %v8048_v52 = vmax.f32 %v3426_v40, %v3458_v11  ;;  %v5953_v11 = vld [vmem:[%s8959_s3] ss:$0 sm:$0xff]  ;;  %v3312_v12 = vld [vmem:[#allocation2 + $0x90] ss:$2 sm:$0xff] }
 0x248   : > { %v3427_v40 = vmax.f32 %v3306_v31, %v3370_v39  ;;  %v4127_v36 = vsel %vm8025_vm0, 0.0, %v4089_v33  ;;  %v4033_v0 = vrot.slane %v8046_v23, 1  ;;  %v3376_v14 = vld [vmem:[#allocation2 + $0x91] ss:$2 sm:$0xff]  ;;  %v9026_v31 = vand.u32 7, %v6165_v7 }
 0x249   : > { %3289 = vst.msk [vmem:[#allocation2 + $0x1d8] sm:$0xff] %vm2432_vm5, %v3225_v61  ;;  %v3224_v57 = vadd.f32 %v7534_v19, %v3153_v49  ;;  %4245 = vrot.lane.b32.xlu0 %v8032_v56, %s9077_s22  ;;  %v4057_v32 = vrot.slane %v8032_v56, 1  ;;  %v3929_v41 = vrot.slane %v8032_v56, 7  ;;  %v5952_v19 = vld [vmem:[%s8958_s2] ss:$0 sm:$0xff]  ;;  %v4034_v15 = vrot.slane %v8048_v52, 1 }
 0x24a   : > { %v5789_v51 = vpop.f32.mrf.mxu1  ;;  %v3459_v6 = vmul.f32 0.2, %v3427_v40  ;;  %v5954_v61 = vld [vmem:[%s8960_s4] ss:$0 sm:$0xff]  ;;  %vm8118_vm9 = vcmp.ge.s32.totalorder %v9026_v31, 7 }
 0x24b   : > { %3288 = vst.msk [vmem:[#allocation2 + $0x1d0] sm:$0xff] %vm2432_vm5, %v3224_v57  ;;  %v3075_v21 = vadd.f32 %v5952_v19, %v5789_v51  ;;  %v4064_v35 = vsel %vm1662_vm1, %v4056_v58, %v4057_v32  ;;  %v8080_v8 = vsel %vm1405_vm6, %v3928_v9, %v3929_v41  ;;  %v9024_v9 = vand.u32 7, %v6661_v17  ;;  %v3310_v39 = vld [vmem:[#allocation2 + $0x80] ss:$2 sm:$0xff]  ;;  %v3388_v58 = vld [vmem:[#allocation2 + $0xf1] ss:$2 sm:$0xff] }
 0x24c   : > { %v3069_v59 = vpop.f32.mrf.mxu1  ;;  %v4152_v37 = vsel %vm8042_vm2, 0.0, %v4064_v35  ;;  %v4087_v51 = vsel %vm1662_vm1, %v4033_v0, %v4034_v15  ;;  %v8109_v35 = vmax.f32 %v3428_v45, %v3460_v29  ;;  %v3429_v45 = vmax.f32 %v3310_v39, %v3374_v38 }
 0x24d   : > { %v3156_v62 = vmul.f32 %v5953_v11, %v3075_v21  ;;  %v3070_v53 = vadd.f32 %v5952_v19, %v3069_v59  ;;  %4371 = vrot.lane.b32.xlu1 %v4152_v37, %s6019_s25  ;;  %4321 = vrot.lane.b32.xlu0 %v4127_v36, %s6019_s25  ;;  %vm8105_vm8 = vcmp.ge.s32.totalorder %v9024_v9, 7  ;;  %v3430_v36 = vmax.f32 %v3312_v12, %v3376_v14 }
 0x24e   : > { %v3344_v1 = vld [vmem:[#allocation2 + $0x190] ss:$2 sm:$0xff]  ;;  %v3408_v55 = vld [vmem:[#allocation2 + $0x191] ss:$2 sm:$0xff]  ;;  %v4129_v12 = vsel %vm8105_vm8, 0.0, %v4087_v51  ;;  %vm4103_vm2 = vcmp.ge.s32.totalorder %v9038_v46, 7 }
 0x24f   : > { %v3227_v49 = vadd.f32 %v5954_v61, %v3156_v62  ;;  %v3155_v33 = vmul.f32 %v5953_v11, %v3070_v53  ;;  %v3446_v57 = vmax.f32 %v3344_v1, %v3408_v55  ;;  %v8114_v55 = vmax.f32 %v3427_v40, %v3459_v6  ;;  %v3380_v51 = vld [vmem:[#allocation2 + $0xb1] ss:$2 sm:$0xff] }
 0x250   : > { %v4036_v40 = vrot.slane %v8109_v35, 1  ;;  %v3462_v6 = vmul.f32 0.2, %v3430_v36 }
 0x251   : > { %3291 = vst.msk [vmem:[#allocation2 + $0x1e8] sm:$0xff] %vm2432_vm5, %v3227_v49  ;;  %v3226_v59 = vadd.f32 %v5954_v61, %v3155_v33  ;;  %4197 = vrot.lane.b32.xlu0 %v8046_v23, %s9077_s22  ;;  %v3478_v37 = vmul.f32 0.2, %v3446_v57 }
 0x252   : > { %v5792_v62 = vpop.f32.mrf.mxu1  ;;  %v3352_v53 = vld [vmem:[#allocation2 + $0x1d0] ss:$2 sm:$0xff]  ;;  %v3416_v1 = vld [vmem:[#allocation2 + $0x1d1] ss:$2 sm:$0xff] }
 0x253   : > { %3290 = vst.msk [vmem:[#allocation2 + $0x1e0] sm:$0xff] %vm2432_vm5, %v3226_v59  ;;  %v3085_v29 = vadd.f32 %v5952_v19, %v5792_v62  ;;  %v3450_v14 = vmax.f32 %v3352_v53, %v3416_v1  ;;  %v8125_v49 = vmax.f32 %v3446_v57, %v3478_v37  ;;  %v9029_v59 = vand.u32 7, %v6707_v54  ;;  %v9241_v53 = vld [vmem:[#allocation19_spill] sm:$0xff] }
 0x254   : > { %v3079_v33 = vpop.f32.mrf.mxu1  ;;  %v4035_v37 = vrot.slane %v8114_v55, 1  ;;  %v3461_v62 = vmul.f32 0.2, %v3429_v45  ;;  %v9032_v1 = vand.u32 7, %v9241_v53 }
 0x255   : > { %v3158_v39 = vmul.f32 %v5953_v11, %v3085_v29  ;;  %v3080_v38 = vadd.f32 %v5952_v19, %v3079_v33  ;;  %4325 = vrot.lane.b32.xlu0 %v4129_v12, %s6019_s25  ;;  %v3482_v21 = vmul.f32 0.2, %v3450_v14  ;;  %v9028_v57 = vrot.slane %v8125_v49, 7  ;;  %v3320_v12 = vld [vmem:[#allocation2 + $0xd0] ss:$2 sm:$0xff] }
 0x256   : > { %v4088_v29 = vsel %vm1662_vm1, %v4032_v27, %v4033_v0  ;;  %vm8155_vm13 = vcmp.ge.s32.totalorder %v9029_v59, 7  ;;  %v3432_v33 = vmax.f32 %v3316_v43, %v3380_v51  ;;  %v4085_v27 = vsel %vm1662_vm1, %v4035_v37, %v4036_v40 }
 0x257   : > { %v3229_v22 = vadd.f32 %v5954_v61, %v3158_v39  ;;  %v3157_v3 = vmul.f32 %v5953_v11, %v3080_v38  ;;  %v8139_v16 = vmax.f32 %v3450_v14, %v3482_v21  ;;  %v8147_v19 = vsel %vm1405_vm6, %v9028_v57, %v3927_v10  ;;  %v3314_v11 = vld [vmem:[#allocation2 + $0xa0] ss:$2 sm:$0xff]  ;;  %v3378_v14 = vld [vmem:[#allocation2 + $0xa1] ss:$2 sm:$0xff] }
 0x258   : > { %v8171_v0 = vmax.f32 %v3430_v36, %v3462_v6  ;;  %vm8177_vm4 = vcmp.lt.s32.totalorder %v9032_v1, 1  ;;  %v8182_v21 = vmax.f32 %v3429_v45, %v3461_v62  ;;  %v3431_v51 = vmax.f32 %v3314_v11, %v3378_v14  ;;  %v9246_v62 = vld [vmem:[#allocation8_spill] sm:$0xff]  ;;  %v3384_v11 = vld [vmem:[#allocation2 + $0xd1] ss:$2 sm:$0xff]  ;;  %v9247_v14 = vld [vmem:[#allocation21_spill] sm:$0xff] }
 0x259   : > { %3293 = vst.msk [vmem:[#allocation2 + $0x1f8] sm:$0xff] %vm2432_vm5, %v3229_v22  ;;  %v3228_v10 = vadd.f32 %v5954_v61, %v3157_v3  ;;  %4247 = vrot.lane.b32.xlu1 %v8139_v16, %s9077_s22  ;;  %4201 = vrot.lane.b32.xlu0 %v8114_v55, %s9077_s22  ;;  %v9033_v43 = vrot.slane %v8139_v16, 1  ;;  %v9027_v38 = vrot.slane %v8139_v16, 7  ;;  %v4128_v6 = vsel %vm8118_vm9, 0.0, %v4088_v29  ;;  %v9249_v1 = vld [vmem:[#allocation9_spill] sm:$0xff]  ;;  %v9254_v39 = vld [vmem:[#allocation23_spill] sm:$0xff] }
 0x25a   : > { %v4131_v22 = vsel %vm8155_vm13, 0.0, %v4085_v27  ;;  %v3464_v3 = vmul.f32 0.2, %v3432_v33  ;;  %v9030_v29 = vand.u32 7, %v9246_v62  ;;  %v9035_v56 = vand.u32 7, %v9247_v14 }
 0x25b   : > { %3292 = vst.msk [vmem:[#allocation2 + $0x1f0] sm:$0xff] %vm2432_vm5, %v3228_v10  ;;  %v8190_v36 = vsel %vm1662_vm1, %v4057_v32, %v9033_v43  ;;  %v8202_v45 = vsel %vm1405_vm6, %v3929_v41, %v9027_v38  ;;  %v4038_v32 = vrot.slane %v8171_v0, 1  ;;  %v4037_v10 = vrot.slane %v8182_v21, 1 }
 0x25c   : > { %v3463_v41 = vmul.f32 0.2, %v3431_v51  ;;  %vm4098_vm7 = vcmp.ge.s32.totalorder %v9030_v29, 7  ;;  %v8215_v27 = vmax.f32 %v3432_v33, %v3464_v3  ;;  %v4086_v38 = vsel %vm1662_vm1, %v4034_v15, %v4035_v37  ;;  %v3324_v37 = vld [vmem:[#allocation2 + $0xf0] ss:$2 sm:$0xff] }
 0x25d   : > { %4323 = vrot.lane.b32.xlu1 %v4128_v6, %s6019_s25  ;;  %4329 = vrot.lane.b32.xlu0 %v4131_v22, %s6019_s25  ;;  %v3318_v6 = vld [vmem:[#allocation2 + $0xc0] ss:$2 sm:$0xff]  ;;  %v3382_v22 = vld [vmem:[#allocation2 + $0xc1] ss:$2 sm:$0xff]  ;;  %v4083_v57 = vsel %vm1662_vm1, %v4037_v10, %v4038_v32  ;;  %vm4101_vm14 = vcmp.ge.s32.totalorder %v9035_v56, 7  ;;  %v3434_v33 = vmax.f32 %v3320_v12, %v3384_v11  ;;  %v4130_v29 = vsel %vm4098_vm7, 0.0, %v4086_v38 }
 0x25e   : > { %9248 = vst [vmem:[#allocation19_spill] sm:$0xff] %v8215_v27  ;;  %v8231_v3 = vmax.f32 %v3431_v51, %v3463_v41  ;;  %v3433_v59 = vmax.f32 %v3318_v6, %v3382_v22  ;;  %v4133_v9 = vsel %vm4101_vm14, 0.0, %v4083_v57  ;;  %v4040_v18 = vrot.slane %v8215_v27, 1  ;;  %v3322_v57 = vld [vmem:[#allocation2 + $0xe0] ss:$2 sm:$0xff] }
 0x25f   : > { %v3466_v15 = vmul.f32 0.2, %v3434_v33  ;;  %v9036_v43 = vand.u32 7, %v9249_v1  ;;  %v3386_v38 = vld [vmem:[#allocation2 + $0xe1] ss:$2 sm:$0xff]  ;;  %v3436_v11 = vmax.f32 %v3324_v37, %v3388_v58  ;;  %v9045_v46 = vand.u32 7, %v9254_v39 }
 0x260   : > { %v4039_v12 = vrot.slane %v8231_v3, 1  ;;  %v3465_v51 = vmul.f32 0.2, %v3433_v59  ;;  %v3435_v6 = vmax.f32 %v3322_v57, %v3386_v38  ;;  %v3390_v57 = vld [vmem:[#allocation2 + $0x101] ss:$2 sm:$0xff]  ;;  %v4054_v31 = vrot.slane %v8125_v49, 1 }
 0x261   : > { %4199 = vrot.lane.b32.xlu1 %v8048_v52, %s9077_s22  ;;  %4205 = vrot.lane.b32.xlu0 %v8182_v21, %s9077_s22  ;;  %vm4100_vm0 = vcmp.ge.s32.totalorder %v9036_v43, 7  ;;  %v8253_v41 = vmax.f32 %v3434_v33, %v3466_v15  ;;  %v3468_v56 = vmul.f32 0.2, %v3436_v11  ;;  %vm4105_vm9 = vcmp.ge.s32.totalorder %v9045_v46, 7  ;;  %v3394_v39 = vld [vmem:[#allocation2 + $0x121] ss:$2 sm:$0xff] }
 0x262   : > { %v8255_v58 = vmax.f32 %v3433_v59, %v3465_v51  ;;  %v3467_v59 = vmul.f32 0.2, %v3435_v6  ;;  %v3326_v51 = vld [vmem:[#allocation2 + $0x100] ss:$2 sm:$0xff]  ;;  %v4082_v38 = vsel %vm1662_vm1, %v4038_v32, %v4039_v12  ;;  %v3332_v32 = vld [vmem:[#allocation2 + $0x130] ss:$2 sm:$0xff] }
 0x263   : > { %9251 = vst [vmem:[#allocation8_spill] sm:$0xff] %v8253_v41  ;;  %v8265_v15 = vmax.f32 %v3436_v11, %v3468_v56  ;;  %v3438_v56 = vmax.f32 %v3328_v2, %v3392_v44  ;;  %v9258_v46 = vld [vmem:[#allocation24_spill] sm:$0xff] }
 0x264   : > { %9252 = vst [vmem:[#allocation21_spill] sm:$0xff] %v8255_v58  ;;  %v4041_v33 = vrot.slane %v8255_v58, 1  ;;  %v8279_v11 = vmax.f32 %v3435_v6, %v3467_v59  ;;  %v9050_v2 = vand.u32 7, %v9258_v46  ;;  %v3400_v46 = vld [vmem:[#allocation2 + $0x151] ss:$2 sm:$0xff] }
 0x265   : > { %4327 = vrot.lane.b32.xlu1 %v4130_v29, %s6019_s25  ;;  %4333 = vrot.lane.b32.xlu0 %v4133_v9, %s6019_s25  ;;  %v4084_v9 = vsel %vm1662_vm1, %v4036_v40, %v4037_v10  ;;  %v4081_v29 = vsel %vm1662_vm1, %v4039_v12, %v4040_v18  ;;  %v4042_v40 = vrot.slane %v8253_v41, 1  ;;  %v9253_v10 = vld [vmem:[#allocation10_spill] sm:$0xff]  ;;  %9255 = vst [vmem:[#allocation9_spill] sm:$0xff] %v8265_v15  ;;  %v3470_v48 = vmul.f32 0.2, %v3438_v56 }
 0x266   : > { %v4132_v22 = vsel %vm4100_vm0, 0.0, %v4084_v9  ;;  %v4135_v37 = vsel %vm4103_vm2, 0.0, %v4081_v29  ;;  %v9039_v43 = vand.u32 7, %v9253_v10  ;;  %9256 = vst [vmem:[#allocation31_spill] sm:$0xff] %v8279_v11  ;;  %v3437_v29 = vmax.f32 %v3326_v51, %v3390_v57  ;;  %v3396_v12 = vld [vmem:[#allocation2 + $0x131] ss:$2 sm:$0xff] }
 0x267   : > { %v4079_v9 = vsel %vm1662_vm1, %v4041_v33, %v4042_v40  ;;  %v4043_v44 = vrot.slane %v8279_v11, 1  ;;  %v4080_v59 = vsel %vm1662_vm1, %v4040_v18, %v4041_v33  ;;  %v3440_v51 = vmax.f32 %v3332_v32, %v3396_v12  ;;  %v9265_v10 = vld [vmem:[#allocation14_spill] sm:$0xff] }
 0x268   : > { %vm4102_vm8 = vcmp.ge.s32.totalorder %v9039_v43, 7  ;;  %v4044_v43 = vrot.slane %v8265_v15, 1  ;;  %v3469_v6 = vmul.f32 0.2, %v3437_v29  ;;  %vm4107_vm7 = vcmp.ge.s32.totalorder %v9050_v2, 7  ;;  %v9261_v2 = vld [vmem:[#allocation25_spill] sm:$0xff] }
 0x269   : > { %4203 = vrot.lane.b32.xlu1 %v8109_v35, %s9077_s22  ;;  %4209 = vrot.lane.b32.xlu0 %v8231_v3, %s9077_s22 }
 0x26a   : > { %v4077_v57 = vsel %vm1662_vm1, %v4043_v44, %v4044_v43  ;;  %v8301_v18 = vmax.f32 %v3437_v29, %v3469_v6  ;;  %v3334_v29 = vld [vmem:[#allocation2 + $0x140] ss:$2 sm:$0xff]  ;;  %v3398_v6 = vld [vmem:[#allocation2 + $0x141] ss:$2 sm:$0xff] }
 0x26c   : > { %9259 = vst [vmem:[#allocation32_spill] sm:$0xff] %v8301_v18 }
 0x26d   : > { %4331 = vrot.lane.b32.xlu1 %v4132_v22, %s6019_s25  ;;  %4337 = vrot.lane.b32.xlu0 %v4135_v37, %s6019_s25  ;;  %v4134_v22 = vsel %vm4102_vm8, 0.0, %v4082_v38  ;;  %v4137_v37 = vsel %vm4105_vm9, 0.0, %v4079_v9  ;;  %v8299_v38 = vmax.f32 %v3438_v56, %v3470_v48  ;;  %v3439_v9 = vmax.f32 %v3330_v47, %v3394_v39 }
 0x26e   : > { %v9056_v48 = vand.u32 7, %v9261_v2  ;;  %v4045_v47 = vrot.slane %v8301_v18, 1  ;;  %v4078_v39 = vsel %vm1662_vm1, %v4042_v40, %v4043_v44  ;;  %v3404_v2 = vld [vmem:[#allocation2 + $0x171] ss:$2 sm:$0xff] }
 0x26f   : > { %v4046_v32 = vrot.slane %v8299_v38, 1  ;;  %v3471_v12 = vmul.f32 0.2, %v3439_v9 }
 0x270   : > { %vm4109_vm0 = vcmp.ge.s32.totalorder %v9056_v48, 7  ;;  %v3356_v48 = vld [vmem:[#allocation2 + $0x1f0] ss:$2 sm:$0xff] }
 0x271   : > { %4207 = vrot.lane.b32.xlu1 %v8171_v0, %s9077_s22  ;;  %4213 = vrot.lane.b32.xlu0 %v8255_v58, %s9077_s22  ;;  %v9046_v58 = vand.u32 7, %v9257_v28  ;;  %v3336_v28 = vld [vmem:[#allocation2 + $0x150] ss:$2 sm:$0xff]  ;;  %v8323_v40 = vmax.f32 %v3439_v9, %v3471_v12  ;;  %v3420_v9 = vld [vmem:[#allocation2 + $0x1f1] ss:$2 sm:$0xff] }
 0x272   : > { %v3442_v44 = vmax.f32 %v3336_v28, %v3400_v46  ;;  %v9264_v12 = vld [vmem:[#allocation26_spill] sm:$0xff] }
 0x273   : > { %vm4104_vm13 = vcmp.ge.s32.totalorder %v9046_v58, 7  ;;  %v9260_v58 = vld [vmem:[#allocation12_spill] sm:$0xff]  ;;  %9262 = vst [vmem:[#allocation33_spill] sm:$0xff] %v8323_v40  ;;  %v9065_v46 = vand.u32 7, %v9264_v12  ;;  %v9066_v12 = vand.u32 7, %v9265_v10 }
 0x274   : > { %v4136_v33 = vsel %vm4104_vm13, 0.0, %v4080_v59  ;;  %v4075_v59 = vsel %vm1662_vm1, %v4045_v47, %v4046_v32 }
 0x275   : > { %4335 = vrot.lane.b32.xlu1 %v4134_v22, %s6019_s25  ;;  %4341 = vrot.lane.b32.xlu0 %v4137_v37, %s6019_s25  ;;  %v4139_v22 = vsel %vm4107_vm7, 0.0, %v4077_v57  ;;  %v3472_v37 = vmul.f32 0.2, %v3440_v51  ;;  %v3441_v57 = vmax.f32 %v3334_v29, %v3398_v6  ;;  %v3338_v6 = vld [vmem:[#allocation2 + $0x160] ss:$2 sm:$0xff]  ;;  %vm4111_vm8 = vcmp.ge.s32.totalorder %v9065_v46, 7 }
 0x276   : > { %v9266_v46 = vld [vmem:[#allocation27_spill] sm:$0xff]  ;;  %vm4110_vm9 = vcmp.ge.s32.totalorder %v9066_v12, 7 }
 0x277   : > { %v8313_v56 = vmax.f32 %v3440_v51, %v3472_v37  ;;  %v9263_v37 = vld [vmem:[#allocation13_spill] sm:$0xff]  ;;  %v3473_v28 = vmul.f32 0.2, %v3441_v57 }
 0x279   : > { %4211 = vrot.lane.b32.xlu1 %v8215_v27, %s9077_s22  ;;  %4217 = vrot.lane.b32.xlu0 %v8279_v11, %s9077_s22  ;;  %v9051_v11 = vand.u32 7, %v9260_v58  ;;  %v3474_v58 = vmul.f32 0.2, %v3442_v44 }
 0x27b   : > { %vm4106_vm14 = vcmp.ge.s32.totalorder %v9051_v11, 7  ;;  %v9057_v11 = vand.u32 7, %v9263_v37 }
 0x27c   : > { %v4138_v51 = vsel %vm4106_vm14, 0.0, %v4078_v39  ;;  %v4076_v39 = vsel %vm1662_vm1, %v4044_v43, %v4045_v47  ;;  %v8345_v43 = vmax.f32 %v3442_v44, %v3474_v58  ;;  %v9067_v58 = vand.u32 7, %v9266_v46  ;;  %v3342_v44 = vld [vmem:[#allocation2 + $0x180] ss:$2 sm:$0xff] }
 0x27d   : > { %4339 = vrot.lane.b32.xlu1 %v4136_v33, %s6019_s25  ;;  %4345 = vrot.lane.b32.xlu0 %v4139_v22, %s6019_s25  ;;  %v4141_v33 = vsel %vm4109_vm0, 0.0, %v4075_v59  ;;  %v9059_v22 = vrot.slane %v8313_v56, 1  ;;  %vm4108_vm2 = vcmp.ge.s32.totalorder %v9057_v11, 7  ;;  %v3402_v59 = vld [vmem:[#allocation2 + $0x161] ss:$2 sm:$0xff] }
 0x27e   : > { %v3443_v11 = vmax.f32 %v3338_v6, %v3402_v59  ;;  %v4140_v37 = vsel %vm4108_vm2, 0.0, %v4076_v39  ;;  %vm4113_vm13 = vcmp.ge.s32.totalorder %v9067_v58, 7  ;;  %v9268_v59 = vld [vmem:[#allocation15_spill] sm:$0xff]  ;;  %v9269_v58 = vld [vmem:[#allocation28_spill] sm:$0xff]  ;;  %vm4445_vm2 = vcmask 130048  }
 0x27f   : > { %v9069_v12 = vand.u32 7, %v9268_v59 }
 0x281   : > { %4215 = vrot.lane.b32.xlu1 %v8253_v41, %s9077_s22  ;;  %4221 = vrot.lane.b32.xlu0 %v8301_v18, %s9077_s22  ;;  %v4047_v18 = vrot.slane %v8323_v40, 1  ;;  %v3340_v41 = vld [vmem:[#allocation2 + $0x170] ss:$2 sm:$0xff]  ;;  %vm8382_vm7 = vcmp.ge.s32.totalorder %v9069_v12, 7  ;;  %v3354_v12 = vld [vmem:[#allocation2 + $0x1e0] ss:$2 sm:$0xff] }
 0x282   : > { %v3444_v47 = vmax.f32 %v3340_v41, %v3404_v2  ;;  %v3475_v2 = vmul.f32 0.2, %v3443_v11 }
 0x283   : > { %v4073_v29 = vsel %vm1662_vm1, %v4047_v18, %v9059_v22 }
 0x284   : > { %v4143_v22 = vsel %vm4111_vm8, 0.0, %v4073_v29  ;;  %v3476_v27 = vmul.f32 0.2, %v3444_v47 }
 0x285   : > { %4343 = vrot.lane.b32.xlu1 %v4138_v51, %s6019_s25  ;;  %4349 = vrot.lane.b32.xlu0 %v4141_v33, %s6019_s25  ;;  %v3452_v51 = vmax.f32 %v3356_v48, %v3420_v9  ;;  %v8347_v33 = vmax.f32 %v3441_v57, %v3473_v28  ;;  %v4074_v48 = vsel %vm1662_vm1, %v4046_v32, %v4047_v18  ;;  %v3406_v57 = vld [vmem:[#allocation2 + $0x181] ss:$2 sm:$0xff] }
 0x286   : > { %v8371_v32 = vmax.f32 %v3443_v11, %v3475_v2  ;;  %v3445_v9 = vmax.f32 %v3342_v44, %v3406_v57  ;;  %v4142_v28 = vsel %vm4110_vm9, 0.0, %v4074_v48  ;;  %v9274_v48 = vrot.slane %v8313_v56, 1 }
 0x287   : > { %v4049_v41 = vrot.slane %v8347_v33, 1 }
 0x288   : > { %9267 = vst [vmem:[#allocation14_spill] sm:$0xff] %v8371_v32  ;;  %v3477_v11 = vmul.f32 0.2, %v3445_v9 }
 0x289   : > { %4219 = vrot.lane.b32.xlu1 %v8265_v15, %s9077_s22  ;;  %4225 = vrot.lane.b32.xlu0 %v8323_v40, %s9077_s22  ;;  %v4050_v15 = vrot.slane %v8345_v43, 1  ;;  %v3484_v40 = vmul.f32 0.2, %v3452_v51  ;;  %v4072_v44 = vsel %vm1662_vm1, %v9274_v48, %v4049_v41  ;;  %v9279_v48 = vsel %vm8130_vm11, 0.0, %v8147_v19  ;;  %v9280_v19 = vld [vmem:[#allocation16_spill] sm:$0xff] }
 0x28a   : > { %v4144_v46 = vsel %vm8382_vm7, 0.0, %v4072_v44  ;;  %vm4488_vm11 = vcmask 195584   ;;  %v9281_v44 = vld [vmem:[#allocation29_spill] sm:$0xff] }
 0x28b   : > { %v8369_v18 = vmax.f32 %v3452_v51, %v3484_v40  ;;  %v4051_v40 = vrot.slane %v8371_v32, 1  ;;  %v9076_v2 = vand.u32 7, %v9281_v44 }
 0x28d   : > { %4347 = vrot.lane.b32.xlu1 %v4140_v37, %s6019_s25  ;;  %4353 = vrot.lane.b32.xlu0 %v4143_v22, %s6019_s25  ;;  %v4071_v22 = vsel %vm1662_vm1, %v4049_v41, %v4050_v15  ;;  %v8367_v37 = vmax.f32 %v3444_v47, %v3476_v27  ;;  %v9074_v6 = vrot.slane %v8369_v18, 7  ;;  %v9068_v27 = vand.u32 7, %v9269_v58  ;;  %v4190_v47 = vpop.permute.xlu0 %4189  ;;  %v3418_v58 = vld [vmem:[#allocation2 + $0x1e1] ss:$2 sm:$0xff] }
 0x28e   : > { %v4145_v39 = vsel %vm4113_vm13, 0.0, %v4071_v22  ;;  %v9275_v22 = vand.u32 7, %v6153_v4  ;;  %v8414_v41 = vmax.f32 %v3445_v9, %v3477_v11  ;;  %v3451_v9 = vmax.f32 %v3354_v12, %v3418_v58 }
 0x28f   : > { %v4052_v29 = vrot.slane %v8367_v37, 1  ;;  %vm8388_vm14 = vcmp.ge.s32.totalorder %v9068_v27, 7  ;;  %v3668_v11 = vand.u32 7, %v9280_v19  ;;  %v4070_v12 = vsel %vm1662_vm1, %v4050_v15, %v4051_v40  ;;  %v9283_v15 = vld [vmem:[#allocation17_spill] sm:$0xff] }
 0x290   : > { %vm8404_vm0 = vcmp.lt.s32.totalorder %v9275_v22, 1  ;;  %vm4117_vm9 = vcmp.ge.s32.totalorder %v9076_v2, 7  ;;  %v3483_v58 = vmul.f32 0.2, %v3451_v9  ;;  %v3925_v19 = vrot.slane %v8414_v41, 7 }
 0x291   : > { %4223 = vrot.lane.b32.xlu1 %v8299_v38, %s9077_s22  ;;  %4229 = vrot.lane.b32.xlu0 %v8347_v33, %s9077_s22  ;;  %v4069_v57 = vsel %vm1662_vm1, %v4051_v40, %v4052_v29  ;;  %vm4114_vm8 = vcmp.ge.s32.totalorder %v3668_v11, 7  ;;  %v3682_v40 = vand.u32 7, %v9283_v15 }
 0x292   : > { %v4147_v59 = vsel %vm8388_vm14, 0.0, %v4069_v57  ;;  %v4053_v57 = vrot.slane %v8414_v41, 1 }
 0x293   : > { %vm4116_vm7 = vcmp.ge.s32.totalorder %v3682_v40, 7 }
 0x295   : > { %4351 = vrot.lane.b32.xlu1 %v4142_v28, %s6019_s25  ;;  %4357 = vrot.lane.b32.xlu0 %v4145_v39, %s6019_s25  ;;  %v9278_v39 = vrot.slane %v7609_v63, 7  ;;  %v9282_v28 = vand.u32 7, %v7211_v42  ;;  %v9284_v42 = vld [vmem:[#allocation30_spill] sm:$0xff] }
 0x297   : > { %v3964_v27 = vsel %vm1405_vm6, %v9074_v6, %v9278_v39  ;;  %vm4121_vm13 = vcmp.ge.s32.totalorder %v9282_v28, 7  ;;  %v9287_v6 = vsel %vm7643_vm10, 0.0, %v7664_v50 }
 0x298   : > { %v3997_v39 = vsel %vm8404_vm0, 0.0, %v3964_v27 }
 0x299   : > { %4227 = vrot.lane.b32.xlu1 %v8313_v56, %s9077_s22  ;;  %4233 = vrot.lane.b32.xlu0 %v8371_v32, %s9077_s22  ;;  %v4413_v51 = vsel %vm2432_vm5, %v3997_v39, %v4190_v47  ;;  %v4192_v39 = vpop.permute.xlu1 %4191 }
 0x29b   : > { %v4242_v32 = vpop.permute.xlu0 %4241 }
 0x29c   : > { %v4439_v22 = vsel %vm2432_vm5, %v9279_v48, %v4242_v32  ;;  %v8452_v48 = vmax.f32 %v3451_v9, %v3483_v58 }
 0x29d   : > { %4355 = vrot.lane.b32.xlu1 %v4144_v46, %s6019_s25  ;;  %4361 = vrot.lane.b32.xlu0 %v4147_v59, %s6019_s25  ;;  %v4067_v46 = vsel %vm1662_vm1, %v4053_v57, %v4054_v31  ;;  %v4146_v59 = vsel %vm4114_vm8, 0.0, %v4070_v12  ;;  %v4060_v12 = vrot.slane %v8369_v18, 1 }
 0x29e   : > { %v4149_v47 = vsel %vm4117_vm9, 0.0, %v4067_v46  ;;  %v4059_v9 = vrot.slane %v8452_v48, 1 }
 0x29f   : > { %v4318_v32 = vpop.permute.xlu0 %4317 }
 0x2a0   : > { %v4446_v27 = vsel %vm4445_vm2, %v4413_v51, %v4318_v32  ;;  %v4153_v32 = vsel %vm4121_vm13, 0.0, %v8190_v36  ;;  %v4068_v51 = vsel %vm1662_vm1, %v4052_v29, %v4053_v57  ;;  %v4061_v36 = vsel %vm1662_vm1, %v4059_v9, %v4060_v12 }
 0x2a1   : > { %4231 = vrot.lane.b32.xlu1 %v8345_v43, %s9077_s22  ;;  %4237 = vrot.lane.b32.xlu0 %v8414_v41, %s9077_s22  ;;  %v4148_v57 = vsel %vm4116_vm7, 0.0, %v4068_v51  ;;  %v9336_v41 = vand.u32 7, %v9281_v44  ;;  %v9337_v44 = vrot.slane %v8125_v49, 7 }
 0x2a2   : > { %5799 = vmatprep.mubr.msk.f32.mxu1 %vm4488_vm11, %v4446_v27  ;;  %v9075_v27 = vand.u32 7, %v9284_v42 }
 0x2a3   : > { %v4194_v46 = vpop.permute.xlu0 %4193 }
 0x2a4   : > { %vm4123_vm14 = vcmp.ge.s32.totalorder %v9075_v27, 7  ;;  %v4414_v27 = vsel %vm2432_vm5, %v9287_v6, %v4192_v39  ;;  %v9289_v6 = vrot.slane %v8139_v16, 1 }
 0x2a5   : > { %4359 = vrot.lane.b32.xlu1 %v4146_v59, %s6019_s25  ;;  %4365 = vrot.lane.b32.xlu0 %v4149_v47, %s6019_s25  ;;  %v9285_v59 = vsel %vm7972_vm15, 0.0, %v7996_v25  ;;  %v9286_v47 = vld [vmem:[#allocation18_spill] sm:$0xff] }
 0x2a6   : > { %v3696_v28 = vand.u32 7, %v9286_v47 }
 0x2a8   : > { %vm4118_vm10 = vcmp.ge.s32.totalorder %v3696_v28, 7 }
 0x2a9   : > { %4235 = vrot.lane.b32.xlu1 %v8367_v37, %s9077_s22  ;;  %4373 = vrot.lane.b32.xlu0 %v4153_v32, %s6019_s25  ;;  %v4155_v32 = vsel %vm4123_vm14, 0.0, %v4061_v36 }
 0x2ab   : > { %v4244_v58 = vpop.permute.xlu1 %4243 }
 0x2ac   : > { %v4440_v29 = vsel %vm2432_vm5, %v9285_v59, %v4244_v58  ;;  %v9288_v58 = vrot.slane %v7909_v30, 1  ;;  %v9292_v59 = vsel %vm8058_vm3, 0.0, %v8080_v8  ;;  %v4415_v8 = vsel %vm2432_vm5, %v9294_v13, %v4194_v46 }
 0x2ad   : > { %4363 = vrot.lane.b32.xlu1 %v4148_v57, %s6019_s25  ;;  %4249 = vrot.lane.b32.xlu0 %v8452_v48, %s9077_s22  ;;  %v9295_v46 = vrot.slane %v7690_v34, 7 }
 0x2ae   : > { %v4066_v60 = vsel %vm1662_vm1, %v4054_v31, %v9288_v58  ;;  %v9291_v31 = vld [vmem:[#allocation20_spill] sm:$0xff] }
 0x2af   : > { %v4320_v5 = vpop.permute.xlu1 %4319  ;;  %v4370_v2 = vpop.permute.xlu0 %4369  ;;  %v4150_v50 = vsel %vm4118_vm10, 0.0, %v4066_v60  ;;  %v3738_v39 = vand.u32 7, %v9291_v31  ;;  %v3904_v60 = vrot.slane %v8007_v20, 7  ;;  %v9298_v20 = vsel %vm8177_vm4, 0.0, %v8202_v45  ;;  %v8759_v31 = vld [vmem:[%s8962_s6] ss:$0 sm:$0xff] }
 0x2b0   : > { %v4447_v25 = vsel %vm4445_vm2, %v4414_v27, %v4320_v5  ;;  %v8486_v51 = vsel %vm4445_vm2, %v4439_v22, %v4370_v2  ;;  %v4062_v22 = vsel %vm1662_vm1, %v9289_v6, %v4059_v9  ;;  %v9290_v2 = vand.u32 7, %v9241_v53 }
 0x2b1   : > { %4239 = vrot.lane.b32.xlu1 %v8125_v49, %s9077_s22  ;;  %4377 = vrot.lane.b32.xlu0 %v4155_v32, %s6019_s25  ;;  %v9293_v53 = vrot.slane %v7609_v63, 1  ;;  %vm4124_vm0 = vcmp.ge.s32.totalorder %v3738_v39, 7 }
 0x2b2   : > { %5800 = vmatmul.mubr.msk.f32.vlgmr.msra.gmra.mxu1 %vm4488_vm11, %v4447_v25  ;;  %vm4122_vm15 = vcmp.ge.s32.totalorder %v9290_v2, 7  ;;  %v3960_v2 = vsel %vm1405_vm6, %v3904_v60, %v3905_v26 }
 0x2b3   : > { %v4154_v30 = vsel %vm4122_vm15, 0.0, %v4062_v22  ;;  %v4196_v27 = vpop.permute.xlu1 %4195  ;;  %v4092_v9 = vsel %vm1662_vm1, %v4060_v12, %v9293_v53 }
 0x2b4   : > { %v4156_v63 = vsel %vm4124_vm0, 0.0, %v4092_v9 }
 0x2b5   : > { %4367 = vrot.lane.b32.xlu1 %v4150_v50, %s6019_s25  ;;  %v3961_v50 = vsel %vm1405_vm6, %v9295_v46, %v3904_v60  ;;  %v3908_v60 = vrot.slane %v8109_v35, 7 }
 0x2b9   : > { %4375 = vrot.lane.b32.xlu1 %v4154_v30, %s6019_s25  ;;  %v9297_v30 = vand.u32 7, %v6661_v17  ;;  %v3907_v17 = vrot.slane %v8114_v55, 7  ;;  %v9300_v55 = vand.u32 7, %v6707_v54 }
 0x2bb   : > { %v4246_v36 = vpop.permute.xlu0 %4245  ;;  %vm3969_vm12 = vcmp.lt.s32.totalorder %v9297_v30, 1  ;;  %vm3971_vm4 = vcmp.lt.s32.totalorder %v9300_v55, 1  ;;  %v3957_v54 = vsel %vm1405_vm6, %v3907_v17, %v3908_v60  ;;  %v9307_v55 = vld [vmem:[#allocation19_spill] sm:$0xff] }
 0x2bc   : > { %v8512_v57 = vsel %vm2432_vm5, %v9292_v59, %v4246_v36  ;;  %v3906_v59 = vrot.slane %v8048_v52, 7 }
 0x2bd   : > { %4251 = vrot.lane.b32.xlu1 %v8369_v18, %s9077_s22 }
 0x2be   : > { %v3959_v45 = vsel %vm1405_vm6, %v3905_v26, %v3906_v59 }
 0x2bf   : > { %v4372_v32 = vpop.permute.xlu1 %4371  ;;  %v4322_v5 = vpop.permute.xlu0 %4321 }
 0x2c0   : > { %v8528_v25 = vsel %vm4445_vm2, %v4440_v29, %v4372_v32  ;;  %v4448_v58 = vsel %vm4445_vm2, %v4415_v8, %v4322_v5  ;;  %v9296_v29 = vand.u32 7, %v6165_v7  ;;  %v4001_v7 = vsel %vm3969_vm12, 0.0, %v3960_v2 }
 0x2c1   : > { %4379 = vrot.lane.b32.xlu1 %v4156_v63, %s6019_s25  ;;  %5802 = vmatprep.mubr.msk.f32.mxu1 %vm4488_vm11, %v4448_v58  ;;  %v3958_v5 = vsel %vm1405_vm6, %v3906_v59, %v3907_v17  ;;  %v9303_v17 = vld [vmem:[#allocation10_spill] sm:$0xff] }
 0x2c2   : > { %vm3968_vm1 = vcmp.lt.s32.totalorder %v9296_v29, 1  ;;  %v4003_v63 = vsel %vm3971_vm4, 0.0, %v3958_v5 }
 0x2c3   : > { %v4198_v12 = vpop.permute.xlu0 %4197  ;;  %v4000_v23 = vsel %vm3968_vm1, 0.0, %v3961_v50 }
 0x2c4   : > { %v4416_v36 = vsel %vm2432_vm5, %v4000_v23, %v4196_v27  ;;  %v4417_v13 = vsel %vm2432_vm5, %v4001_v7, %v4198_v12  ;;  %v9299_v27 = vand.u32 7, %v9246_v62  ;;  %v3909_v62 = vrot.slane %v8182_v21, 7 }
 0x2c5   : > { %v9302_v21 = vand.u32 7, %v9247_v14 }
 0x2c6   : > { %vm3970_vm3 = vcmp.lt.s32.totalorder %v9299_v27, 1 }
 0x2c7   : > { %v4326_v24 = vpop.permute.xlu0 %4325  ;;  %v4002_v58 = vsel %vm3970_vm3, 0.0, %v3959_v45  ;;  %vm3973_vm9 = vcmp.lt.s32.totalorder %v9302_v21, 1 }
 0x2c8   : > { %v4450_v61 = vsel %vm4445_vm2, %v4417_v13, %v4326_v24 }
 0x2cb   : > { %v4248_v6 = vpop.permute.xlu1 %4247  ;;  %v4202_v22 = vpop.permute.xlu0 %4201 }
 0x2cc   : > { %v8550_v34 = vsel %vm2432_vm5, %v9298_v20, %v4248_v6  ;;  %v4419_v26 = vsel %vm2432_vm5, %v4003_v63, %v4202_v22  ;;  %v9301_v6 = vand.u32 7, %v9249_v1  ;;  %v3956_v22 = vsel %vm1405_vm6, %v3908_v60, %v3909_v62 }
 0x2cd   : > { %v4005_v20 = vsel %vm3973_vm9, 0.0, %v3956_v22  ;;  %v3911_v1 = vrot.slane %v8231_v3, 7  ;;  %v9305_v3 = vld [vmem:[#allocation22_spill] sm:$0xff]  ;;  %v9311_v22 = vld [vmem:[#allocation23_spill] sm:$0xff] }
 0x2ce   : > { %vm3972_vm8 = vcmp.lt.s32.totalorder %v9301_v6, 1  ;;  %v9306_v27 = vand.u32 7, %v9305_v3  ;;  %v9312_v21 = vand.u32 7, %v9311_v22 }
 0x2cf   : > { %v4324_v53 = vpop.permute.xlu1 %4323  ;;  %v4330_v9 = vpop.permute.xlu0 %4329  ;;  %v4004_v30 = vsel %vm3972_vm8, 0.0, %v3957_v54 }
 0x2d0   : > { %v4449_v8 = vsel %vm4445_vm2, %v4416_v36, %v4324_v53  ;;  %v4452_v29 = vsel %vm4445_vm2, %v4419_v26, %v4330_v9  ;;  %v3910_v36 = vrot.slane %v8171_v0, 7  ;;  %vm3975_vm7 = vcmp.lt.s32.totalorder %v9306_v27, 1 }
 0x2d1   : > { %5803 = vmatmul.mubr.msk.f32.gmra.mxu1 %vm4488_vm11, %v4449_v8  ;;  %v9304_v8 = vand.u32 7, %v9303_v17  ;;  %vm3977_vm10 = vcmp.lt.s32.totalorder %v9312_v21, 1 }
 0x2d2   : > { %5805 = vmatprep.mubr.msk.f32.mxu1 %vm4488_vm11, %v4450_v61  ;;  %v3955_v14 = vsel %vm1405_vm6, %v3909_v62, %v3910_v36  ;;  %v3954_v45 = vsel %vm1405_vm6, %v3910_v36, %v3911_v1  ;;  %v9313_v36 = vld [vmem:[#allocation8_spill] sm:$0xff] }
 0x2d3   : > { %v4200_v52 = vpop.permute.xlu1 %4199  ;;  %v4206_v32 = vpop.permute.xlu0 %4205  ;;  %vm3974_vm13 = vcmp.lt.s32.totalorder %v9304_v8, 1 }
 0x2d4   : > { %v4418_v12 = vsel %vm2432_vm5, %v4002_v58, %v4200_v52  ;;  %v4421_v53 = vsel %vm2432_vm5, %v4005_v20, %v4206_v32  ;;  %v4006_v52 = vsel %vm3974_vm13, 0.0, %v3955_v14  ;;  %v4007_v32 = vsel %vm3975_vm7, 0.0, %v3954_v45 }
 0x2d5   : > { %v3912_v58 = vrot.slane %v9307_v55, 7  ;;  %vm3986_vm13 = vcmp.lt.s32.totalorder %v3668_v11, 1 }
 0x2d7   : > { %v4328_v24 = vpop.permute.xlu1 %4327  ;;  %v4334_v46 = vpop.permute.xlu0 %4333 }
 0x2d8   : > { %v4451_v50 = vsel %vm4445_vm2, %v4418_v12, %v4328_v24  ;;  %v4454_v13 = vsel %vm4445_vm2, %v4421_v53, %v4334_v46  ;;  %v9308_v24 = vld [vmem:[#allocation21_spill] sm:$0xff] }
 0x2d9   : > { %5806 = vmatmul.mubr.msk.f32.gmra.mxu1 %vm4488_vm11, %v4451_v50  ;;  %v3913_v46 = vrot.slane %v9308_v24, 7  ;;  %v3953_v50 = vsel %vm1405_vm6, %v3911_v1, %v3912_v58 }
 0x2da   : > { %5808 = vmatprep.mubr.msk.f32.mxu1 %vm4488_vm11, %v4452_v29  ;;  %v9309_v29 = vld [vmem:[#allocation11_spill] sm:$0xff] }
 0x2db   : > { %v4204_v35 = vpop.permute.xlu1 %4203  ;;  %v4210_v2 = vpop.permute.xlu0 %4209  ;;  %v9310_v54 = vand.u32 7, %v9309_v29 }
 0x2dc   : > { %v4420_v23 = vsel %vm2432_vm5, %v4004_v30, %v4204_v35  ;;  %v4423_v60 = vsel %vm2432_vm5, %v4007_v32, %v4210_v2  ;;  %v3952_v2 = vsel %vm1405_vm6, %v3912_v58, %v3913_v46 }
 0x2dd   : > { %vm3976_vm14 = vcmp.lt.s32.totalorder %v9310_v54, 1  ;;  %v4009_v20 = vsel %vm3977_vm10, 0.0, %v3952_v2  ;;  %vm3989_vm10 = vcmp.lt.s32.totalorder %v9336_v41, 1 }
 0x2de   : > { %v4008_v30 = vsel %vm3976_vm14, 0.0, %v3953_v50  ;;  %vm3988_vm14 = vcmp.lt.s32.totalorder %v3682_v40, 1 }
 0x2df   : > { %v4332_v7 = vpop.permute.xlu1 %4331  ;;  %v4338_v59 = vpop.permute.xlu0 %4337 }
 0x2e0   : > { %v4453_v9 = vsel %vm4445_vm2, %v4420_v23, %v4332_v7  ;;  %v4456_v62 = vsel %vm4445_vm2, %v4423_v60, %v4338_v59  ;;  %v3914_v7 = vrot.slane %v9313_v36, 7 }
 0x2e1   : > { %5809 = vmatmul.mubr.msk.f32.gmra.mxu1 %vm4488_vm11, %v4453_v9  ;;  %v9314_v9 = vld [vmem:[#allocation31_spill] sm:$0xff] }
 0x2e2   : > { %5811 = vmatprep.mubr.msk.f32.mxu1 %vm4488_vm11, %v4454_v13  ;;  %v3915_v13 = vrot.slane %v9314_v9, 7  ;;  %v3951_v8 = vsel %vm1405_vm6, %v3913_v46, %v3914_v7 }
 0x2e3   : > { %v4208_v0 = vpop.permute.xlu1 %4207  ;;  %v4214_v61 = vpop.permute.xlu0 %4213 }
 0x2e4   : > { %v4422_v5 = vsel %vm2432_vm5, %v4006_v52, %v4208_v0  ;;  %v4425_v1 = vsel %vm2432_vm5, %v4009_v20, %v4214_v61  ;;  %v9315_v0 = vld [vmem:[#allocation12_spill] sm:$0xff]  ;;  %v3950_v61 = vsel %vm1405_vm6, %v3914_v7, %v3915_v13 }
 0x2e5   : > { %v9316_v45 = vand.u32 7, %v9315_v0  ;;  %v9317_v52 = vld [vmem:[#allocation24_spill] sm:$0xff] }
 0x2e6   : > { %v9318_v32 = vand.u32 7, %v9317_v52 }
 0x2e7   : > { %v4336_v63 = vpop.permute.xlu1 %4335  ;;  %v4342_v12 = vpop.permute.xlu0 %4341  ;;  %vm3978_vm15 = vcmp.lt.s32.totalorder %v9316_v45, 1  ;;  %v9326_v45 = vand.u32 7, %v9265_v10  ;;  %v3921_v10 = vrot.slane %v8347_v33, 7  ;;  %v9331_v33 = vld [vmem:[#allocation27_spill] sm:$0xff] }
 0x2e8   : > { %v4455_v26 = vsel %vm4445_vm2, %v4422_v5, %v4336_v63  ;;  %v4458_v17 = vsel %vm4445_vm2, %v4425_v1, %v4342_v12  ;;  %vm3979_vm0 = vcmp.lt.s32.totalorder %v9318_v32, 1  ;;  %v4010_v5 = vsel %vm3978_vm15, 0.0, %v3951_v8  ;;  %v9319_v63 = vld [vmem:[#allocation9_spill] sm:$0xff] }
 0x2e9   : > { %5812 = vmatmul.mubr.msk.f32.gmra.mxu1 %vm4488_vm11, %v4455_v26  ;;  %v4011_v55 = vsel %vm3979_vm0, 0.0, %v3950_v61  ;;  %v3916_v12 = vrot.slane %v9319_v63, 7  ;;  %v9320_v26 = vld [vmem:[#allocation32_spill] sm:$0xff]  ;;  %vm3982_vm3 = vcmp.lt.s32.totalorder %v9326_v45, 1  ;;  %v9327_v61 = vld [vmem:[#allocation26_spill] sm:$0xff]  ;;  %vm3990_vm15 = vcmp.lt.s32.totalorder %v3696_v28, 1 }
 0x2ea   : > { %5814 = vmatprep.mubr.msk.f32.mxu1 %vm4488_vm11, %v4456_v62  ;;  %v3917_v62 = vrot.slane %v9320_v26, 7  ;;  %v9328_v52 = vand.u32 7, %v9327_v61  ;;  %v9339_v28 = vand.u32 7, %v9284_v42 }
 0x2eb   : > { %v4212_v6 = vpop.permute.xlu1 %4211  ;;  %v4218_v35 = vpop.permute.xlu0 %4217  ;;  %v3949_v54 = vsel %vm1405_vm6, %v3915_v13, %v3916_v12  ;;  %v9325_v13 = vld [vmem:[#allocation33_spill] sm:$0xff] }
 0x2ec   : > { %v4424_v23 = vsel %vm2432_vm5, %v4008_v30, %v4212_v6  ;;  %v4427_v46 = vsel %vm2432_vm5, %v4011_v55, %v4218_v35  ;;  %v9321_v6 = vld [vmem:[#allocation13_spill] sm:$0xff]  ;;  %v3948_v35 = vsel %vm1405_vm6, %v3916_v12, %v3917_v62  ;;  %vm3983_vm4 = vcmp.lt.s32.totalorder %v9328_v52, 1 }
 0x2ed   : > { %v9322_v2 = vand.u32 7, %v9321_v6  ;;  %v9323_v30 = vld [vmem:[#allocation25_spill] sm:$0xff]  ;;  %v9332_v6 = vand.u32 7, %v9331_v33  ;;  %v9338_v33 = vrot.slane %v8139_v16, 7  ;;  %vm3995_vm0 = vcmp.lt.s32.totalorder %v9339_v28, 1 }
 0x2ee   : > { %v9324_v20 = vand.u32 7, %v9323_v30 }
 0x2ef   : > { %v4340_v59 = vpop.permute.xlu1 %4339  ;;  %v4346_v53 = vpop.permute.xlu0 %4345  ;;  %vm3980_vm1 = vcmp.lt.s32.totalorder %v9322_v2, 1  ;;  %vm3985_vm9 = vcmp.lt.s32.totalorder %v9332_v6, 1 }
 0x2f0   : > { %v4457_v14 = vsel %vm4445_vm2, %v4424_v23, %v4340_v59  ;;  %v4460_v29 = vsel %vm4445_vm2, %v4427_v46, %v4346_v53  ;;  %vm3981_vm12 = vcmp.lt.s32.totalorder %v9324_v20, 1  ;;  %v4012_v23 = vsel %vm3980_vm1, 0.0, %v3949_v54 }
 0x2f1   : > { %5815 = vmatmul.mubr.msk.f32.gmra.mxu1 %vm4488_vm11, %v4457_v14  ;;  %v4013_v36 = vsel %vm3981_vm12, 0.0, %v3948_v35  ;;  %v3918_v59 = vrot.slane %v8299_v38, 7  ;;  %v3919_v14 = vrot.slane %v9325_v13, 7  ;;  %v3922_v35 = vrot.slane %v8345_v43, 7  ;;  %v9334_v13 = vld [vmem:[#allocation28_spill] sm:$0xff] }
 0x2f2   : > { %5817 = vmatprep.mubr.msk.f32.mxu1 %vm4488_vm11, %v4458_v17  ;;  %vm3996_vm1 = vcmp.lt.s32.totalorder %v3738_v39, 1 }
 0x2f3   : > { %v4216_v3 = vpop.permute.xlu1 %4215  ;;  %v4222_v27 = vpop.permute.xlu0 %4221  ;;  %v3947_v0 = vsel %vm1405_vm6, %v3917_v62, %v3918_v59  ;;  %v9329_v62 = vld [vmem:[#allocation15_spill] sm:$0xff] }
 0x2f4   : > { %v4426_v58 = vsel %vm2432_vm5, %v4010_v5, %v4216_v3  ;;  %v4429_v9 = vsel %vm2432_vm5, %v4013_v36, %v4222_v27  ;;  %v3946_v27 = vsel %vm1405_vm6, %v3918_v59, %v3919_v14  ;;  %v4014_v32 = vsel %vm3982_vm3, 0.0, %v3947_v0 }
 0x2f5   : > { %v4015_v5 = vsel %vm3983_vm4, 0.0, %v3946_v27 }
 0x2f7   : > { %v4344_v60 = vpop.permute.xlu1 %4343  ;;  %v4350_v24 = vpop.permute.xlu0 %4349 }
 0x2f8   : > { %v4459_v50 = vsel %vm4445_vm2, %v4426_v58, %v4344_v60  ;;  %v4462_v8 = vsel %vm4445_vm2, %v4429_v9, %v4350_v24  ;;  %v3920_v58 = vrot.slane %v8313_v56, 7 }
 0x2f9   : > { %5818 = vmatmul.mubr.msk.f32.gmra.mxu1 %vm4488_vm11, %v4459_v50  ;;  %v9330_v50 = vand.u32 7, %v9329_v62 }
 0x2fa   : > { %5820 = vmatprep.mubr.msk.f32.mxu1 %vm4488_vm11, %v4460_v29  ;;  %v3945_v26 = vsel %vm1405_vm6, %v3919_v14, %v3920_v58  ;;  %v3944_v54 = vsel %vm1405_vm6, %v3920_v58, %v3921_v10  ;;  %v9335_v14 = vand.u32 7, %v9334_v13 }
 0x2fb   : > { %v4220_v22 = vpop.permute.xlu1 %4219  ;;  %v4226_v21 = vpop.permute.xlu0 %4225  ;;  %vm3984_vm8 = vcmp.lt.s32.totalorder %v9330_v50, 1 }
 0x2fc   : > { %v4428_v7 = vsel %vm2432_vm5, %v4012_v23, %v4220_v22  ;;  %v4431_v60 = vsel %vm2432_vm5, %v4015_v5, %v4226_v21  ;;  %v4016_v2 = vsel %vm3984_vm8, 0.0, %v3945_v26  ;;  %v4017_v22 = vsel %vm3985_vm9, 0.0, %v3944_v54  ;;  %v9333_v23 = vld [vmem:[#allocation14_spill] sm:$0xff] }
 0x2fd   : > { %v3923_v36 = vrot.slane %v9333_v23, 7  ;;  %vm3987_vm7 = vcmp.lt.s32.totalorder %v9335_v14, 1 }
 0x2ff   : > { %v4348_v53 = vpop.permute.xlu1 %4347  ;;  %v4354_v1 = vpop.permute.xlu0 %4353  ;;  %v3942_v9 = vsel %vm1405_vm6, %v3922_v35, %v3923_v36 }
 0x300   : > { %v4461_v17 = vsel %vm4445_vm2, %v4428_v7, %v4348_v53  ;;  %v4464_v46 = vsel %vm4445_vm2, %v4431_v60, %v4354_v1  ;;  %v3943_v1 = vsel %vm1405_vm6, %v3921_v10, %v3922_v35  ;;  %v4019_v0 = vsel %vm3987_vm7, 0.0, %v3942_v9 }
 0x301   : > { %5821 = vmatmul.mubr.msk.f32.gmra.mxu1 %vm4488_vm11, %v4461_v17  ;;  %v4018_v17 = vsel %vm3986_vm13, 0.0, %v3943_v1 }
 0x302   : > { %5823 = vmatprep.mubr.msk.f32.mxu1 %vm4488_vm11, %v4462_v8 }
 0x303   : > { %v4224_v38 = vpop.permute.xlu1 %4223  ;;  %v4230_v3 = vpop.permute.xlu0 %4229 }
 0x304   : > { %v4430_v55 = vsel %vm2432_vm5, %v4014_v32, %v4224_v38  ;;  %v4433_v20 = vsel %vm2432_vm5, %v4017_v22, %v4230_v3  ;;  %v3924_v38 = vrot.slane %v8367_v37, 7 }
 0x306   : > { %v3941_v52 = vsel %vm1405_vm6, %v3923_v36, %v3924_v38  ;;  %v3940_v32 = vsel %vm1405_vm6, %v3924_v38, %v3925_v19 }
 0x307   : > { %v4352_v63 = vpop.permute.xlu1 %4351  ;;  %v4358_v12 = vpop.permute.xlu0 %4357  ;;  %v4021_v58 = vsel %vm3989_vm10, 0.0, %v3940_v32 }
 0x308   : > { %v4463_v24 = vsel %vm4445_vm2, %v4430_v55, %v4352_v63  ;;  %v4466_v53 = vsel %vm4445_vm2, %v4433_v20, %v4358_v12  ;;  %v4020_v55 = vsel %vm3988_vm14, 0.0, %v3941_v52 }
 0x309   : > { %5824 = vmatmul.mubr.msk.f32.gmra.mxu1 %vm4488_vm11, %v4463_v24  ;;  %v3939_v24 = vsel %vm1405_vm6, %v3925_v19, %v9337_v44  ;;  %v5062_v44 = vld [vmem:[%s8963_s7 + $0x38] sm:$0xff] }
 0x30a   : > { %5826 = vmatprep.mubr.msk.f32.mxu1 %vm4488_vm11, %v4464_v46  ;;  %v4022_v26 = vsel %vm3990_vm15, 0.0, %v3939_v24  ;;  %v5061_v24 = vld [vmem:[%s8963_s7 + $0x30] sm:$0xff]  ;;  %5847 = vmatprep.subr.mxu1 %v5062_v44 }
 0x30b   : > { %v4228_v56 = vpop.permute.xlu1 %4227  ;;  %v4234_v29 = vpop.permute.xlu0 %4233  ;;  %5848 = vmatpush3.msra.mxu1 %v5062_v44 }
 0x30c   : > { %v4432_v21 = vsel %vm2432_vm5, %v4016_v2, %v4228_v56  ;;  %v4435_v27 = vsel %vm2432_vm5, %v4019_v0, %v4234_v29  ;;  %v3931_v56 = vrot.slane %v8452_v48, 7  ;;  %5849 = vmatprep.subr.mxu1 %v5061_v24 }
 0x30d   : > { %5850 = vmatpush3.msra.mxu1 %v5061_v24 }
 0x30e   : > { %v3934_v47 = vsel %vm1405_vm6, %v9338_v33, %v3931_v56 }
 0x30f   : > { %v4356_v30 = vpop.permute.xlu1 %4355  ;;  %v4362_v59 = vpop.permute.xlu0 %4361  ;;  %v4027_v2 = vsel %vm3995_vm0, 0.0, %v3934_v47 }
 0x310   : > { %v4465_v7 = vsel %vm4445_vm2, %v4432_v21, %v4356_v30  ;;  %v4468_v61 = vsel %vm4445_vm2, %v4435_v27, %v4362_v59 }
 0x311   : > { %5827 = vmatmul.mubr.msk.f32.gmra.mxu1 %vm4488_vm11, %v4465_v7 }
 0x312   : > { %5829 = vmatprep.mubr.msk.f32.mxu1 %vm4488_vm11, %v4466_v53 }
 0x313   : > { %v4232_v43 = vpop.permute.xlu1 %4231  ;;  %v4238_v8 = vpop.permute.xlu0 %4237 }
 0x314   : > { %v4434_v45 = vsel %vm2432_vm5, %v4018_v17, %v4232_v43  ;;  %v4437_v60 = vsel %vm2432_vm5, %v4021_v58, %v4238_v8 }
 0x317   : > { %v4360_v3 = vpop.permute.xlu1 %4359  ;;  %v4366_v5 = vpop.permute.xlu0 %4365 }
 0x318   : > { %v4467_v11 = vsel %vm4445_vm2, %v4434_v45, %v4360_v3  ;;  %v4470_v15 = vsel %vm4445_vm2, %v4437_v60, %v4366_v5 }
 0x319   : > { %5830 = vmatmul.mubr.msk.f32.gmra.mxu1 %vm4488_vm11, %v4467_v11 }
 0x31a   : > { %5832 = vmatprep.mubr.msk.f32.mxu1 %vm4488_vm11, %v4468_v61 }
 0x31b   : > { %v4236_v37 = vpop.permute.xlu1 %4235  ;;  %v4374_v40 = vpop.permute.xlu0 %4373 }
 0x31c   : > { %v4436_v63 = vsel %vm2432_vm5, %v4020_v55, %v4236_v37  ;;  %v4474_v48 = vsel %vm4445_vm2, %v8512_v57, %v4374_v40 }
 0x31f   : > { %v4364_v12 = vpop.permute.xlu1 %4363  ;;  %v4250_v29 = vpop.permute.xlu0 %4249 }
 0x320   : > { %v4469_v10 = vsel %vm4445_vm2, %v4436_v63, %v4364_v12  ;;  %v4443_v22 = vsel %vm2432_vm5, %v4027_v2, %v4250_v29 }
 0x321   : > { %5833 = vmatmul.mubr.msk.f32.gmra.mxu1 %vm4488_vm11, %v4469_v10 }
 0x322   : > { %5835 = vmatprep.mubr.msk.f32.mxu1 %vm4488_vm11, %v4470_v15 }
 0x323   : > { %v4240_v46 = vpop.permute.xlu1 %4239  ;;  %v4378_v6 = vpop.permute.xlu0 %4377 }
 0x324   : > { %v4438_v62 = vsel %vm2432_vm5, %v4022_v26, %v4240_v46 }
 0x327   : > { %v4368_v50 = vpop.permute.xlu1 %4367 }
 0x328   : > { %v4471_v54 = vsel %vm4445_vm2, %v4438_v62, %v4368_v50 }
 0x329   : > { %5836 = vmatmul.mubr.msk.f32.gmra.mxu1 %vm4488_vm11, %v4471_v54 }
 0x32a   : > { %5838 = vmatprep.mubr.msk.f32.mxu1 %vm4488_vm11, %v8486_v51  ;;  %v9340_v51 = vrot.slane %v8369_v18, 7 }
 0x32b   : > { %v4376_v49 = vpop.permute.xlu1 %4375 }
 0x32c   : > { %v3933_v16 = vsel %vm1405_vm6, %v3931_v56, %v9340_v51  ;;  %v4475_v57 = vsel %vm4445_vm2, %v8550_v34, %v4376_v49  ;;  %vm5037_vm6 = vcmask 261120  }
 0x32d   : > { %5839 = vmatmul.mubr.msk.f32.gmra.mxu1 %vm4488_vm11, %v8528_v25  ;;  %v4476_v25 = vsel %vm4445_vm2, %v4443_v22, %v4378_v6  ;;  %v4028_v21 = vsel %vm3996_vm1, 0.0, %v3933_v16  ;;  %v5059_v22 = vld [vmem:[%s8963_s7 + $0x20] sm:$0xff] }
 0x32e   : > { %5841 = vmatprep.mubr.msk.f32.mxu1 %vm4488_vm11, %v4474_v48 }
 0x32f   : > { %v4252_v42 = vpop.permute.xlu1 %4251 }
 0x330   : > { %v4444_v18 = vsel %vm2432_vm5, %v4028_v21, %v4252_v42  ;;  %v5060_v42 = vld [vmem:[%s8963_s7 + $0x28] sm:$0xff]  ;;  %v5057_v21 = vld [vmem:[%s8963_s7 + $0x10] sm:$0xff]  ;;  %vm5042_vm5 = vcmask 392192  }
 0x331   : > { %5842 = vmatmul.mubr.msk.f32.gmra.mxu1 %vm4488_vm11, %v4475_v57  ;;  %5851 = vmatprep.subr.mxu1 %v5060_v42 }
 0x332   : > { %5844 = vmatprep.mubr.msk.f32.mxu1 %vm4488_vm11, %v4476_v25  ;;  %5852 = vmatpush3.msra.mxu1 %v5060_v42  ;;  %v5058_v25 = vld [vmem:[%s8963_s7 + $0x18] sm:$0xff] }
 0x333   : > { %v4380_v4 = vpop.permute.xlu1 %4379  ;;  %5853 = vmatprep.subr.mxu1 %v5059_v22 }
 0x334   : > { %v4477_v35 = vsel %vm4445_vm2, %v4444_v18, %v4380_v4  ;;  %5854 = vmatpush3.msra.mxu1 %v5059_v22 }
 0x335   : > { %5845 = vmatmul.mubr.msk.f32.gmra.mxu1 %vm4488_vm11, %v4477_v35  ;;  %5855 = vmatprep.subr.mxu1 %v5058_v25  ;;  %vm5070_vm11 = vcmask 523264  }
 0x336   : > { %5856 = vmatpush3.msra.mxu1 %v5058_v25 }
 0x337   : > { %5857 = vmatprep.subr.mxu1 %v5057_v21 }
 0x338   : > { %5858 = vmatpush3.msra.mxu1 %v5057_v21 }
 0x372   : > { %v5801_v39 = vpop.f32.mrf.mxu1 }
 0x373   : > { %v4657_v34 = vadd.f32 %v5801_v39, %v8759_v31 }
 0x374   : > { %v4651_v30 = vpop.f32.mrf.mxu1 }
 0x375   : > { %4811 = vst.msk [vmem:[#allocation3 + $0x8] sm:$0xff] %vm4445_vm2, %v4657_v34  ;;  %v4652_v20 = vadd.f32 %v8759_v31, %v4651_v30 }
 0x377   : > { %4810 = vst.msk [vmem:[#allocation3] sm:$0xff] %vm4445_vm2, %v4652_v20 }
 0x391   : > { %v5804_v23 = vpop.f32.mrf.mxu1 }
 0x392   : > { %v4667_v36 = vadd.f32 %v5804_v23, %v8759_v31 }
 0x393   : > { %v4661_v7 = vpop.f32.mrf.mxu1 }
 0x394   : > { %4813 = vst.msk [vmem:[#allocation3 + $0x18] sm:$0xff] %vm4445_vm2, %v4667_v36  ;;  %v4662_v59 = vadd.f32 %v8759_v31, %v4661_v7 }
 0x396   : > { %4812 = vst.msk [vmem:[#allocation3 + $0x10] sm:$0xff] %vm4445_vm2, %v4662_v59 }
 0x399   : > { %v5807_v53 = vpop.f32.mrf.mxu1 }
 0x39a   : > { %v4677_v1 = vadd.f32 %v5807_v53, %v8759_v31 }
 0x39b   : > { %v4671_v43 = vpop.f32.mrf.mxu1 }
 0x39c   : > { %4815 = vst.msk [vmem:[#allocation3 + $0x28] sm:$0xff] %vm4445_vm2, %v4677_v1  ;;  %v4672_v9 = vadd.f32 %v8759_v31, %v4671_v43 }
 0x39d   : > { %v4878_v27 = vld [vmem:[#allocation3 + $0x2] ss:$8 sm:$0xf]  ;;  %v4894_v19 = vld [vmem:[#allocation3 + $0x3] ss:$8 sm:$0xf] }
 0x39e   : > { %4814 = vst.msk [vmem:[#allocation3 + $0x20] sm:$0xff] %vm4445_vm2, %v4672_v9  ;;  %v4914_v5 = vld [vmem:[#allocation3 + $0x4] ss:$8 sm:$0xf] }
 0x39f   : > { %v4930_v55 = vld [vmem:[#allocation3 + $0x5] ss:$8 sm:$0xf]  ;;  %v4950_v26 = vld [vmem:[#allocation3 + $0x6] ss:$8 sm:$0xf] }
 0x3a0   : > { %v4966_v62 = vld [vmem:[#allocation3 + $0x7] ss:$8 sm:$0xf] }
 0x3a1   : > { %v5810_v13 = vpop.f32.mrf.mxu1 }
 0x3a2   : > { %v4687_v14 = vadd.f32 %v5810_v13, %v8759_v31 }
 0x3a3   : > { %v4681_v17 = vpop.f32.mrf.mxu1 }
 0x3a4   : > { %4817 = vst.msk [vmem:[#allocation3 + $0x38] sm:$0xff] %vm4445_vm2, %v4687_v14  ;;  %v4682_v8 = vadd.f32 %v8759_v31, %v4681_v17 }
 0x3a6   : > { %4816 = vst.msk [vmem:[#allocation3 + $0x30] sm:$0xff] %vm4445_vm2, %v4682_v8 }
 0x3a9   : > { %v5813_v0 = vpop.f32.mrf.mxu1 }
 0x3aa   : > { %v4697_v45 = vadd.f32 %v5813_v0, %v8759_v31  ;;  %v5056_v0 = vld [vmem:[%s8963_s7 + $0x8] sm:$0xff] }
 0x3ab   : > { %v4691_v38 = vpop.f32.mrf.mxu1  ;;  %5859 = vmatprep.subr.mxu1 %v5056_v0 }
 0x3ac   : > { %4819 = vst.msk [vmem:[#allocation3 + $0x48] sm:$0xff] %vm4445_vm2, %v4697_v45  ;;  %v4692_v3 = vadd.f32 %v8759_v31, %v4691_v38  ;;  %v5055_v45 = vld [vmem:[%s8963_s7] sm:$0xff]  ;;  %5860 = vmatpush3.msra.mxu1 %v5056_v0 }
 0x3ad   : > { %v4879_v11 = vld [vmem:[#allocation3 + $0x2] ss:$8 sm:$0xf0]  ;;  %v4895_v61 = vld [vmem:[#allocation3 + $0x3] ss:$8 sm:$0xf0]  ;;  %5861 = vmatprep.subr.mxu1 %v5055_v45 }
 0x3ae   : > { %4818 = vst.msk [vmem:[#allocation3 + $0x40] sm:$0xff] %vm4445_vm2, %v4692_v3  ;;  %v4880_v52 = vor.u32 %v4879_v11, %v4878_v27  ;;  %v4896_v37 = vor.u32 %v4895_v61, %v4894_v19  ;;  %v4915_v32 = vld [vmem:[#allocation3 + $0x4] ss:$8 sm:$0xf0]  ;;  %5862 = vmatpush3.msra.mxu1 %v5055_v45 }
 0x3af   : > { %v4931_v41 = vld [vmem:[#allocation3 + $0x5] ss:$8 sm:$0xf0]  ;;  %v4916_v63 = vor.u32 %v4915_v32, %v4914_v5  ;;  %v4951_v10 = vld [vmem:[#allocation3 + $0x6] ss:$8 sm:$0xf0] }
 0x3b0   : > { %v4909_v58 = vmax.f32 %v4880_v52, %v4896_v37  ;;  %v4932_v12 = vor.u32 %v4931_v41, %v4930_v55  ;;  %v4967_v15 = vld [vmem:[#allocation3 + $0x7] ss:$8 sm:$0xf0]  ;;  %v4952_v29 = vor.u32 %v4951_v10, %v4950_v26 }
 0x3b1   : > { %v5816_v60 = vpop.f32.mrf.mxu1  ;;  %v4968_v54 = vor.u32 %v4967_v15, %v4966_v62 }
 0x3b2   : > { %v4707_v40 = vadd.f32 %v5816_v60, %v8759_v31  ;;  %4989 = vrot.lane.b32.xlu0 %v4909_v58, %s6019_s25  ;;  %v4945_v56 = vmax.f32 %v4916_v63, %v4932_v12 }
 0x3b3   : > { %v4701_v46 = vpop.f32.mrf.mxu1  ;;  %v4981_v49 = vmax.f32 %v4952_v29, %v4968_v54 }
 0x3b4   : > { %4821 = vst.msk [vmem:[#allocation3 + $0x58] sm:$0xff] %vm4445_vm2, %v4707_v40  ;;  %v4702_v50 = vadd.f32 %v8759_v31, %v4701_v46 }
 0x3b6   : > { %4820 = vst.msk [vmem:[#allocation3 + $0x50] sm:$0xff] %vm4445_vm2, %v4702_v50  ;;  %5005 = vrot.lane.b32.xlu0 %v4945_v56, %s9080_s26 }
 0x3b9   : > { %v5819_v33 = vpop.f32.mrf.mxu1 }
 0x3ba   : > { %v4717_v47 = vadd.f32 %v5819_v33, %v8759_v31  ;;  %5021 = vrot.lane.b32.xlu0 %v4981_v49, %s9078_s14  ;;  %s434_s14 = sand.u32 1, %s6007_s28  }
 0x3bb   : > { %v4711_v28 = vpop.f32.mrf.mxu1  ;;  %s5450_s16 = sshll.u32 %s434_s14, 5  ;;  %s8915_s26 = scalar_lea.sflag [#allocation6], %s434_s14 }
 0x3bc   : > { %4823 = vst.msk [vmem:[#allocation3 + $0x68] sm:$0xff] %vm4445_vm2, %v4717_v47  ;;  %v4712_v48 = vadd.f32 %v8759_v31, %v4711_v28 }
 0x3bd   : > { %v4882_v39 = vld [vmem:[#allocation3 + $0x42] ss:$8 sm:$0xf]  ;;  %v4898_v34 = vld [vmem:[#allocation3 + $0x43] ss:$8 sm:$0xf] }
 0x3be   : > { %4822 = vst.msk [vmem:[#allocation3 + $0x60] sm:$0xff] %vm4445_vm2, %v4712_v48  ;;  %v4918_v53 = vld [vmem:[#allocation3 + $0x44] ss:$8 sm:$0xf] }
 0x3bf   : > { %v4934_v1 = vld [vmem:[#allocation3 + $0x45] ss:$8 sm:$0xf]  ;;  %v4954_v27 = vld [vmem:[#allocation3 + $0x46] ss:$8 sm:$0xf] }
 0x3c0   : > { %v4970_v19 = vld [vmem:[#allocation3 + $0x47] ss:$8 sm:$0xf] }
 0x3c1   : > { %v5822_v6 = vpop.f32.mrf.mxu1 }
 0x3c2   : > { %v4727_v2 = vadd.f32 %v5822_v6, %v8759_v31 }
 0x3c3   : > { %v4721_v51 = vpop.f32.mrf.mxu1 }
 0x3c4   : > { %4825 = vst.msk [vmem:[#allocation3 + $0x78] sm:$0xff] %vm4445_vm2, %v4727_v2  ;;  %v4722_v16 = vadd.f32 %v8759_v31, %v4721_v51 }
 0x3c6   : > { %4824 = vst.msk [vmem:[#allocation3 + $0x70] sm:$0xff] %vm4445_vm2, %v4722_v16 }
 0x3c9   : > { %v5825_v57 = vpop.f32.mrf.mxu1 }
 0x3ca   : > { %v4737_v18 = vadd.f32 %v5825_v57, %v8759_v31 }
 0x3cb   : > { %v4731_v4 = vpop.f32.mrf.mxu1 }
 0x3cc   : > { %4827 = vst.msk [vmem:[#allocation3 + $0x88] sm:$0xff] %vm4445_vm2, %v4737_v18  ;;  %v4732_v35 = vadd.f32 %v8759_v31, %v4731_v4 }
 0x3cd   : > { %v4883_v30 = vld [vmem:[#allocation3 + $0x42] ss:$8 sm:$0xf0]  ;;  %v4899_v20 = vld [vmem:[#allocation3 + $0x43] ss:$8 sm:$0xf0] }
 0x3ce   : > { %4826 = vst.msk [vmem:[#allocation3 + $0x80] sm:$0xff] %vm4445_vm2, %v4732_v35  ;;  %v4884_v23 = vor.u32 %v4883_v30, %v4882_v39  ;;  %v4900_v36 = vor.u32 %v4899_v20, %v4898_v34  ;;  %v4919_v7 = vld [vmem:[#allocation3 + $0x44] ss:$8 sm:$0xf0] }
 0x3cf   : > { %v4935_v59 = vld [vmem:[#allocation3 + $0x45] ss:$8 sm:$0xf0]  ;;  %v4920_v9 = vor.u32 %v4919_v7, %v4918_v53  ;;  %v4955_v14 = vld [vmem:[#allocation3 + $0x46] ss:$8 sm:$0xf0] }
 0x3d0   : > { %v4910_v43 = vmax.f32 %v4884_v23, %v4900_v36  ;;  %v4936_v13 = vor.u32 %v4935_v59, %v4934_v1  ;;  %v4971_v8 = vld [vmem:[#allocation3 + $0x47] ss:$8 sm:$0xf0]  ;;  %v4956_v52 = vor.u32 %v4955_v14, %v4954_v27 }
 0x3d1   : > { %v5828_v17 = vpop.f32.mrf.mxu1  ;;  %v4972_v37 = vor.u32 %v4971_v8, %v4970_v19 }
 0x3d2   : > { %v4747_v38 = vadd.f32 %v5828_v17, %v8759_v31  ;;  %4991 = vrot.lane.b32.xlu1 %v4910_v43, %s6019_s25  ;;  %v4946_v61 = vmax.f32 %v4920_v9, %v4936_v13 }
 0x3d3   : > { %v4741_v3 = vpop.f32.mrf.mxu1  ;;  %v4982_v32 = vmax.f32 %v4956_v52, %v4972_v37 }
 0x3d4   : > { %4829 = vst.msk [vmem:[#allocation3 + $0x98] sm:$0xff] %vm4445_vm2, %v4747_v38  ;;  %v4742_v11 = vadd.f32 %v8759_v31, %v4741_v3 }
 0x3d6   : > { %4828 = vst.msk [vmem:[#allocation3 + $0x90] sm:$0xff] %vm4445_vm2, %v4742_v11  ;;  %5007 = vrot.lane.b32.xlu1 %v4946_v61, %s9341_s17 }
 0x3d9   : > { %v5831_v41 = vpop.f32.mrf.mxu1 }
 0x3da   : > { %v4757_v5 = vadd.f32 %v5831_v41, %v8759_v31  ;;  %5023 = vrot.lane.b32.xlu1 %v4982_v32, %s9342_s21 }
 0x3db   : > { %v4751_v55 = vpop.f32.mrf.mxu1 }
 0x3dc   : > { %4831 = vst.msk [vmem:[#allocation3 + $0xa8] sm:$0xff] %vm4445_vm2, %v4757_v5  ;;  %v4752_v58 = vadd.f32 %v8759_v31, %v4751_v55  ;;  %v4843_v55 = vld [vmem:[#allocation3] ss:$8 sm:$0xf0] }
 0x3dd   : > { %v4886_v46 = vld [vmem:[#allocation3 + $0x82] ss:$8 sm:$0xf]  ;;  %v4902_v26 = vld [vmem:[#allocation3 + $0x83] ss:$8 sm:$0xf] }
 0x3de   : > { %4830 = vst.msk [vmem:[#allocation3 + $0xa0] sm:$0xff] %vm4445_vm2, %v4752_v58  ;;  %v4922_v48 = vld [vmem:[#allocation3 + $0x84] ss:$8 sm:$0xf] }
 0x3df   : > { %v4938_v6 = vld [vmem:[#allocation3 + $0x85] ss:$8 sm:$0xf]  ;;  %v4958_v4 = vld [vmem:[#allocation3 + $0x86] ss:$8 sm:$0xf] }
 0x3e0   : > { %v4974_v35 = vld [vmem:[#allocation3 + $0x87] ss:$8 sm:$0xf]  ;;  %v4859_v58 = vld [vmem:[#allocation3 + $0x1] ss:$8 sm:$0xf0] }
 0x3e1   : > { %v5834_v63 = vpop.f32.mrf.mxu1 }
 0x3e2   : > { %v4767_v12 = vadd.f32 %v5834_v63, %v8759_v31 }
 0x3e3   : > { %v4761_v60 = vpop.f32.mrf.mxu1 }
 0x3e4   : > { %4833 = vst.msk [vmem:[#allocation3 + $0xb8] sm:$0xff] %vm4445_vm2, %v4767_v12  ;;  %v4762_v10 = vadd.f32 %v8759_v31, %v4761_v60  ;;  %v4842_v12 = vld [vmem:[#allocation3] ss:$8 sm:$0xf] }
 0x3e5   : > { %v4858_v60 = vld [vmem:[#allocation3 + $0x1] ss:$8 sm:$0xf] }
 0x3e6   : > { %4832 = vst.msk [vmem:[#allocation3 + $0xb0] sm:$0xff] %vm4445_vm2, %v4762_v10  ;;  %v4844_v10 = vor.u32 %v4843_v55, %v4842_v12  ;;  %v5554_v55 = vld [vmem:[%s8964_s8] ss:$0 sm:$0xff] }
 0x3e9   : > { %v5837_v15 = vpop.f32.mrf.mxu1 }
 0x3ea   : > { %v4777_v40 = vadd.f32 %v5837_v15, %v8759_v31  ;;  %v4860_v15 = vor.u32 %v4859_v58, %v4858_v60 }
 0x3eb   : > { %v4771_v44 = vpop.f32.mrf.mxu1 }
 0x3ec   : > { %4835 = vst.msk [vmem:[#allocation3 + $0xc8] sm:$0xff] %vm4445_vm2, %v4777_v40  ;;  %v4772_v24 = vadd.f32 %v8759_v31, %v4771_v44  ;;  %v4873_v44 = vmax.f32 %v4844_v10, %v4860_v15 }
 0x3ed   : > { %v5840_v62 = vpop.f32.mrf.mxu1  ;;  %v4887_v50 = vld [vmem:[#allocation3 + $0x82] ss:$8 sm:$0xf0]  ;;  %v4903_v56 = vld [vmem:[#allocation3 + $0x83] ss:$8 sm:$0xf0] }
 0x3ee   : > { %4834 = vst.msk [vmem:[#allocation3 + $0xc0] sm:$0xff] %vm4445_vm2, %v4772_v24  ;;  %v4787_v29 = vadd.f32 %v5840_v62, %v8759_v31  ;;  %v4888_v54 = vor.u32 %v4887_v50, %v4886_v46  ;;  %v4904_v49 = vor.u32 %v4903_v56, %v4902_v26  ;;  %v4923_v33 = vld [vmem:[#allocation3 + $0x84] ss:$8 sm:$0xf0] }
 0x3ef   : > { %v4939_v47 = vld [vmem:[#allocation3 + $0x85] ss:$8 sm:$0xf0]  ;;  %v4781_v28 = vpop.f32.mrf.mxu1  ;;  %v4924_v16 = vor.u32 %v4923_v33, %v4922_v48  ;;  %v4959_v57 = vld [vmem:[#allocation3 + $0x86] ss:$8 sm:$0xf0] }
 0x3f0   : > { %4837 = vst.msk [vmem:[#allocation3 + $0xd8] sm:$0xff] %vm4445_vm2, %v4787_v29  ;;  %v4782_v2 = vadd.f32 %v8759_v31, %v4781_v28  ;;  %v4911_v51 = vmax.f32 %v4888_v54, %v4904_v49  ;;  %v4940_v42 = vor.u32 %v4939_v47, %v4938_v6  ;;  %v4975_v25 = vld [vmem:[#allocation3 + $0x87] ss:$8 sm:$0xf0]  ;;  %v4960_v30 = vor.u32 %v4959_v57, %v4958_v4 }
 0x3f1   : > { %v5843_v22 = vpop.f32.mrf.mxu1  ;;  %v4976_v20 = vor.u32 %v4975_v25, %v4974_v35  ;;  %v4847_v29 = vld [vmem:[#allocation3 + $0x40] ss:$8 sm:$0xf0]  ;;  %v4863_v54 = vld [vmem:[#allocation3 + $0x41] ss:$8 sm:$0xf0] }
 0x3f2   : > { %4836 = vst.msk [vmem:[#allocation3 + $0xd0] sm:$0xff] %vm4445_vm2, %v4782_v2  ;;  %v4797_v21 = vadd.f32 %v5843_v22, %v8759_v31  ;;  %4993 = vrot.lane.b32.xlu0 %v4911_v51, %s6019_s25  ;;  %v4947_v34 = vmax.f32 %v4924_v16, %v4940_v42  ;;  %v4846_v33 = vld [vmem:[#allocation3 + $0x40] ss:$8 sm:$0xf] }
 0x3f3   : > { %v4791_v18 = vpop.f32.mrf.mxu1  ;;  %v4983_v53 = vmax.f32 %v4960_v30, %v4976_v20  ;;  %v4862_v47 = vld [vmem:[#allocation3 + $0x41] ss:$8 sm:$0xf]  ;;  %v4848_v28 = vor.u32 %v4847_v29, %v4846_v33  ;;  %v4850_v4 = vld [vmem:[#allocation3 + $0x80] ss:$8 sm:$0xf] }
 0x3f4   : > { %4839 = vst.msk [vmem:[#allocation3 + $0xe8] sm:$0xff] %vm4445_vm2, %v4797_v21  ;;  %v4792_v39 = vadd.f32 %v8759_v31, %v4791_v18  ;;  %v4864_v48 = vor.u32 %v4863_v54, %v4862_v47  ;;  %v4851_v21 = vld [vmem:[#allocation3 + $0x80] ss:$8 sm:$0xf0] }
 0x3f5   : > { %v5846_v23 = vpop.f32.mrf.mxu1  ;;  %v4867_v18 = vld [vmem:[#allocation3 + $0x81] ss:$8 sm:$0xf0] }
 0x3f6   : > { %4838 = vst.msk [vmem:[#allocation3 + $0xe0] sm:$0xff] %vm4445_vm2, %v4792_v39  ;;  %v4807_v36 = vadd.f32 %v5846_v23, %v8759_v31  ;;  %5009 = vrot.lane.b32.xlu0 %v4947_v34, %s9341_s17  ;;  %v4874_v2 = vmax.f32 %v4848_v28, %v4864_v48  ;;  %v4866_v35 = vld [vmem:[#allocation3 + $0x81] ss:$8 sm:$0xf]  ;;  %v4852_v34 = vor.u32 %v4851_v21, %v4850_v4 }
 0x3f7   : > { %v4801_v7 = vpop.f32.mrf.mxu1  ;;  %v4868_v30 = vor.u32 %v4867_v18, %v4866_v35  ;;  %v6022_v18 = vmov 0  }
 0x3f8   : > { %4841 = vst.msk [vmem:[#allocation3 + $0xf8] sm:$0xff] %vm4445_vm2, %v4807_v36  ;;  %v4802_v59 = vadd.f32 %v8759_v31, %v4801_v7  ;;  %5934 = vset.pattern.permute.xlu0 %v6022_v18  ;;  %5933 = vset.pattern.permute.xlu1 %v6022_v18 }
 0x3f9   : > { %v4890_v1 = vld [vmem:[#allocation3 + $0xc2] ss:$8 sm:$0xf]  ;;  %v4906_v43 = vld [vmem:[#allocation3 + $0xc3] ss:$8 sm:$0xf]  ;;  %v4875_v23 = vmax.f32 %v4852_v34, %v4868_v30 }
 0x3fa   : > { %4840 = vst.msk [vmem:[#allocation3 + $0xf0] sm:$0xff] %vm4445_vm2, %v4802_v59  ;;  %5025 = vrot.lane.b32.xlu0 %v4983_v53, %s9342_s21  ;;  %v4926_v45 = vld [vmem:[#allocation3 + $0xc4] ss:$8 sm:$0xf] }
 0x3fb   : > { %v4942_v38 = vld [vmem:[#allocation3 + $0xc5] ss:$8 sm:$0xf]  ;;  %v4962_v61 = vld [vmem:[#allocation3 + $0xc6] ss:$8 sm:$0xf] }
 0x3fc   : > { %v4978_v52 = vld [vmem:[#allocation3 + $0xc7] ss:$8 sm:$0xf] }
 0x401   : > { %v4891_v9 = vld [vmem:[#allocation3 + $0xc2] ss:$8 sm:$0xf0]  ;;  %v4907_v13 = vld [vmem:[#allocation3 + $0xc3] ss:$8 sm:$0xf0] }
 0x402   : > { %v4892_v14 = vor.u32 %v4891_v9, %v4890_v1  ;;  %v4908_v17 = vor.u32 %v4907_v13, %v4906_v43  ;;  %v4927_v8 = vld [vmem:[#allocation3 + $0xc4] ss:$8 sm:$0xf0]  ;;  %v4943_v0 = vld [vmem:[#allocation3 + $0xc5] ss:$8 sm:$0xf0] }
 0x403   : > { %v4928_v27 = vor.u32 %v4927_v8, %v4926_v45  ;;  %v4944_v19 = vor.u32 %v4943_v0, %v4942_v38  ;;  %v4963_v11 = vld [vmem:[#allocation3 + $0xc6] ss:$8 sm:$0xf0]  ;;  %v4979_v31 = vld [vmem:[#allocation3 + $0xc7] ss:$8 sm:$0xf0] }
 0x404   : > { %v4912_v3 = vmax.f32 %v4892_v14, %v4908_v17  ;;  %v4964_v32 = vor.u32 %v4963_v11, %v4962_v61  ;;  %v4980_v41 = vor.u32 %v4979_v31, %v4978_v52  ;;  %v4855_v9 = vld [vmem:[#allocation3 + $0xc0] ss:$8 sm:$0xf0]  ;;  %v4871_v13 = vld [vmem:[#allocation3 + $0xc1] ss:$8 sm:$0xf0] }
 0x405   : > { %v4948_v37 = vmax.f32 %v4928_v27, %v4944_v19  ;;  %v4854_v14 = vld [vmem:[#allocation3 + $0xc0] ss:$8 sm:$0xf]  ;;  %v4870_v17 = vld [vmem:[#allocation3 + $0xc1] ss:$8 sm:$0xf] }
 0x406   : > { %4995 = vrot.lane.b32.xlu1 %v4912_v3, %s6019_s25  ;;  %v4984_v5 = vmax.f32 %v4964_v32, %v4980_v41  ;;  %v4856_v0 = vor.u32 %v4855_v9, %v4854_v14  ;;  %v4872_v45 = vor.u32 %v4871_v13, %v4870_v17  ;;  %v5178_v32 = vld [vmem:[%s8965_s9 + $0x10] sm:$0xff]  ;;  %v5177_v41 = vld [vmem:[%s8965_s9 + $0x8] sm:$0xff]  ;;  %s5571_s25 = sshll.u32 %s6119_s12, 9  ;;  %s6023_s12 = smov [#allocation5]  }
 0x407   : > { %s8913_s22 = scalar_lea.hbm %s8969_s13, %s5571_s25  ;;  %s5959_s0 = sshll.u32 %s6023_s12, 4  ;;  %s5960_s0 = int_to_ptr.vmem [resolvable:$false] %s5959_s0 }
 0x408   : > { %v4876_v3 = vmax.f32 %v4856_v0, %v4872_v45  ;;  %s5961_s1 = scalar_lea.vmem %s5960_s0, 1024 }
 0x40a   : > { %5011 = vrot.lane.b32.xlu1 %v4948_v37, %s9341_s17  ;;  %v5179_v37 = vld [vmem:[%s8965_s9 + $0x18] sm:$0xff]  ;;  %s436_s17 = scalar_lea.vmem [#allocation5], %s5450_s16 }
 0x40b   : > { %5869 = vmatprep.subr.mxu1 %v5179_v37 }
 0x40e   : > { %5027 = vrot.lane.b32.xlu1 %v4984_v5, %s9342_s21  ;;  %v5176_v5 = vld [vmem:[%s8965_s9] sm:$0xff]  ;;  %s5384_s21 = sshll.u32 %s436_s17, 4  ;;  %s8908_s21 = int_to_ptr.vmem [resolvable:$true] %s5384_s21 }
 0x40f   : > { %s5955_s16 = scalar_lea.vmem %s8908_s21, 512  ;;  %p5962_p0 = scmp.lt.s32.totalorder %s8908_s21, %s5960_s0 }
 0x410   : > { %p5956_p11 = scmp.ne.s32.totalorder %s8908_s21, %s5955_s16  ;;  %p5963_p1 = scmp.lt.s32.totalorder %s5961_s1, %s5955_s16 }
 0x412   : > { %p5957_p12 = pnand %p5956_p11, %p6136_p5  ;;  %p5964_p2 = por %p5963_p1, %p5962_p0 }
 0x414   : > { %p5958_p13 = pneg %p5957_p12 }
 0x416   : > { %p5965_p3 = pnand %p5964_p2, %p5958_p13 }
 0x424   : > { %v4990_v63 = vpop.permute.xlu0 %4989 }
 0x425   : > { %v5033_v24 = vsel %vm4445_vm2, %v4873_v44, %v4990_v63 }
 0x428   : > { %v5006_v40 = vpop.permute.xlu0 %5005 }
 0x429   : > { %v5038_v46 = vsel %vm5037_vm6, %v5033_v24, %v5006_v40 }
 0x42c   : > { %v5022_v26 = vpop.permute.xlu0 %5021 }
 0x42d   : > { %v5043_v62 = vsel %vm5042_vm5, %v5038_v46, %v5022_v26 }
 0x42e   : > { %v5047_v50 = vmul.f32 0.2, %v5043_v62 }
 0x430   : > { %v5051_v56 = vmax.f32 %v5043_v62, %v5047_v50 }
 0x432   : > { %5863 = vmatprep.mubr.msk.f32.mxu1 %vm5070_vm11, %v5051_v56 }
 0x444   : > { %v4992_v49 = vpop.permute.xlu1 %4991 }
 0x445   : > { %v5034_v51 = vsel %vm4445_vm2, %v4874_v2, %v4992_v49  ;;  %v5559_v49 = vld [vmem:[%s8966_s10] ss:$0 sm:$0xff] }
 0x446   : > { %v5564_v2 = vld [vmem:[%s8967_s11] ss:$0 sm:$0xff] }
 0x448   : > { %v5008_v6 = vpop.permute.xlu1 %5007 }
 0x449   : > { %v5039_v16 = vsel %vm5037_vm6, %v5034_v51, %v5008_v6 }
 0x44c   : > { %v5024_v42 = vpop.permute.xlu1 %5023 }
 0x44d   : > { %v5044_v22 = vsel %vm5042_vm5, %v5039_v16, %v5024_v42 }
 0x44e   : > { %v5048_v57 = vmul.f32 0.2, %v5044_v22 }
 0x450   : > { %v5052_v25 = vmax.f32 %v5044_v22, %v5048_v57 }
 0x452   : > { %5864 = vmatmul.mubr.msk.f32.vlgmr.msra.gmra.mxu1 %vm5070_vm11, %v5052_v25 }
 0x453   : > { %5870 = vmatpush3.msra.mxu1 %v5179_v37 }
 0x454   : > { %5871 = vmatprep.subr.mxu1 %v5178_v32 }
 0x455   : > { %5872 = vmatpush3.msra.mxu1 %v5178_v32 }
 0x456   : > { %5873 = vmatprep.subr.mxu1 %v5177_v41 }
 0x457   : > { %5874 = vmatpush3.msra.mxu1 %v5177_v41 }
 0x458   : > { %5875 = vmatprep.subr.mxu1 %v5176_v5 }
 0x459   : > { %5876 = vmatpush3.msra.mxu1 %v5176_v5 }
 0x464   : > { %v4994_v39 = vpop.permute.xlu0 %4993 }
 0x465   : > { %v5035_v36 = vsel %vm4445_vm2, %v4875_v23, %v4994_v39 }
 0x468   : > { %v5010_v20 = vpop.permute.xlu0 %5009 }
 0x469   : > { %v5040_v7 = vsel %vm5037_vm6, %v5035_v36, %v5010_v20 }
 0x46c   : > { %v5026_v59 = vpop.permute.xlu0 %5025 }
 0x46d   : > { %v5045_v53 = vsel %vm5042_vm5, %v5040_v7, %v5026_v59 }
 0x46e   : > { %v5049_v1 = vmul.f32 0.2, %v5045_v53 }
 0x470   : > { %v5053_v43 = vmax.f32 %v5045_v53, %v5049_v1 }
 0x472   : > { %5866 = vmatprep.mubr.msk.f32.mxu1 %vm5070_vm11, %v5053_v43  ;;  %v5565_v43 = vld [vmem:[#allocation4] ss:$0 sm:$0xff] }
 0x478   : > { %v4996_v8 = vpop.permute.xlu1 %4995 }
 0x479   : > { %v5036_v27 = vsel %vm4445_vm2, %v4876_v3, %v4996_v8 }
 0x47c   : > { %v5012_v38 = vpop.permute.xlu1 %5011 }
 0x47d   : > { %v5041_v19 = vsel %vm5037_vm6, %v5036_v27, %v5012_v38 }
 0x480   : > { %v5028_v11 = vpop.permute.xlu1 %5027 }
 0x481   : > { %v5046_v31 = vsel %vm5042_vm5, %v5041_v19, %v5028_v11 }
 0x482   : > { %v5050_v61 = vmul.f32 0.2, %v5046_v31 }
 0x484   : > { %v5054_v52 = vmax.f32 %v5046_v31, %v5050_v61 }
 0x486   : > { %5867 = vmatmul.mubr.msk.f32.gmra.mxu1 %vm5070_vm11, %v5054_v52 }
 0x512   : > { %v5865_v58 = vpop.f32.mrf.mxu1 }
 0x513   : > { %v5155_v63 = vadd.f32 %v5865_v58, %v5554_v55 }
 0x514   : > { %v5149_v12 = vpop.f32.mrf.mxu1 }
 0x515   : > { %v5150_v60 = vadd.f32 %v5554_v55, %v5149_v12  ;;  %v5169_v10 = vmul.f32 0.2, %v5155_v63 }
 0x517   : > { %v5168_v15 = vmul.f32 0.2, %v5150_v60  ;;  %v5173_v44 = vmax.f32 %v5155_v63, %v5169_v10 }
 0x519   : > { %v5172_v40 = vmax.f32 %v5150_v60, %v5168_v15 }
 0x51b   : > { %5877 = vmatprep.mubr.msk.f32.mxu1 %vm5037_vm6, %v5172_v40 }
 0x51c   : > { %5878 = vmatmul.mubr.msk.f32.vlgmr.msra.gmra.mxu1 %vm5037_vm6, %v5173_v44 }
 0x546   : > { %v5868_v24 = vpop.f32.mrf.mxu1 }
 0x547   : > { %v5165_v46 = vadd.f32 %v5868_v24, %v5554_v55 }
 0x548   : > { %v5159_v26 = vpop.f32.mrf.mxu1 }
 0x549   : > { %v5160_v62 = vadd.f32 %v5554_v55, %v5159_v26  ;;  %v5171_v50 = vmul.f32 0.2, %v5165_v46 }
 0x54b   : > { %v5170_v56 = vmul.f32 0.2, %v5160_v62  ;;  %v5175_v54 = vmax.f32 %v5165_v46, %v5171_v50 }
 0x54d   : > { %v5174_v29 = vmax.f32 %v5160_v62, %v5170_v56 }
 0x54f   : > { %5880 = vmatprep.mubr.msk.f32.mxu1 %vm5037_vm6, %v5174_v29 }
 0x550   : > { %5881 = vmatmul.mubr.msk.f32.gmra.mxu1 %vm5037_vm6, %v5175_v54 }
 0x5dc   : > { %v5879_v33 = vpop.f32.mrf.mxu1 }
 0x5dd   : > { %v5271_v47 = vadd.f32 %v5879_v33, %v5559_v49 }
 0x5de   : > { %v5265_v28 = vpop.f32.mrf.mxu1 }
 0x5df   : > { %v5285_v48 = vmul.f32 0.2, %v5271_v47  ;;  %v5266_v6 = vadd.f32 %v5559_v49, %v5265_v28 }
 0x5e1   : > { %v5289_v51 = vmax.f32 %v5271_v47, %v5285_v48  ;;  %v5284_v16 = vmul.f32 0.2, %v5266_v6 }
 0x5e3   : > { %v5288_v42 = vmax.f32 %v5266_v6, %v5284_v16  ;;  %v5300_v22 = vmul.f32 %v5564_v2, %v5289_v51 }
 0x5e5   : > { %v5306_v57 = vsel %vm4445_vm2, %v5300_v22, 0.0  ;;  %v5299_v25 = vmul.f32 %v5564_v2, %v5288_v42 }
 0x5e6   : > { %5307 = vadd.xlane.f32.xlu1 %v5306_v57 }
 0x5e7   : > { %v5303_v21 = vsel %vm4445_vm2, %v5299_v25, 0.0 }
 0x5e8   : > { %5304 = vadd.xlane.f32.xlu0 %v5303_v21 }
 0x610   : > { %v5882_v4 = vpop.f32.mrf.mxu1 }
 0x611   : > { %v5281_v35 = vadd.f32 %v5882_v4, %v5559_v49 }
 0x612   : > { %v5275_v39 = vpop.f32.mrf.mxu1 }
 0x613   : > { %v5287_v34 = vmul.f32 0.2, %v5281_v35  ;;  %v5276_v30 = vadd.f32 %v5559_v49, %v5275_v39 }
 0x615   : > { %v5286_v20 = vmul.f32 0.2, %v5276_v30  ;;  %v5291_v23 = vmax.f32 %v5281_v35, %v5287_v34 }
 0x617   : > { %v5290_v36 = vmax.f32 %v5276_v30, %v5286_v20  ;;  %v5302_v53 = vmul.f32 %v5564_v2, %v5291_v23 }
 0x619   : > { %v5301_v7 = vmul.f32 %v5564_v2, %v5290_v36  ;;  %v5312_v1 = vsel %vm4445_vm2, %v5302_v53, 0.0 }
 0x61b   : > { %v5309_v59 = vsel %vm4445_vm2, %v5301_v7, 0.0 }
 0x61c   : > { %5310 = vadd.xlane.f32.xlu0 %v5309_v59 }
 0x620   : > { %5313 = vadd.xlane.f32.xlu0 %v5312_v1 }
 0x66f   : > { %v5308_v9 = vpop.xlane.xlu1 %5307 }
 0x670   : > { %v5323_v13 = vadd.f32 %v5565_v43, %v5308_v9 }
 0x671   : > { %v5305_v14 = vpop.xlane.xlu0 %5304 }
 0x672   : > { %v5327_v17 = vsub.f32 0.0, %v5323_v13  ;;  %v5322_v8 = vadd.f32 %v5565_v43, %v5305_v14 }
 0x674   : > { %v5332_v0 = vmul.f32 1.442695, %v5327_v17  ;;  %v5326_v45 = vsub.f32 0.0, %v5322_v8 }
 0x676   : > { %5935 = vpow2.f32 %v5332_v0  ;;  %v5330_v38 = vmul.f32 1.442695, %v5326_v45 }
 0x678   : > { %5937 = vpow2.f32 %v5330_v38 }
 0x683   : > { %v5936_v3 = vpop.eup %5935 }
 0x684   : > { %v5339_v27 = vadd.f32 1.0, %v5936_v3 }
 0x685   : > { %v5938_v19 = vpop.eup %5937 }
 0x686   : > { %5939 = vrcp.f32 %v5339_v27  ;;  %v5338_v11 = vadd.f32 1.0, %v5938_v19 }
 0x688   : > { %5941 = vrcp.f32 %v5338_v11 }
 0x693   : > { %v5940_v31 = vpop.eup %5939 }
 0x694   : > { %5353 = vperm.xlu0 %5934, %v5940_v31  }
 0x695   : > { %v5942_v61 = vpop.eup %5941 }
 0x696   : > { %5348 = vperm.xlu1 %5933, %v5942_v61  }
 0x6a5   : > { %v5311_v52 = vpop.xlane.xlu0 %5310 }
 0x6a6   : > { %v5324_v37 = vadd.f32 %v5565_v43, %v5311_v52 }
 0x6a8   : > { %v5328_v32 = vsub.f32 0.0, %v5324_v37 }
 0x6a9   : > { %v5314_v41 = vpop.xlane.xlu0 %5313 }
 0x6aa   : > { %v5334_v5 = vmul.f32 1.442695, %v5328_v32  ;;  %v5325_v55 = vadd.f32 %v5565_v43, %v5314_v41 }
 0x6ac   : > { %5943 = vpow2.f32 %v5334_v5  ;;  %v5329_v58 = vsub.f32 0.0, %v5325_v55 }
 0x6ae   : > { %v5336_v63 = vmul.f32 1.442695, %v5329_v58 }
 0x6b0   : > { %5945 = vpow2.f32 %v5336_v63 }
 0x6b9   : > { %v5944_v12 = vpop.eup %5943 }
 0x6ba   : > { %v5340_v60 = vadd.f32 1.0, %v5944_v12 }
 0x6bc   : > { %5947 = vrcp.f32 %v5340_v60 }
 0x6bd   : > { %v5946_v10 = vpop.eup %5945 }
 0x6be   : > { %v5341_v15 = vadd.f32 1.0, %v5946_v10 }
 0x6c0   : > { %5949 = vrcp.f32 %v5341_v15 }
 0x6c9   : > { %v5948_v40 = vpop.eup %5947 }
 0x6ca   : > { %5358 = vperm.xlu1 %5933, %v5948_v40  }
 0x6cd   : > { %v5950_v44 = vpop.eup %5949 }
 0x6ce   : > { %5363 = vperm.xlu1 %5933, %v5950_v44  }
 0x70f   : > { %v5354_v24 = vpop.permute.xlu0 %5353 }
 0x710   : > { %5367 = vst [vmem:[%s436_s17 + $0x8] sm:$0xff] %v5354_v24 }
 0x711   : > { %v5349_v46 = vpop.permute.xlu1 %5348 }
 0x712   : > { %5366 = vst [vmem:[%s436_s17] sm:$0xff] %v5349_v46 }
 0x745   : > { %v5359_v26 = vpop.permute.xlu1 %5358 }
 0x746   : > { %5368 = vst [vmem:[%s436_s17 + $0x10] sm:$0xff] %v5359_v26 }
 0x749   : > { %v5364_v62 = vpop.permute.xlu1 %5363 }
 0x74a   : > { %5369 = vst [vmem:[%s436_s17 + $0x18] sm:$0xff] %v5364_v62 }
 0x74b   : > { %5968 = shalt.err (!%p5965_p3)
}
 0x74c   : > { %s5969_s14 = scalar_lea.hbm %s8913_s22, 512  ;;  %s5973_s23 = scalar_lea.hbm %s8969_s13, 1024 }
 0x74d   : > { %p5970_p4 = scmp.ne.s32.totalorder %s8913_s22, %s5969_s14  ;;  %p5974_p9 = scmp.lt.s32.totalorder %s8913_s22, %s8969_s13 }
 0x74e   : > { %p5975_p10 = scmp.lt.s32.totalorder %s5973_s23, %s5969_s14 }
 0x74f   : > { %p5971_p7 = pnand %p5970_p4, %p6136_p5 }
 0x750   : > { %p5976_p11 = por %p5975_p10, %p5974_p9 }
 0x751   : > { %p5972_p8 = pneg %p5971_p7 }
 0x753   : > { %p5977_p12 = pnand %p5976_p11, %p5972_p8 }
 0x755   : > { %5980 = shalt.err (!%p5977_p12)
}
 0x756   : > { %s6024_s0 = smov 128   ;;  %s9343_s1 = smov 8  }
 0x757   : > { %5887 = dma.vmem_to_hbm [thread:$0]  (%p6136_p5), %s8908_s21, 512, %s8913_s22, %s8915_s26, %s6024_s0, %s6024_s0, %s9343_s1  }
 0x758 PF: > { %p5893_p13 = scmp.ge.s32.totalorder %s6015_s30, 2  ;;  %s5399_s16 = sand.u32 1, %s6003_s27  }
 0x759   : > { %s5400_s14 = scalar_lea.sflag [#allocation6], %s5399_s16 }
 0x75a   : > { %p5890_p0 = pnand %p5893_p13, %p6140_p6 }
 0x75c   : > { %p5891_p1 = pneg %p5890_p0 }
 0x75e   : > { %5998 = dma.done.wait (%p5891_p1), %s5400_s14, 512  }
 0x75f   : > { %6000 = vsyncadd (%p5891_p1), %s5400_s14, 4294966784  ;;  %p25_p2 = scmp.ge.s32.totalorder %s6123_s15, 4   ;;  %s9344_s27 = smov %s6007_s28 }
 0x760   : > { %s9345_s28 = smov %s6011_s29  ;;  %s9346_s29 = smov %s6134_s18 }
 0x761   : > { %s9347_s30 = smov %s6123_s15  ;;  %27 = sbr.rel (!%p25_p2) target bundleno = 6 (0x6), region = 201 }
 0x766   :  { %5405 = vsyncpa [#allocation6], 1 }
 0x767   :  { %5407 = vsyncpa [#allocation6 + $0x1], 1 }

</bundles_post_ra>
